<compile_context>
chip_gen: v7x
topology: tpu7x:2x2x1
jax: 0.10.0
libtpu: 0.0.40
codegen_flags: <defaults>
</compile_context>

<pallas_src>
import functools

import numpy as np
import jax
import jax.numpy as jnp
from jax.experimental import pallas as pl
from jax.experimental.pallas import tpu as pltpu


# ----------------------------- Pallas kernels --------------------------------
# One grid step == `tt` timesteps.  The grid iterates sequentially on the TensorCore, so the
# recurrent hidden/cell state lives in VMEM scratch across grid iterations.
#
# Combined feature layout (width W = n_dirs * H, gate-major / direction-minor):
#   gates columns: [gate0_fwd | gate0_bwd | gate1_fwd | gate1_bwd | ...]
#   state columns: [h_fwd | h_bwd]
# so a single (B, W) x (W, G*W) block-diagonal matmul drives both directions and all
# elementwise gate math operates on contiguous (B, W) slices.


def _lstm_kernel(gi_ref, len_ref, whh_hbm, o_ref,
                 whh_vmem, dma_sem, h_sc, c_sc,
                 *, width, fwd_width, tt, seq_len):
    s = pl.program_id(0)

    @pl.when(s == 0)
    def _():
        # Load the constant recurrent weight ONCE into VMEM (single-buffered).
        cp = pltpu.make_async_copy(whh_hbm, whh_vmem, dma_sem)
        cp.start()
        cp.wait()
        h_sc[...] = jnp.zeros_like(h_sc)
        c_sc[...] = jnp.zeros_like(c_sc)

    lengths = len_ref[...]                                  # (B, 1) int32
    B = h_sc.shape[0]
    if fwd_width < width:                                   # bidirectional: lane -> direction
        lane = jax.lax.broadcasted_iota(jnp.int32, (B, width), 1)
        is_fwd = lane < fwd_width

    def step(j, carry):
        t = s * tt + j                                      # combined step index
        h_prev = h_sc[...]
        c_prev = c_sc[...]
        gates = (jnp.dot(h_prev.astype(whh_vmem.dtype), whh_vmem[...],
                         preferred_element_type=jnp.float32)
                 + gi_ref[j])                               # (B, 4W); i, f, g, o
        i = jax.nn.sigmoid(gates[:, 0 * width:1 * width])
        f = jax.nn.sigmoid(gates[:, 1 * width:2 * width])
        g = jnp.tanh(gates[:, 2 * width:3 * width])
        o = jax.nn.sigmoid(gates[:, 3 * width:4 * width])
        c_new = f * c_prev + i * g
        h_new = o * jnp.tanh(c_new)

        if fwd_width < width:
            # fwd lanes see timestep t, bwd lanes see the reversed timestep T-1-t
            eff_t = jnp.where(is_fwd, t, seq_len - 1 - t)
        else:
            eff_t = t
        valid = lengths > eff_t                             # prefix-valid (packed-seq) mask

        h_sc[...] = jnp.where(valid, h_new, h_prev)
        c_sc[...] = jnp.where(valid, c_new, c_prev)
        o_ref[j] = jnp.where(valid, h_new, 0.0).astype(o_ref.dtype)
        return carry

    jax.lax.fori_loop(0, tt, step, 0, unroll=True)


def _gru_kernel(gi_ref, len_ref, whh_hbm, bhh_ref, o_ref,
                whh_vmem, dma_sem, h_sc,
                *, width, fwd_width, tt, seq_len):
    s = pl.program_id(0)

    @pl.when(s == 0)
    def _():
        cp = pltpu.make_async_copy(whh_hbm, whh_vmem, dma_sem)
        cp.start()
        cp.wait()
        h_sc[...] = jnp.zeros_like(h_sc)

    lengths = len_ref[...]                                  # (B, 1) int32
    bhh = bhh_ref[...]                                      # (1, 3W) — hidden bias (n gated by r)
    B = h_sc.shape[0]
    if fwd_width < width:
        lane = jax.lax.broadcasted_iota(jnp.int32, (B, width), 1)
        is_fwd = lane < fwd_width

    def step(j, carry):
        t = s * tt + j
        h_prev = h_sc[...]
        gh = (jnp.dot(h_prev.astype(whh_vmem.dtype), whh_vmem[...],
                      preferred_element_type=jnp.float32) + bhh)
        gi = gi_ref[j]                                      # (B, 3W); r, z, n (b_ih folded in)
        r = jax.nn.sigmoid(gi[:, 0 * width:1 * width] + gh[:, 0 * width:1 * width])
        z = jax.nn.sigmoid(gi[:, 1 * width:2 * width] + gh[:, 1 * width:2 * width])
        n = jnp.tanh(gi[:, 2 * width:3 * width] + r * gh[:, 2 * width:3 * width])
        h_new = (1.0 - z) * n + z * h_prev

        if fwd_width < width:
            eff_t = jnp.where(is_fwd, t, seq_len - 1 - t)
        else:
            eff_t = t
        valid = lengths > eff_t

        h_sc[...] = jnp.where(valid, h_new, h_prev)
        o_ref[j] = jnp.where(valid, h_new, 0.0).astype(o_ref.dtype)
        return carry

    jax.lax.fori_loop(0, tt, step, 0, unroll=True)


# ------------------------------- helpers --------------------------------------

def _pick_time_block(seq_len, requested):
    if requested is not None:
        assert seq_len % requested == 0, "time_block must divide T"
        return requested
    for cand in (4, 3, 2, 1):
        if seq_len % cand == 0:
            return cand
    return 1


def _vmem_limit_bytes(tt, batch, width, gates, mxu_bytes):
    gw = gates * width
    est = (width * gw * mxu_bytes        # W_hh resident once in VMEM (single-buffered)
           + 2 * tt * batch * gw * 4     # gi blocks (double-buffered, f32)
           + 2 * tt * batch * width * 4  # output blocks (double-buffered, f32)
           + 3 * batch * width * 4       # h / c state scratch
           + (gw + 8 * batch) * 4)       # bias + lengths blocks (padded)
    # NOTE: re-derive per generation at production sizes (v5e/v6e: 128 MiB physical VMEM,
    # v7x: 64 MiB).  For this small test we just give comfortable headroom.
    return int(min(max(2 * est, 4 << 20), 32 << 20))


def prepare_params(params, *, mode, bidirectional, mxu_dtype=jnp.bfloat16):
    """Pre-transpose / fuse / interleave the weights once (not on every forward).

    Returns:
      wih  : (I, G*W)   input-projection weights, gate-major / direction-minor columns
      whh  : (W, G*W)   block-diagonal recurrent weights (both directions fused)
      b_in : (G*W,)     bias folded into the input projection (b_ih [+ b_hh for LSTM])
      b_hh : (1, G*W)   GRU only — hidden bias kept on the recurrent side (n-gate gating)
    """
    G = 4 if mode == "LSTM" else 3
    nd = 2 if bidirectional else 1
    H = params[0]["w_hh"].shape[1]
    I = params[0]["w_ih"].shape[1]
    W = nd * H

    wih = jnp.zeros((I, G * W), jnp.float32)
    whh = jnp.zeros((W, G * W), jnp.float32)
    b_in = jnp.zeros((G * W,), jnp.float32)
    b_hh = jnp.zeros((G * W,), jnp.float32)
    for d in range(nd):
        p = params[d]
        wih_t = jnp.transpose(p["w_ih"]).reshape(I, G, H)
        whh_t = jnp.transpose(p["w_hh"]).reshape(H, G, H)
        bih = p["b_ih"].reshape(G, H)
        bhh = p["b_hh"].reshape(G, H)
        for g in range(G):
            cs, ce = g * W + d * H, g * W + (d + 1) * H
            wih = wih.at[:, cs:ce].set(wih_t[:, g, :])
            whh = whh.at[d * H:(d + 1) * H, cs:ce].set(whh_t[:, g, :])
            if mode == "LSTM":
                b_in = b_in.at[cs:ce].set(bih[g] + bhh[g])
            else:
                b_in = b_in.at[cs:ce].set(bih[g])
                b_hh = b_hh.at[cs:ce].set(bhh[g])

    out = dict(wih=wih.astype(mxu_dtype), whh=whh.astype(mxu_dtype), b_in=b_in)
    if mode == "GRU":
        out["b_hh"] = b_hh.reshape(1, G * W)
    return out


# ------------------------------- forward --------------------------------------

def rnnbase_forward(v, mask, prepped, ln_params=None, *, mode="LSTM",
                    bidirectional=True, enable_layer_norm=False, time_block=None):
    """Equivalent of rnnbase.forward(v, mask) in eval mode."""
    T, B, I = v.shape
    v = v.astype(jnp.float32)

    if enable_layer_norm:
        mu = jnp.mean(v, axis=-1, keepdims=True)
        var = jnp.mean((v - mu) ** 2, axis=-1, keepdims=True)
        v = (v - mu) * jax.lax.rsqrt(var + 1e-5) * ln_params["gamma"] + ln_params["beta"]

    # TODO(synk): training-mode dropout on the packed data is not implemented (eval identity).

    lengths = jnp.sum((mask == 1).astype(jnp.int32), axis=1)            # (B,)

    nd = 2 if bidirectional else 1
    W = prepped["whh"].shape[0]
    GW = prepped["whh"].shape[1]
    H = W // nd
    G = GW // W
    mxu_dtype = prepped["whh"].dtype

    # --- (1) hoisted input projection: ONE big matmul for every timestep & both dirs ---
    gi = (jnp.dot(v.reshape(T * B, I).astype(mxu_dtype), prepped["wih"],
                  preferred_element_type=jnp.float32)
          + prepped["b_in"]).reshape(T, B, G, nd, H)
    if nd == 2:
        # backward stream consumes the time-reversed input projection
        gi = gi.at[:, :, :, 1, :].set(jnp.flip(gi[:, :, :, 1, :], axis=0))
    gi = gi.reshape(T, B, GW)

    tt = _pick_time_block(T, time_block)
    grid = (T // tt,)
    len_col = lengths.reshape(B, 1).astype(jnp.int32)

    in_specs = [
        pl.BlockSpec((tt, B, GW), lambda s: (s, 0, 0)),     # gi, time-blocked
        pl.BlockSpec((B, 1), lambda s: (0, 0)),             # lengths, constant tiny block
        pl.BlockSpec(memory_space=pl.ANY),                  # W_hh, copied once into VMEM
    ]
    args = [gi, len_col, prepped["whh"]]
    scratch = [pltpu.VMEM((W, GW), mxu_dtype), pltpu.SemaphoreType.DMA]

    if mode == "LSTM":
        kern = functools.partial(_lstm_kernel, width=W, fwd_width=H, tt=tt, seq_len=T)
        scratch += [pltpu.VMEM((B, W), jnp.float32), pltpu.VMEM((B, W), jnp.float32)]
    elif mode == "GRU":
        kern = functools.partial(_gru_kernel, width=W, fwd_width=H, tt=tt, seq_len=T)
        in_specs.append(pl.BlockSpec((1, GW), lambda s: (0, 0)))
        args.append(prepped["b_hh"])
        scratch += [pltpu.VMEM((B, W), jnp.float32)]
    else:
        raise ValueError("Wrong mode select %s, change to LSTM or GRU" % mode)

    vmem_limit = _vmem_limit_bytes(tt, B, W, G, jnp.dtype(mxu_dtype).itemsize)

    o_comb = pl.pallas_call(
        kern,
        out_shape=jax.ShapeDtypeStruct((T, B, W), jnp.float32),
        grid_spec=pltpu.PrefetchScalarGridSpec(
            num_scalar_prefetch=0,
            grid=grid,
            in_specs=in_specs,
            out_specs=pl.BlockSpec((tt, B, W), lambda s: (s, 0, 0)),
            scratch_shapes=scratch,
        ),
        compiler_params=pltpu.CompilerParams(
            dimension_semantics=("arbitrary",),
            vmem_limit_bytes=vmem_limit,
        ),
    )(*args)

    if nd == 2:
        # bwd half of combined step t corresponds to original position T-1-t -> flip time
        o = jnp.concatenate([o_comb[..., :H], jnp.flip(o_comb[..., H:], axis=0)], axis=-1)
    else:
        o = o_comb

    # lengths are assumed >= 1 (same implicit requirement as the PyTorch module).
    o_last = o[jnp.maximum(lengths - 1, 0), jnp.arange(B), :]
    return o, o_last


# --------------------------- parameter construction ---------------------------

def init_params(key, mode, input_size, hidden_size, bidirectional):
    G = 4 if mode == "LSTM" else 3
    n_dirs = 2 if bidirectional else 1
    xavier = jax.nn.initializers.glorot_uniform()   # ~ torch.nn.init.xavier_uniform_
    orth = jax.nn.initializers.orthogonal()         # ~ torch.nn.init.orthogonal_
    params = []
    for _ in range(n_dirs):
        key, k1, k2 = jax.random.split(key, 3)
        params.append(dict(
            w_ih=xavier(k1, (G * hidden_size, input_size), jnp.float32),
            w_hh=orth(k2, (G * hidden_size, hidden_size), jnp.float32),
            b_ih=jnp.zeros((G * hidden_size,), jnp.float32),   # constant_(0)
            b_hh=jnp.zeros((G * hidden_size,), jnp.float32),
        ))
    ln_params = dict(gamma=jnp.ones((input_size,), jnp.float32),
                     beta=jnp.zeros((input_size,), jnp.float32))
    return params, ln_params


# ------------------------------ numpy reference --------------------------------

def _sigmoid(x):
    return 1.0 / (1.0 + np.exp(-x))


def bf16_round(x):
    """Round-trip through bf16 (to emulate the kernel's MXU operand precision)."""
    return np.asarray(
        jnp.asarray(np.asarray(x, np.float32), jnp.bfloat16).astype(jnp.float32),
        np.float64)


def ref_rnn(mode, v, lengths, params, cast=lambda x: x):
    v = np.asarray(v, np.float64)
    T, B, _ = v.shape
    lengths = np.asarray(lengths)
    valid = (np.arange(T)[:, None] < lengths[None, :]).astype(np.float64)
    outs = []
    for d, p in enumerate(params):
        reverse = d == 1
        w_ih, w_hh = np.asarray(p["w_ih"], np.float64), np.asarray(p["w_hh"], np.float64)
        b_ih, b_hh = np.asarray(p["b_ih"], np.float64), np.asarray(p["b_hh"], np.float64)
        H = w_hh.shape[1]
        h = np.zeros((B, H)); c = np.zeros((B, H)); o = np.zeros((T, B, H))
        order = range(T - 1, -1, -1) if reverse else range(T)
        for t in order:
            xt = v[t]; mt = valid[t][:, None]
            gi = xt @ w_ih.T + b_ih
            gh = cast(h) @ w_hh.T + b_hh
            if mode == "LSTM":
                g = gi + gh
                i = _sigmoid(g[:, :H]); f = _sigmoid(g[:, H:2*H])
                gg = np.tanh(g[:, 2*H:3*H]); oo = _sigmoid(g[:, 3*H:])
                c_new = f * c + i * gg
                h_new = oo * np.tanh(c_new)
                c = mt * c_new + (1 - mt) * c
            else:
                r = _sigmoid(gi[:, :H] + gh[:, :H])
                z = _sigmoid(gi[:, H:2*H] + gh[:, H:2*H])
                n = np.tanh(gi[:, 2*H:3*H] + r * gh[:, 2*H:3*H])
                h_new = (1 - z) * n + z * h
            h = mt * h_new + (1 - mt) * h
            o[t] = mt * h_new
        outs.append(o)
    o = np.concatenate(outs, axis=-1)
    o_last = o[lengths - 1, np.arange(B)]
    return o, o_last


# ----------------------------------- main --------------------------------------

if __name__ == "__main__":
    key = jax.random.PRNGKey(0)

    configs = [
        # (mode, bidirectional, T, B, I, H, lengths)
        ("LSTM", True, 8, 8, 128, 128, [8, 5, 3, 8, 1, 7, 8, 2]),
        ("GRU", False, 6, 4, 64, 128, [6, 4, 2, 6]),
    ]

    fwd = jax.jit(rnnbase_forward,
                  static_argnames=("mode", "bidirectional", "enable_layer_norm",
                                   "time_block"))

    for mode, bidir, T, B, I, H, lens in configs:
        key, kv, kp = jax.random.split(key, 3)
        v = jax.random.normal(kv, (T, B, I), jnp.float32)

        lengths = jnp.array(lens, jnp.int32)
        assert int(jnp.max(lengths)) == T            # see NOTE at top of file
        mask = (jnp.arange(T)[None, :] < lengths[:, None]).astype(jnp.int32)   # (B, T)

        params, ln_params = init_params(kp, mode, I, H, bidir)
        # The module initializes biases to 0; perturb them here so bias plumbing is tested
        # (after training they are arbitrary anyway).
        for p in params:
            key, k1, k2 = jax.random.split(key, 3)
            p["b_ih"] = 0.1 * jax.random.normal(k1, p["b_ih"].shape, jnp.float32)
            p["b_hh"] = 0.1 * jax.random.normal(k2, p["b_hh"].shape, jnp.float32)

        prepped = prepare_params(params, mode=mode, bidirectional=bidir,
                                 mxu_dtype=jnp.bfloat16)

        o, o_last = fwd(v, mask, prepped, ln_params, mode=mode,
                        bidirectional=bidir, enable_layer_norm=False)
        jax.block_until_ready((o, o_last))

        # Reference with the same bf16 operand precision policy (weights, inputs, h operand).
        params_ref = [dict(w_ih=bf16_round(p["w_ih"]), w_hh=bf16_round(p["w_hh"]),
                           b_ih=np.asarray(p["b_ih"], np.float64),
                           b_hh=np.asarray(p["b_hh"], np.float64)) for p in params]
        o_ref, o_last_ref = ref_rnn(mode, bf16_round(v), np.asarray(lengths),
                                    params_ref, cast=bf16_round)

        np.testing.assert_allclose(np.asarray(o), o_ref, rtol=2e-2, atol=2e-2)
        np.testing.assert_allclose(np.asarray(o_last), o_last_ref, rtol=2e-2, atol=2e-2)

    print("KERNEL_OK")
</pallas_src>

<mosaic_0001>
module attributes {stable_mosaic.version = 11 : i64} {
  func.func @_lstm_kernel(%arg0: i32, %arg1: memref<4x8x1024xf32, #tpu.memory_space<vmem>>, %arg2: memref<8x1xi32, #tpu.memory_space<vmem>>, %arg3: memref<256x1024xbf16, #tpu.memory_space<any>>, %arg4: memref<4x8x256xf32, #tpu.memory_space<vmem>>, %arg5: memref<256x1024xbf16, #tpu.memory_space<vmem>>, %arg6: memref<!tpu.dma_semaphore, #tpu.memory_space<semaphore_mem>>, %arg7: memref<8x256xf32, #tpu.memory_space<vmem>>, %arg8: memref<8x256xf32, #tpu.memory_space<vmem>>) attributes {dimension_semantics = [#tpu.dimension_semantics<arbitrary>], iteration_bounds = array<i64: 2>, scalar_prefetch = 0 : i64, scratch_operands = 4 : i64, tpu.core_type = #tpu.core_type<tc>, window_params = [{transform_indices = @transform_0, window_bounds = array<i64: 4, 8, 1024>}, {pipeline_mode = #tpu.pipeline_mode<synchronous>, transform_indices = @transform_1, window_bounds = array<i64: 8, 1>}, {}, {transform_indices = @transform_3, window_bounds = array<i64: 4, 8, 256>}]} {
    %c0_i32 = arith.constant 0 : i32
    %0 = arith.cmpi eq, %arg0, %c0_i32 : i32
    %1 = arith.extui %0 : i1 to i32
    %c0_i32_0 = arith.constant 0 : i32
    %2 = arith.cmpi ne, %1, %c0_i32_0 : i32
    scf.if %2 {
      tpu.enqueue_dma source(%arg3 : memref<256x1024xbf16, #tpu.memory_space<any>>) target(%arg5 : memref<256x1024xbf16, #tpu.memory_space<vmem>>) target_semaphore(%arg6 : memref<!tpu.dma_semaphore, #tpu.memory_space<semaphore_mem>>)
      tpu.wait_dma2 semaphore(%arg6 : memref<!tpu.dma_semaphore, #tpu.memory_space<semaphore_mem>>) src(%arg3 : memref<256x1024xbf16, #tpu.memory_space<any>>) dst(%arg5 : memref<256x1024xbf16, #tpu.memory_space<vmem>>)
      %cst_85 = arith.constant 0.000000e+00 : f32
      %215 = vector.broadcast %cst_85 : f32 to vector<8x256xf32>
      %c0_86 = arith.constant 0 : index
      %c0_87 = arith.constant 0 : index
      %216 = vector.load %arg7[%c0_86, %c0_87] : memref<8x256xf32, #tpu.memory_space<vmem>>, vector<8x256xf32>
      tpu.vector_store %arg7[%c0_86, %c0_87], %215 {strides = array<i32>} : memref<8x256xf32, #tpu.memory_space<vmem>>, vector<8x256xf32>,
      %cst_88 = arith.constant 0.000000e+00 : f32
      %217 = vector.broadcast %cst_88 : f32 to vector<8x256xf32>
      %c0_89 = arith.constant 0 : index
      %c0_90 = arith.constant 0 : index
      %218 = vector.load %arg8[%c0_89, %c0_90] : memref<8x256xf32, #tpu.memory_space<vmem>>, vector<8x256xf32>
      tpu.vector_store %arg8[%c0_89, %c0_90], %217 {strides = array<i32>} : memref<8x256xf32, #tpu.memory_space<vmem>>, vector<8x256xf32>,
    } else {
    }
    %c0 = arith.constant 0 : index
    %c0_1 = arith.constant 0 : index
    %3 = vector.load %arg2[%c0, %c0_1] : memref<8x1xi32, #tpu.memory_space<vmem>>, vector<8x1xi32>
    %4 = tpu.iota {dimensions = array<i32: 1>} : vector<8x256xi32>
    %c128_i32 = arith.constant 128 : i32
    %5 = vector.broadcast %c128_i32 : i32 to vector<8x256xi32>
    %6 = arith.cmpi slt, %4, %5 : vector<8x256xi32>
    %c0_i32_2 = arith.constant 0 : i32
    %c4_i32 = arith.constant 4 : i32
    %7 = arith.muli %arg0, %c4_i32 : i32
    %8 = arith.addi %7, %c0_i32_2 : i32
    %c0_3 = arith.constant 0 : index
    %c0_4 = arith.constant 0 : index
    %9 = vector.load %arg7[%c0_3, %c0_4] : memref<8x256xf32, #tpu.memory_space<vmem>>, vector<8x256xf32>
    %c0_5 = arith.constant 0 : index
    %c0_6 = arith.constant 0 : index
    %10 = vector.load %arg8[%c0_5, %c0_6] : memref<8x256xf32, #tpu.memory_space<vmem>>, vector<8x256xf32>
    %11 = arith.truncf %9 : vector<8x256xf32> to vector<8x256xbf16>
    %c0_7 = arith.constant 0 : index
    %c0_8 = arith.constant 0 : index
    %12 = vector.load %arg5[%c0_7, %c0_8] : memref<256x1024xbf16, #tpu.memory_space<vmem>>, vector<256x1024xbf16>
    %cst = arith.constant dense<0.000000e+00> : vector<8x1024xf32>
    %13 = tpu.matmul %11, %12, %cst {dimension_numbers = #tpu.dot_dimension_numbers<[1], [0], [0], [1], [0, 0, 1, 1], [], []>} : vector<8x256xbf16>, vector<256x1024xbf16>, vector<8x1024xf32> -> vector<8x1024xf32>
    %14 = arith.index_cast %c0_i32_2 : i32 to index
    %c0_9 = arith.constant 0 : index
    %c0_10 = arith.constant 0 : index
    %15 = vector.load %arg1[%14, %c0_9, %c0_10] : memref<4x8x1024xf32, #tpu.memory_space<vmem>>, vector<1x8x1024xf32>
    %16 = vector.shape_cast %15 : vector<1x8x1024xf32> to vector<8x1024xf32>
    %17 = arith.addf %13, %16 : vector<8x1024xf32>
    %18 = vector.extract_strided_slice %17 {offsets = [0, 0], sizes = [8, 256], strides = [1, 1]} : vector<8x1024xf32> to vector<8x256xf32>
    %19 = arith.negf %18 : vector<8x256xf32>
    %20 = math.exp %19 : vector<8x256xf32>
    %cst_11 = arith.constant 1.000000e+00 : f32
    %21 = vector.broadcast %cst_11 : f32 to vector<8x256xf32>
    %22 = arith.addf %21, %20 : vector<8x256xf32>
    %23 = arith.divf %21, %22 : vector<8x256xf32>
    %24 = vector.extract_strided_slice %17 {offsets = [0, 256], sizes = [8, 256], strides = [1, 1]} : vector<8x1024xf32> to vector<8x256xf32>
    %25 = arith.negf %24 : vector<8x256xf32>
    %26 = math.exp %25 : vector<8x256xf32>
    %cst_12 = arith.constant 1.000000e+00 : f32
    %27 = vector.broadcast %cst_12 : f32 to vector<8x256xf32>
    %28 = arith.addf %27, %26 : vector<8x256xf32>
    %29 = arith.divf %27, %28 : vector<8x256xf32>
    %30 = vector.extract_strided_slice %17 {offsets = [0, 512], sizes = [8, 256], strides = [1, 1]} : vector<8x1024xf32> to vector<8x256xf32>
    %31 = math.tanh %30 : vector<8x256xf32>
    %32 = vector.extract_strided_slice %17 {offsets = [0, 768], sizes = [8, 256], strides = [1, 1]} : vector<8x1024xf32> to vector<8x256xf32>
    %33 = arith.negf %32 : vector<8x256xf32>
    %34 = math.exp %33 : vector<8x256xf32>
    %cst_13 = arith.constant 1.000000e+00 : f32
    %35 = vector.broadcast %cst_13 : f32 to vector<8x256xf32>
    %36 = arith.addf %35, %34 : vector<8x256xf32>
    %37 = arith.divf %35, %36 : vector<8x256xf32>
    %38 = arith.mulf %29, %10 : vector<8x256xf32>
    %39 = arith.mulf %23, %31 : vector<8x256xf32>
    %40 = arith.addf %38, %39 : vector<8x256xf32>
    %41 = math.tanh %40 : vector<8x256xf32>
    %42 = arith.mulf %37, %41 : vector<8x256xf32>
    %c7_i32 = arith.constant 7 : i32
    %43 = arith.subi %c7_i32, %8 : i32
    %44 = vector.broadcast %8 : i32 to vector<8x256xi32>
    %45 = vector.broadcast %43 : i32 to vector<8x256xi32>
    %46 = arith.select %6, %44, %45 : vector<8x256xi1>, vector<8x256xi32>
    %47 = vector.broadcast %3 : vector<8x1xi32> to vector<8x256xi32>
    %48 = arith.cmpi sgt, %47, %46 : vector<8x256xi32>
    %49 = arith.select %48, %42, %9 : vector<8x256xi1>, vector<8x256xf32>
    %c0_14 = arith.constant 0 : index
    %c0_15 = arith.constant 0 : index
    %50 = vector.load %arg7[%c0_14, %c0_15] : memref<8x256xf32, #tpu.memory_space<vmem>>, vector<8x256xf32>
    tpu.vector_store %arg7[%c0_14, %c0_15], %49 {strides = array<i32>} : memref<8x256xf32, #tpu.memory_space<vmem>>, vector<8x256xf32>,
    %51 = arith.select %48, %40, %10 : vector<8x256xi1>, vector<8x256xf32>
    %c0_16 = arith.constant 0 : index
    %c0_17 = arith.constant 0 : index
    %52 = vector.load %arg8[%c0_16, %c0_17] : memref<8x256xf32, #tpu.memory_space<vmem>>, vector<8x256xf32>
    tpu.vector_store %arg8[%c0_16, %c0_17], %51 {strides = array<i32>} : memref<8x256xf32, #tpu.memory_space<vmem>>, vector<8x256xf32>,
    %cst_18 = arith.constant 0.000000e+00 : f32
    %53 = vector.broadcast %cst_18 : f32 to vector<8x256xf32>
    %54 = arith.select %48, %42, %53 : vector<8x256xi1>, vector<8x256xf32>
    %55 = arith.index_cast %c0_i32_2 : i32 to index
    %c0_19 = arith.constant 0 : index
    %c0_20 = arith.constant 0 : index
    %56 = vector.load %arg4[%55, %c0_19, %c0_20] : memref<4x8x256xf32, #tpu.memory_space<vmem>>, vector<1x8x256xf32>
    %57 = vector.shape_cast %56 : vector<1x8x256xf32> to vector<8x256xf32>
    %58 = vector.shape_cast %54 : vector<8x256xf32> to vector<1x8x256xf32>
    tpu.vector_store %arg4[%55, %c0_19, %c0_20], %58 {strides = array<i32>} : memref<4x8x256xf32, #tpu.memory_space<vmem>>, vector<1x8x256xf32>,
    %c1_i32 = arith.constant 1 : i32
    %c4_i32_21 = arith.constant 4 : i32
    %59 = arith.muli %arg0, %c4_i32_21 : i32
    %60 = arith.addi %59, %c1_i32 : i32
    %c0_22 = arith.constant 0 : index
    %c0_23 = arith.constant 0 : index
    %61 = vector.load %arg7[%c0_22, %c0_23] : memref<8x256xf32, #tpu.memory_space<vmem>>, vector<8x256xf32>
    %c0_24 = arith.constant 0 : index
    %c0_25 = arith.constant 0 : index
    %62 = vector.load %arg8[%c0_24, %c0_25] : memref<8x256xf32, #tpu.memory_space<vmem>>, vector<8x256xf32>
    %63 = arith.truncf %61 : vector<8x256xf32> to vector<8x256xbf16>
    %c0_26 = arith.constant 0 : index
    %c0_27 = arith.constant 0 : index
    %64 = vector.load %arg5[%c0_26, %c0_27] : memref<256x1024xbf16, #tpu.memory_space<vmem>>, vector<256x1024xbf16>
    %cst_28 = arith.constant dense<0.000000e+00> : vector<8x1024xf32>
    %65 = tpu.matmul %63, %64, %cst_28 {dimension_numbers = #tpu.dot_dimension_numbers<[1], [0], [0], [1], [0, 0, 1, 1], [], []>} : vector<8x256xbf16>, vector<256x1024xbf16>, vector<8x1024xf32> -> vector<8x1024xf32>
    %66 = arith.index_cast %c1_i32 : i32 to index
    %c0_29 = arith.constant 0 : index
    %c0_30 = arith.constant 0 : index
    %67 = vector.load %arg1[%66, %c0_29, %c0_30] : memref<4x8x1024xf32, #tpu.memory_space<vmem>>, vector<1x8x1024xf32>
    %68 = vector.shape_cast %67 : vector<1x8x1024xf32> to vector<8x1024xf32>
    %69 = arith.addf %65, %68 : vector<8x1024xf32>
    %70 = vector.extract_strided_slice %69 {offsets = [0, 0], sizes = [8, 256], strides = [1, 1]} : vector<8x1024xf32> to vector<8x256xf32>
    %71 = arith.negf %70 : vector<8x256xf32>
    %72 = math.exp %71 : vector<8x256xf32>
    %cst_31 = arith.constant 1.000000e+00 : f32
    %73 = vector.broadcast %cst_31 : f32 to vector<8x256xf32>
    %74 = arith.addf %73, %72 : vector<8x256xf32>
    %75 = arith.divf %73, %74 : vector<8x256xf32>
    %76 = vector.extract_strided_slice %69 {offsets = [0, 256], sizes = [8, 256], strides = [1, 1]} : vector<8x1024xf32> to vector<8x256xf32>
    %77 = arith.negf %76 : vector<8x256xf32>
    %78 = math.exp %77 : vector<8x256xf32>
    %cst_32 = arith.constant 1.000000e+00 : f32
    %79 = vector.broadcast %cst_32 : f32 to vector<8x256xf32>
    %80 = arith.addf %79, %78 : vector<8x256xf32>
    %81 = arith.divf %79, %80 : vector<8x256xf32>
    %82 = vector.extract_strided_slice %69 {offsets = [0, 512], sizes = [8, 256], strides = [1, 1]} : vector<8x1024xf32> to vector<8x256xf32>
    %83 = math.tanh %82 : vector<8x256xf32>
    %84 = vector.extract_strided_slice %69 {offsets = [0, 768], sizes = [8, 256], strides = [1, 1]} : vector<8x1024xf32> to vector<8x256xf32>
    %85 = arith.negf %84 : vector<8x256xf32>
    %86 = math.exp %85 : vector<8x256xf32>
    %cst_33 = arith.constant 1.000000e+00 : f32
    %87 = vector.broadcast %cst_33 : f32 to vector<8x256xf32>
    %88 = arith.addf %87, %86 : vector<8x256xf32>
    %89 = arith.divf %87, %88 : vector<8x256xf32>
    %90 = arith.mulf %81, %62 : vector<8x256xf32>
    %91 = arith.mulf %75, %83 : vector<8x256xf32>
    %92 = arith.addf %90, %91 : vector<8x256xf32>
    %93 = math.tanh %92 : vector<8x256xf32>
    %94 = arith.mulf %89, %93 : vector<8x256xf32>
    %c7_i32_34 = arith.constant 7 : i32
    %95 = arith.subi %c7_i32_34, %60 : i32
    %96 = vector.broadcast %60 : i32 to vector<8x256xi32>
    %97 = vector.broadcast %95 : i32 to vector<8x256xi32>
    %98 = arith.select %6, %96, %97 : vector<8x256xi1>, vector<8x256xi32>
    %99 = vector.broadcast %3 : vector<8x1xi32> to vector<8x256xi32>
    %100 = arith.cmpi sgt, %99, %98 : vector<8x256xi32>
    %101 = arith.select %100, %94, %61 : vector<8x256xi1>, vector<8x256xf32>
    %c0_35 = arith.constant 0 : index
    %c0_36 = arith.constant 0 : index
    %102 = vector.load %arg7[%c0_35, %c0_36] : memref<8x256xf32, #tpu.memory_space<vmem>>, vector<8x256xf32>
    tpu.vector_store %arg7[%c0_35, %c0_36], %101 {strides = array<i32>} : memref<8x256xf32, #tpu.memory_space<vmem>>, vector<8x256xf32>,
    %103 = arith.select %100, %92, %62 : vector<8x256xi1>, vector<8x256xf32>
    %c0_37 = arith.constant 0 : index
    %c0_38 = arith.constant 0 : index
    %104 = vector.load %arg8[%c0_37, %c0_38] : memref<8x256xf32, #tpu.memory_space<vmem>>, vector<8x256xf32>
    tpu.vector_store %arg8[%c0_37, %c0_38], %103 {strides = array<i32>} : memref<8x256xf32, #tpu.memory_space<vmem>>, vector<8x256xf32>,
    %cst_39 = arith.constant 0.000000e+00 : f32
    %105 = vector.broadcast %cst_39 : f32 to vector<8x256xf32>
    %106 = arith.select %100, %94, %105 : vector<8x256xi1>, vector<8x256xf32>
    %107 = arith.index_cast %c1_i32 : i32 to index
    %c0_40 = arith.constant 0 : index
    %c0_41 = arith.constant 0 : index
    %108 = vector.load %arg4[%107, %c0_40, %c0_41] : memref<4x8x256xf32, #tpu.memory_space<vmem>>, vector<1x8x256xf32>
    %109 = vector.shape_cast %108 : vector<1x8x256xf32> to vector<8x256xf32>
    %110 = vector.shape_cast %106 : vector<8x256xf32> to vector<1x8x256xf32>
    tpu.vector_store %arg4[%107, %c0_40, %c0_41], %110 {strides = array<i32>} : memref<4x8x256xf32, #tpu.memory_space<vmem>>, vector<1x8x256xf32>,
    %c2_i32 = arith.constant 2 : i32
    %c4_i32_42 = arith.constant 4 : i32
    %111 = arith.muli %arg0, %c4_i32_42 : i32
    %112 = arith.addi %111, %c2_i32 : i32
    %c0_43 = arith.constant 0 : index
    %c0_44 = arith.constant 0 : index
    %113 = vector.load %arg7[%c0_43, %c0_44] : memref<8x256xf32, #tpu.memory_space<vmem>>, vector<8x256xf32>
    %c0_45 = arith.constant 0 : index
    %c0_46 = arith.constant 0 : index
    %114 = vector.load %arg8[%c0_45, %c0_46] : memref<8x256xf32, #tpu.memory_space<vmem>>, vector<8x256xf32>
    %115 = arith.truncf %113 : vector<8x256xf32> to vector<8x256xbf16>
    %c0_47 = arith.constant 0 : index
    %c0_48 = arith.constant 0 : index
    %116 = vector.load %arg5[%c0_47, %c0_48] : memref<256x1024xbf16, #tpu.memory_space<vmem>>, vector<256x1024xbf16>
    %cst_49 = arith.constant dense<0.000000e+00> : vector<8x1024xf32>
    %117 = tpu.matmul %115, %116, %cst_49 {dimension_numbers = #tpu.dot_dimension_numbers<[1], [0], [0], [1], [0, 0, 1, 1], [], []>} : vector<8x256xbf16>, vector<256x1024xbf16>, vector<8x1024xf32> -> vector<8x1024xf32>
    %118 = arith.index_cast %c2_i32 : i32 to index
    %c0_50 = arith.constant 0 : index
    %c0_51 = arith.constant 0 : index
    %119 = vector.load %arg1[%118, %c0_50, %c0_51] : memref<4x8x1024xf32, #tpu.memory_space<vmem>>, vector<1x8x1024xf32>
    %120 = vector.shape_cast %119 : vector<1x8x1024xf32> to vector<8x1024xf32>
    %121 = arith.addf %117, %120 : vector<8x1024xf32>
    %122 = vector.extract_strided_slice %121 {offsets = [0, 0], sizes = [8, 256], strides = [1, 1]} : vector<8x1024xf32> to vector<8x256xf32>
    %123 = arith.negf %122 : vector<8x256xf32>
    %124 = math.exp %123 : vector<8x256xf32>
    %cst_52 = arith.constant 1.000000e+00 : f32
    %125 = vector.broadcast %cst_52 : f32 to vector<8x256xf32>
    %126 = arith.addf %125, %124 : vector<8x256xf32>
    %127 = arith.divf %125, %126 : vector<8x256xf32>
    %128 = vector.extract_strided_slice %121 {offsets = [0, 256], sizes = [8, 256], strides = [1, 1]} : vector<8x1024xf32> to vector<8x256xf32>
    %129 = arith.negf %128 : vector<8x256xf32>
    %130 = math.exp %129 : vector<8x256xf32>
    %cst_53 = arith.constant 1.000000e+00 : f32
    %131 = vector.broadcast %cst_53 : f32 to vector<8x256xf32>
    %132 = arith.addf %131, %130 : vector<8x256xf32>
    %133 = arith.divf %131, %132 : vector<8x256xf32>
    %134 = vector.extract_strided_slice %121 {offsets = [0, 512], sizes = [8, 256], strides = [1, 1]} : vector<8x1024xf32> to vector<8x256xf32>
    %135 = math.tanh %134 : vector<8x256xf32>
    %136 = vector.extract_strided_slice %121 {offsets = [0, 768], sizes = [8, 256], strides = [1, 1]} : vector<8x1024xf32> to vector<8x256xf32>
    %137 = arith.negf %136 : vector<8x256xf32>
    %138 = math.exp %137 : vector<8x256xf32>
    %cst_54 = arith.constant 1.000000e+00 : f32
    %139 = vector.broadcast %cst_54 : f32 to vector<8x256xf32>
    %140 = arith.addf %139, %138 : vector<8x256xf32>
    %141 = arith.divf %139, %140 : vector<8x256xf32>
    %142 = arith.mulf %133, %114 : vector<8x256xf32>
    %143 = arith.mulf %127, %135 : vector<8x256xf32>
    %144 = arith.addf %142, %143 : vector<8x256xf32>
    %145 = math.tanh %144 : vector<8x256xf32>
    %146 = arith.mulf %141, %145 : vector<8x256xf32>
    %c7_i32_55 = arith.constant 7 : i32
    %147 = arith.subi %c7_i32_55, %112 : i32
    %148 = vector.broadcast %112 : i32 to vector<8x256xi32>
    %149 = vector.broadcast %147 : i32 to vector<8x256xi32>
    %150 = arith.select %6, %148, %149 : vector<8x256xi1>, vector<8x256xi32>
    %151 = vector.broadcast %3 : vector<8x1xi32> to vector<8x256xi32>
    %152 = arith.cmpi sgt, %151, %150 : vector<8x256xi32>
    %153 = arith.select %152, %146, %113 : vector<8x256xi1>, vector<8x256xf32>
    %c0_56 = arith.constant 0 : index
    %c0_57 = arith.constant 0 : index
    %154 = vector.load %arg7[%c0_56, %c0_57] : memref<8x256xf32, #tpu.memory_space<vmem>>, vector<8x256xf32>
    tpu.vector_store %arg7[%c0_56, %c0_57], %153 {strides = array<i32>} : memref<8x256xf32, #tpu.memory_space<vmem>>, vector<8x256xf32>,
    %155 = arith.select %152, %144, %114 : vector<8x256xi1>, vector<8x256xf32>
    %c0_58 = arith.constant 0 : index
    %c0_59 = arith.constant 0 : index
    %156 = vector.load %arg8[%c0_58, %c0_59] : memref<8x256xf32, #tpu.memory_space<vmem>>, vector<8x256xf32>
    tpu.vector_store %arg8[%c0_58, %c0_59], %155 {strides = array<i32>} : memref<8x256xf32, #tpu.memory_space<vmem>>, vector<8x256xf32>,
    %cst_60 = arith.constant 0.000000e+00 : f32
    %157 = vector.broadcast %cst_60 : f32 to vector<8x256xf32>
    %158 = arith.select %152, %146, %157 : vector<8x256xi1>, vector<8x256xf32>
    %159 = arith.index_cast %c2_i32 : i32 to index
    %c0_61 = arith.constant 0 : index
    %c0_62 = arith.constant 0 : index
    %160 = vector.load %arg4[%159, %c0_61, %c0_62] : memref<4x8x256xf32, #tpu.memory_space<vmem>>, vector<1x8x256xf32>
    %161 = vector.shape_cast %160 : vector<1x8x256xf32> to vector<8x256xf32>
    %162 = vector.shape_cast %158 : vector<8x256xf32> to vector<1x8x256xf32>
    tpu.vector_store %arg4[%159, %c0_61, %c0_62], %162 {strides = array<i32>} : memref<4x8x256xf32, #tpu.memory_space<vmem>>, vector<1x8x256xf32>,
    %c3_i32 = arith.constant 3 : i32
    %c4_i32_63 = arith.constant 4 : i32
    %163 = arith.muli %arg0, %c4_i32_63 : i32
    %164 = arith.addi %163, %c3_i32 : i32
    %c0_64 = arith.constant 0 : index
    %c0_65 = arith.constant 0 : index
    %165 = vector.load %arg7[%c0_64, %c0_65] : memref<8x256xf32, #tpu.memory_space<vmem>>, vector<8x256xf32>
    %c0_66 = arith.constant 0 : index
    %c0_67 = arith.constant 0 : index
    %166 = vector.load %arg8[%c0_66, %c0_67] : memref<8x256xf32, #tpu.memory_space<vmem>>, vector<8x256xf32>
    %167 = arith.truncf %165 : vector<8x256xf32> to vector<8x256xbf16>
    %c0_68 = arith.constant 0 : index
    %c0_69 = arith.constant 0 : index
    %168 = vector.load %arg5[%c0_68, %c0_69] : memref<256x1024xbf16, #tpu.memory_space<vmem>>, vector<256x1024xbf16>
    %cst_70 = arith.constant dense<0.000000e+00> : vector<8x1024xf32>
    %169 = tpu.matmul %167, %168, %cst_70 {dimension_numbers = #tpu.dot_dimension_numbers<[1], [0], [0], [1], [0, 0, 1, 1], [], []>} : vector<8x256xbf16>, vector<256x1024xbf16>, vector<8x1024xf32> -> vector<8x1024xf32>
    %170 = arith.index_cast %c3_i32 : i32 to index
    %c0_71 = arith.constant 0 : index
    %c0_72 = arith.constant 0 : index
    %171 = vector.load %arg1[%170, %c0_71, %c0_72] : memref<4x8x1024xf32, #tpu.memory_space<vmem>>, vector<1x8x1024xf32>
    %172 = vector.shape_cast %171 : vector<1x8x1024xf32> to vector<8x1024xf32>
    %173 = arith.addf %169, %172 : vector<8x1024xf32>
    %174 = vector.extract_strided_slice %173 {offsets = [0, 0], sizes = [8, 256], strides = [1, 1]} : vector<8x1024xf32> to vector<8x256xf32>
    %175 = arith.negf %174 : vector<8x256xf32>
    %176 = math.exp %175 : vector<8x256xf32>
    %cst_73 = arith.constant 1.000000e+00 : f32
    %177 = vector.broadcast %cst_73 : f32 to vector<8x256xf32>
    %178 = arith.addf %177, %176 : vector<8x256xf32>
    %179 = arith.divf %177, %178 : vector<8x256xf32>
    %180 = vector.extract_strided_slice %173 {offsets = [0, 256], sizes = [8, 256], strides = [1, 1]} : vector<8x1024xf32> to vector<8x256xf32>
    %181 = arith.negf %180 : vector<8x256xf32>
    %182 = math.exp %181 : vector<8x256xf32>
    %cst_74 = arith.constant 1.000000e+00 : f32
    %183 = vector.broadcast %cst_74 : f32 to vector<8x256xf32>
    %184 = arith.addf %183, %182 : vector<8x256xf32>
    %185 = arith.divf %183, %184 : vector<8x256xf32>
    %186 = vector.extract_strided_slice %173 {offsets = [0, 512], sizes = [8, 256], strides = [1, 1]} : vector<8x1024xf32> to vector<8x256xf32>
    %187 = math.tanh %186 : vector<8x256xf32>
    %188 = vector.extract_strided_slice %173 {offsets = [0, 768], sizes = [8, 256], strides = [1, 1]} : vector<8x1024xf32> to vector<8x256xf32>
    %189 = arith.negf %188 : vector<8x256xf32>
    %190 = math.exp %189 : vector<8x256xf32>
    %cst_75 = arith.constant 1.000000e+00 : f32
    %191 = vector.broadcast %cst_75 : f32 to vector<8x256xf32>
    %192 = arith.addf %191, %190 : vector<8x256xf32>
    %193 = arith.divf %191, %192 : vector<8x256xf32>
    %194 = arith.mulf %185, %166 : vector<8x256xf32>
    %195 = arith.mulf %179, %187 : vector<8x256xf32>
    %196 = arith.addf %194, %195 : vector<8x256xf32>
    %197 = math.tanh %196 : vector<8x256xf32>
    %198 = arith.mulf %193, %197 : vector<8x256xf32>
    %c7_i32_76 = arith.constant 7 : i32
    %199 = arith.subi %c7_i32_76, %164 : i32
    %200 = vector.broadcast %164 : i32 to vector<8x256xi32>
    %201 = vector.broadcast %199 : i32 to vector<8x256xi32>
    %202 = arith.select %6, %200, %201 : vector<8x256xi1>, vector<8x256xi32>
    %203 = vector.broadcast %3 : vector<8x1xi32> to vector<8x256xi32>
    %204 = arith.cmpi sgt, %203, %202 : vector<8x256xi32>
    %205 = arith.select %204, %198, %165 : vector<8x256xi1>, vector<8x256xf32>
    %c0_77 = arith.constant 0 : index
    %c0_78 = arith.constant 0 : index
    %206 = vector.load %arg7[%c0_77, %c0_78] : memref<8x256xf32, #tpu.memory_space<vmem>>, vector<8x256xf32>
    tpu.vector_store %arg7[%c0_77, %c0_78], %205 {strides = array<i32>} : memref<8x256xf32, #tpu.memory_space<vmem>>, vector<8x256xf32>,
    %207 = arith.select %204, %196, %166 : vector<8x256xi1>, vector<8x256xf32>
    %c0_79 = arith.constant 0 : index
    %c0_80 = arith.constant 0 : index
    %208 = vector.load %arg8[%c0_79, %c0_80] : memref<8x256xf32, #tpu.memory_space<vmem>>, vector<8x256xf32>
    tpu.vector_store %arg8[%c0_79, %c0_80], %207 {strides = array<i32>} : memref<8x256xf32, #tpu.memory_space<vmem>>, vector<8x256xf32>,
    %cst_81 = arith.constant 0.000000e+00 : f32
    %209 = vector.broadcast %cst_81 : f32 to vector<8x256xf32>
    %210 = arith.select %204, %198, %209 : vector<8x256xi1>, vector<8x256xf32>
    %211 = arith.index_cast %c3_i32 : i32 to index
    %c0_82 = arith.constant 0 : index
    %c0_83 = arith.constant 0 : index
    %212 = vector.load %arg4[%211, %c0_82, %c0_83] : memref<4x8x256xf32, #tpu.memory_space<vmem>>, vector<1x8x256xf32>
    %213 = vector.shape_cast %212 : vector<1x8x256xf32> to vector<8x256xf32>
    %214 = vector.shape_cast %210 : vector<8x256xf32> to vector<1x8x256xf32>
    tpu.vector_store %arg4[%211, %c0_82, %c0_83], %214 {strides = array<i32>} : memref<4x8x256xf32, #tpu.memory_space<vmem>>, vector<1x8x256xf32>,
    %c4_i32_84 = arith.constant 4 : i32
    return
  }
  func.func @transform_0(%arg0: i32) -> (i32, i32, i32) {
    %c0_i32 = arith.constant 0 : i32
    %c0_i32_0 = arith.constant 0 : i32
    %c0_i32_1 = arith.constant 0 : i32
    return %arg0, %c0_i32, %c0_i32_0 : i32, i32, i32
  }
  func.func @transform_1(%arg0: i32) -> (i32, i32) {
    %c0_i32 = arith.constant 0 : i32
    %c0_i32_0 = arith.constant 0 : i32
    %c0_i32_1 = arith.constant 0 : i32
    return %c0_i32, %c0_i32_0 : i32, i32
  }
  func.func @transform_3(%arg0: i32) -> (i32, i32, i32) {
    %c0_i32 = arith.constant 0 : i32
    %c0_i32_0 = arith.constant 0 : i32
    %c0_i32_1 = arith.constant 0 : i32
    return %arg0, %c0_i32, %c0_i32_0 : i32, i32, i32
  }
}

</mosaic_0001>

<bundles_post_ra>
// kernel: rnnbase_forward.1
= control target key start
LH: loop header
LB: loop body
LE: loop exit
PB: predicated region body
PF: predicated region fallthrough
CT: control target
= control target key end

     0   :  { %s3069_s12 = smov 0   ;;  %s5048_s0 = inlined_call_operand.vmem [shape: f32[8,8,1024], index: 0, kind: input, shape index: {}]   ;;  %s5049_s1 = inlined_call_operand.vmem [shape: s32[8,1], index: 1, kind: input, shape index: {}]   ;;  %s5050_s2 = inlined_call_operand.vmem [shape: bf16[256,1024], index: 2, kind: input, shape index: {}]   ;;  %s5051_s3 = inlined_call_operand.vmem [shape: f32[8,8,256], index: 3, kind: output, shape index: {}]  }
   0x1 LB: > { %s2826_s13 = sadd.s32 4294967295, %s3045_s12   ;;  %p2830_p0 = scmp.ge.s32.totalorder %s3045_s12, 1  ;;  %s3045_s12 = sphi %s3069_s12, %s13_s12  }
   0x2   : > { %p115_p1 = scmp.lt.s32.totalorder %s3045_s12, 3 }
   0x4   : > { %p116_p2 = pnand %p2830_p0, %p115_p1 }
   0x6   : > { %119 = sbr.rel (%p116_p2) target bundleno = 1498 (0x5da), region = 28 }
   0xd   : > { %s3077_s14 = sshll.u32 %s2826_s13, 2  ;;  %p2837_p4 = scmp.ne.s32.totalorder %s2826_s13, 0 }
   0xe   : > { %p140_p3 = scmp.lt.s32.totalorder %s3077_s14, 7  ;;  %v174_v0 = vld [vmem:[%s5050_s2] sm:$0xf] (!%p2837_p4)  ;;  %v178_v2 = vld [vmem:[%s5050_s2 + $0x4] sm:$0xf] (!%p2837_p4) }
   0xf   : > { %156 = sbr.rel (%p2837_p4) target bundleno = 178 (0xb2), region = 32  ;;  %v176_v1 = vld [vmem:[%s5050_s2 + $0x20] sm:$0xf] (!%p2837_p4)  ;;  %175 = vst [vmem:[#allocation2] sm:$0xf] (!%p2837_p4), %v174_v0 }
  0x10   : > { %s141_s15 = scalar_select %p140_p3, %s3077_s14, 7 }
  0x11   : > { %177 = vst [vmem:[#allocation2 + $0x4] sm:$0xf] (!%p2837_p4), %v176_v1  ;;  %179 = vst [vmem:[#allocation2 + $0x8] sm:$0xf] (!%p2837_p4), %v178_v2  ;;  %v180_v3 = vld [vmem:[%s5050_s2 + $0x24] sm:$0xf] (!%p2837_p4) }
  0x12   : > { %s2896_s16 = sshll.u32 %s141_s15, 6  ;;  %s2897_s17 = sshll.u32 %s141_s15, 4  ;;  %v182_v4 = vld [vmem:[%s5050_s2 + $0x8] sm:$0xf] (!%p2837_p4)  ;;  %181 = vst [vmem:[#allocation2 + $0xc] sm:$0xf] (!%p2837_p4), %v180_v3 }
  0x13   : > { %s3084_s20 = scalar_lea.vmem %s5048_s0, %s2896_s16  ;;  %s3089_s23 = scalar_lea.vmem %s5051_s3, %s2897_s17  ;;  %v184_v5 = vld [vmem:[%s5050_s2 + $0x28] sm:$0xf] (!%p2837_p4)  ;;  %183 = vst [vmem:[#allocation2 + $0x10] sm:$0xf] (!%p2837_p4), %v182_v4  ;;  %v186_v6 = vld [vmem:[%s5050_s2 + $0xc] sm:$0xf] (!%p2837_p4) }
  0x14   : > { %185 = vst [vmem:[#allocation2 + $0x14] sm:$0xf] (!%p2837_p4), %v184_v5  ;;  %v188_v7 = vld [vmem:[%s5050_s2 + $0x2c] sm:$0xf] (!%p2837_p4)  ;;  %v190_v8 = vld [vmem:[%s5050_s2 + $0x10] sm:$0xf] (!%p2837_p4) }
  0x15   : > { %187 = vst [vmem:[#allocation2 + $0x18] sm:$0xf] (!%p2837_p4), %v186_v6  ;;  %189 = vst [vmem:[#allocation2 + $0x1c] sm:$0xf] (!%p2837_p4), %v188_v7  ;;  %v192_v9 = vld [vmem:[%s5050_s2 + $0x30] sm:$0xf] (!%p2837_p4) }
  0x16   : > { %191 = vst [vmem:[#allocation2 + $0x20] sm:$0xf] %v190_v8  ;;  %v194_v10 = vld [vmem:[%s5050_s2 + $0x14] sm:$0xf]  ;;  %193 = vst [vmem:[#allocation2 + $0x24] sm:$0xf] %v192_v9 }
  0x17   : > { %v196_v11 = vld [vmem:[%s5050_s2 + $0x34] sm:$0xf]  ;;  %195 = vst [vmem:[#allocation2 + $0x28] sm:$0xf] %v194_v10  ;;  %v198_v12 = vld [vmem:[%s5050_s2 + $0x18] sm:$0xf] }
  0x18   : > { %197 = vst [vmem:[#allocation2 + $0x2c] sm:$0xf] %v196_v11  ;;  %v200_v13 = vld [vmem:[%s5050_s2 + $0x38] sm:$0xf]  ;;  %v202_v14 = vld [vmem:[%s5050_s2 + $0x1c] sm:$0xf] }
  0x19   : > { %199 = vst [vmem:[#allocation2 + $0x30] sm:$0xf] %v198_v12  ;;  %201 = vst [vmem:[#allocation2 + $0x34] sm:$0xf] %v200_v13  ;;  %v204_v15 = vld [vmem:[%s5050_s2 + $0x3c] sm:$0xff]  }
  0x1a   : > { %203 = vst [vmem:[#allocation2 + $0x38] sm:$0xf] %v202_v14  ;;  %v208_v16 = vld [vmem:[%s5050_s2 + $0x60] sm:$0xf]  ;;  %v210_v17 = vld [vmem:[%s5050_s2 + $0x44] sm:$0xf] }
  0x1b   : > { %205 = vst [vmem:[#allocation2 + $0x3c] sm:$0xff] %v204_v15   ;;  %209 = vst [vmem:[#allocation2 + $0x44] sm:$0xf] %v208_v16  ;;  %v212_v18 = vld [vmem:[%s5050_s2 + $0x64] sm:$0xf]  ;;  %v236_v30 = vld [vmem:[%s5050_s2 + $0x7c] sm:$0xff]  }
  0x1c   : > { %211 = vst [vmem:[#allocation2 + $0x48] sm:$0xf] %v210_v17  ;;  %v214_v19 = vld [vmem:[%s5050_s2 + $0x48] sm:$0xf]  ;;  %213 = vst [vmem:[#allocation2 + $0x4c] sm:$0xf] %v212_v18 }
  0x1d   : > { %v216_v20 = vld [vmem:[%s5050_s2 + $0x68] sm:$0xf]  ;;  %215 = vst [vmem:[#allocation2 + $0x50] sm:$0xf] %v214_v19  ;;  %v218_v21 = vld [vmem:[%s5050_s2 + $0x4c] sm:$0xf] }
  0x1e   : > { %217 = vst [vmem:[#allocation2 + $0x54] sm:$0xf] %v216_v20  ;;  %v220_v22 = vld [vmem:[%s5050_s2 + $0x6c] sm:$0xf]  ;;  %v222_v23 = vld [vmem:[%s5050_s2 + $0x50] sm:$0xf] }
  0x1f   : > { %219 = vst [vmem:[#allocation2 + $0x58] sm:$0xf] %v218_v21  ;;  %221 = vst [vmem:[#allocation2 + $0x5c] sm:$0xf] %v220_v22  ;;  %v224_v24 = vld [vmem:[%s5050_s2 + $0x70] sm:$0xf] }
  0x20   : > { %223 = vst [vmem:[#allocation2 + $0x60] sm:$0xf] %v222_v23  ;;  %v226_v25 = vld [vmem:[%s5050_s2 + $0x54] sm:$0xf]  ;;  %225 = vst [vmem:[#allocation2 + $0x64] sm:$0xf] %v224_v24 }
  0x21   : > { %v228_v26 = vld [vmem:[%s5050_s2 + $0x74] sm:$0xf]  ;;  %227 = vst [vmem:[#allocation2 + $0x68] sm:$0xf] %v226_v25  ;;  %v230_v27 = vld [vmem:[%s5050_s2 + $0x58] sm:$0xf] }
  0x22   : > { %229 = vst [vmem:[#allocation2 + $0x6c] sm:$0xf] %v228_v26  ;;  %v232_v28 = vld [vmem:[%s5050_s2 + $0x78] sm:$0xf]  ;;  %v234_v29 = vld [vmem:[%s5050_s2 + $0x5c] sm:$0xf] }
  0x23   : > { %231 = vst [vmem:[#allocation2 + $0x70] sm:$0xf] %v230_v27  ;;  %233 = vst [vmem:[#allocation2 + $0x74] sm:$0xf] %v232_v28  ;;  %v240_v31 = vld [vmem:[%s5050_s2 + $0xa0] sm:$0xf] }
  0x24   : > { %235 = vst [vmem:[#allocation2 + $0x78] sm:$0xf] %v234_v29  ;;  %v242_v32 = vld [vmem:[%s5050_s2 + $0x84] sm:$0xf]  ;;  %237 = vst [vmem:[#allocation2 + $0x7c] sm:$0xff] %v236_v30   ;;  %v268_v45 = vld [vmem:[%s5050_s2 + $0xbc] sm:$0xff]  }
  0x25   : > { %241 = vst [vmem:[#allocation2 + $0x84] sm:$0xf] %v240_v31  ;;  %243 = vst [vmem:[#allocation2 + $0x88] sm:$0xf] %v242_v32  ;;  %v244_v33 = vld [vmem:[%s5050_s2 + $0xa4] sm:$0xf] }
  0x26   : > { %v246_v34 = vld [vmem:[%s5050_s2 + $0x88] sm:$0xf]  ;;  %245 = vst [vmem:[#allocation2 + $0x8c] sm:$0xf] %v244_v33  ;;  %v250_v36 = vld [vmem:[%s5050_s2 + $0x8c] sm:$0xf] }
  0x27   : > { %v248_v35 = vld [vmem:[%s5050_s2 + $0xa8] sm:$0xf]  ;;  %247 = vst [vmem:[#allocation2 + $0x90] sm:$0xf] %v246_v34  ;;  %v252_v37 = vld [vmem:[%s5050_s2 + $0xac] sm:$0xf] }
  0x28   : > { %249 = vst [vmem:[#allocation2 + $0x94] sm:$0xf] %v248_v35  ;;  %v254_v38 = vld [vmem:[%s5050_s2 + $0x90] sm:$0xf]  ;;  %251 = vst [vmem:[#allocation2 + $0x98] sm:$0xf] %v250_v36 }
  0x29   : > { %253 = vst [vmem:[#allocation2 + $0x9c] sm:$0xf] %v252_v37  ;;  %255 = vst [vmem:[#allocation2 + $0xa0] sm:$0xf] %v254_v38  ;;  %v256_v39 = vld [vmem:[%s5050_s2 + $0xb0] sm:$0xf] }
  0x2a   : > { %v258_v40 = vld [vmem:[%s5050_s2 + $0x94] sm:$0xf]  ;;  %257 = vst [vmem:[#allocation2 + $0xa4] sm:$0xf] %v256_v39  ;;  %v262_v42 = vld [vmem:[%s5050_s2 + $0x98] sm:$0xf] }
  0x2b   : > { %v260_v41 = vld [vmem:[%s5050_s2 + $0xb4] sm:$0xf]  ;;  %259 = vst [vmem:[#allocation2 + $0xa8] sm:$0xf] %v258_v40  ;;  %v264_v43 = vld [vmem:[%s5050_s2 + $0xb8] sm:$0xf] }
  0x2c   : > { %261 = vst [vmem:[#allocation2 + $0xac] sm:$0xf] %v260_v41  ;;  %v266_v44 = vld [vmem:[%s5050_s2 + $0x9c] sm:$0xf]  ;;  %263 = vst [vmem:[#allocation2 + $0xb0] sm:$0xf] %v262_v42 }
  0x2d   : > { %265 = vst [vmem:[#allocation2 + $0xb4] sm:$0xf] %v264_v43  ;;  %267 = vst [vmem:[#allocation2 + $0xb8] sm:$0xf] %v266_v44  ;;  %v272_v46 = vld [vmem:[%s5050_s2 + $0xe0] sm:$0xf] }
  0x2e   : > { %v274_v47 = vld [vmem:[%s5050_s2 + $0xc4] sm:$0xf]  ;;  %269 = vst [vmem:[#allocation2 + $0xbc] sm:$0xff] %v268_v45   ;;  %273 = vst [vmem:[#allocation2 + $0xc4] sm:$0xf] %v272_v46  ;;  %v300_v60 = vld [vmem:[%s5050_s2 + $0xfc] sm:$0xff]  }
  0x2f   : > { %275 = vst [vmem:[#allocation2 + $0xc8] sm:$0xf] %v274_v47  ;;  %v276_v48 = vld [vmem:[%s5050_s2 + $0xe4] sm:$0xf]  ;;  %v278_v49 = vld [vmem:[%s5050_s2 + $0xc8] sm:$0xf] }
  0x30   : > { %v280_v50 = vld [vmem:[%s5050_s2 + $0xe8] sm:$0xf]  ;;  %277 = vst [vmem:[#allocation2 + $0xcc] sm:$0xf] %v276_v48  ;;  %279 = vst [vmem:[#allocation2 + $0xd0] sm:$0xf] %v278_v49 }
  0x31   : > { %281 = vst [vmem:[#allocation2 + $0xd4] sm:$0xf] %v280_v50  ;;  %v282_v51 = vld [vmem:[%s5050_s2 + $0xcc] sm:$0xf]  ;;  %v286_v53 = vld [vmem:[%s5050_s2 + $0xd0] sm:$0xf] }
  0x32   : > { %v284_v52 = vld [vmem:[%s5050_s2 + $0xec] sm:$0xf]  ;;  %283 = vst [vmem:[#allocation2 + $0xd8] sm:$0xf] %v282_v51  ;;  %287 = vst [vmem:[#allocation2 + $0xe0] sm:$0xf] %v286_v53 }
  0x33   : > { %285 = vst [vmem:[#allocation2 + $0xdc] sm:$0xf] %v284_v52  ;;  %v288_v54 = vld [vmem:[%s5050_s2 + $0xf0] sm:$0xf]  ;;  %v290_v55 = vld [vmem:[%s5050_s2 + $0xd4] sm:$0xf] }
  0x34   : > { %v292_v56 = vld [vmem:[%s5050_s2 + $0xf4] sm:$0xf]  ;;  %289 = vst [vmem:[#allocation2 + $0xe4] sm:$0xf] %v288_v54  ;;  %291 = vst [vmem:[#allocation2 + $0xe8] sm:$0xf] %v290_v55 }
  0x35   : > { %293 = vst [vmem:[#allocation2 + $0xec] sm:$0xf] %v292_v56  ;;  %v294_v57 = vld [vmem:[%s5050_s2 + $0xd8] sm:$0xf]  ;;  %v298_v59 = vld [vmem:[%s5050_s2 + $0xdc] sm:$0xf] }
  0x36   : > { %v296_v58 = vld [vmem:[%s5050_s2 + $0xf8] sm:$0xf]  ;;  %295 = vst [vmem:[#allocation2 + $0xf0] sm:$0xf] %v294_v57  ;;  %299 = vst [vmem:[#allocation2 + $0xf8] sm:$0xf] %v298_v59 }
  0x37   : > { %297 = vst [vmem:[#allocation2 + $0xf4] sm:$0xf] %v296_v58  ;;  %v304_v61 = vld [vmem:[%s5050_s2 + $0x120] sm:$0xf]  ;;  %v306_v62 = vld [vmem:[%s5050_s2 + $0x104] sm:$0xf] }
  0x38   : > { %301 = vst [vmem:[#allocation2 + $0xfc] sm:$0xff] %v300_v60   ;;  %305 = vst [vmem:[#allocation2 + $0x104] sm:$0xf] %v304_v61  ;;  %v308_v63 = vld [vmem:[%s5050_s2 + $0x124] sm:$0xf]  ;;  %v332_v11 = vld [vmem:[%s5050_s2 + $0x13c] sm:$0xff]  }
  0x39   : > { %307 = vst [vmem:[#allocation2 + $0x108] sm:$0xf] %v306_v62  ;;  %v310_v0 = vld [vmem:[%s5050_s2 + $0x108] sm:$0xf]  ;;  %309 = vst [vmem:[#allocation2 + $0x10c] sm:$0xf] %v308_v63 }
  0x3a   : > { %v312_v1 = vld [vmem:[%s5050_s2 + $0x128] sm:$0xf]  ;;  %311 = vst [vmem:[#allocation2 + $0x110] sm:$0xf] %v310_v0  ;;  %v314_v2 = vld [vmem:[%s5050_s2 + $0x10c] sm:$0xf] }
  0x3b   : > { %313 = vst [vmem:[#allocation2 + $0x114] sm:$0xf] %v312_v1  ;;  %v316_v3 = vld [vmem:[%s5050_s2 + $0x12c] sm:$0xf]  ;;  %v318_v4 = vld [vmem:[%s5050_s2 + $0x110] sm:$0xf] }
  0x3c   : > { %315 = vst [vmem:[#allocation2 + $0x118] sm:$0xf] %v314_v2  ;;  %317 = vst [vmem:[#allocation2 + $0x11c] sm:$0xf] %v316_v3  ;;  %v320_v5 = vld [vmem:[%s5050_s2 + $0x130] sm:$0xf] }
  0x3d   : > { %319 = vst [vmem:[#allocation2 + $0x120] sm:$0xf] %v318_v4  ;;  %v322_v6 = vld [vmem:[%s5050_s2 + $0x114] sm:$0xf]  ;;  %321 = vst [vmem:[#allocation2 + $0x124] sm:$0xf] %v320_v5 }
  0x3e   : > { %v324_v7 = vld [vmem:[%s5050_s2 + $0x134] sm:$0xf]  ;;  %323 = vst [vmem:[#allocation2 + $0x128] sm:$0xf] %v322_v6  ;;  %v326_v8 = vld [vmem:[%s5050_s2 + $0x118] sm:$0xf] }
  0x3f   : > { %325 = vst [vmem:[#allocation2 + $0x12c] sm:$0xf] %v324_v7  ;;  %v328_v9 = vld [vmem:[%s5050_s2 + $0x138] sm:$0xf]  ;;  %v330_v10 = vld [vmem:[%s5050_s2 + $0x11c] sm:$0xf] }
  0x40   : > { %327 = vst [vmem:[#allocation2 + $0x130] sm:$0xf] %v326_v8  ;;  %329 = vst [vmem:[#allocation2 + $0x134] sm:$0xf] %v328_v9  ;;  %v336_v12 = vld [vmem:[%s5050_s2 + $0x160] sm:$0xf] }
  0x41   : > { %331 = vst [vmem:[#allocation2 + $0x138] sm:$0xf] %v330_v10  ;;  %v338_v13 = vld [vmem:[%s5050_s2 + $0x144] sm:$0xf]  ;;  %333 = vst [vmem:[#allocation2 + $0x13c] sm:$0xff] %v332_v11   ;;  %v364_v26 = vld [vmem:[%s5050_s2 + $0x17c] sm:$0xff]  }
  0x42   : > { %337 = vst [vmem:[#allocation2 + $0x144] sm:$0xf] %v336_v12  ;;  %339 = vst [vmem:[#allocation2 + $0x148] sm:$0xf] %v338_v13  ;;  %v340_v14 = vld [vmem:[%s5050_s2 + $0x164] sm:$0xf] }
  0x43   : > { %v342_v15 = vld [vmem:[%s5050_s2 + $0x148] sm:$0xf]  ;;  %341 = vst [vmem:[#allocation2 + $0x14c] sm:$0xf] %v340_v14  ;;  %v346_v17 = vld [vmem:[%s5050_s2 + $0x14c] sm:$0xf] }
  0x44   : > { %v344_v16 = vld [vmem:[%s5050_s2 + $0x168] sm:$0xf]  ;;  %343 = vst [vmem:[#allocation2 + $0x150] sm:$0xf] %v342_v15  ;;  %v348_v18 = vld [vmem:[%s5050_s2 + $0x16c] sm:$0xf] }
  0x45   : > { %345 = vst [vmem:[#allocation2 + $0x154] sm:$0xf] %v344_v16  ;;  %v350_v19 = vld [vmem:[%s5050_s2 + $0x150] sm:$0xf]  ;;  %347 = vst [vmem:[#allocation2 + $0x158] sm:$0xf] %v346_v17 }
  0x46   : > { %349 = vst [vmem:[#allocation2 + $0x15c] sm:$0xf] %v348_v18  ;;  %351 = vst [vmem:[#allocation2 + $0x160] sm:$0xf] %v350_v19  ;;  %v352_v20 = vld [vmem:[%s5050_s2 + $0x170] sm:$0xf] }
  0x47   : > { %v354_v21 = vld [vmem:[%s5050_s2 + $0x154] sm:$0xf]  ;;  %353 = vst [vmem:[#allocation2 + $0x164] sm:$0xf] %v352_v20  ;;  %v358_v23 = vld [vmem:[%s5050_s2 + $0x158] sm:$0xf] }
  0x48   : > { %v356_v22 = vld [vmem:[%s5050_s2 + $0x174] sm:$0xf]  ;;  %355 = vst [vmem:[#allocation2 + $0x168] sm:$0xf] %v354_v21  ;;  %v360_v24 = vld [vmem:[%s5050_s2 + $0x178] sm:$0xf] }
  0x49   : > { %357 = vst [vmem:[#allocation2 + $0x16c] sm:$0xf] %v356_v22  ;;  %v362_v25 = vld [vmem:[%s5050_s2 + $0x15c] sm:$0xf]  ;;  %359 = vst [vmem:[#allocation2 + $0x170] sm:$0xf] %v358_v23 }
  0x4a   : > { %361 = vst [vmem:[#allocation2 + $0x174] sm:$0xf] %v360_v24  ;;  %363 = vst [vmem:[#allocation2 + $0x178] sm:$0xf] %v362_v25  ;;  %v368_v27 = vld [vmem:[%s5050_s2 + $0x1a0] sm:$0xf] }
  0x4b   : > { %v370_v28 = vld [vmem:[%s5050_s2 + $0x184] sm:$0xf]  ;;  %365 = vst [vmem:[#allocation2 + $0x17c] sm:$0xff] %v364_v26   ;;  %369 = vst [vmem:[#allocation2 + $0x184] sm:$0xf] %v368_v27  ;;  %v396_v41 = vld [vmem:[%s5050_s2 + $0x1bc] sm:$0xff]  }
  0x4c   : > { %371 = vst [vmem:[#allocation2 + $0x188] sm:$0xf] %v370_v28  ;;  %v372_v29 = vld [vmem:[%s5050_s2 + $0x1a4] sm:$0xf]  ;;  %v374_v30 = vld [vmem:[%s5050_s2 + $0x188] sm:$0xf] }
  0x4d   : > { %v376_v31 = vld [vmem:[%s5050_s2 + $0x1a8] sm:$0xf]  ;;  %373 = vst [vmem:[#allocation2 + $0x18c] sm:$0xf] %v372_v29  ;;  %375 = vst [vmem:[#allocation2 + $0x190] sm:$0xf] %v374_v30 }
  0x4e   : > { %377 = vst [vmem:[#allocation2 + $0x194] sm:$0xf] %v376_v31  ;;  %v378_v32 = vld [vmem:[%s5050_s2 + $0x18c] sm:$0xf]  ;;  %v382_v34 = vld [vmem:[%s5050_s2 + $0x190] sm:$0xf] }
  0x4f   : > { %v380_v33 = vld [vmem:[%s5050_s2 + $0x1ac] sm:$0xf]  ;;  %379 = vst [vmem:[#allocation2 + $0x198] sm:$0xf] %v378_v32  ;;  %383 = vst [vmem:[#allocation2 + $0x1a0] sm:$0xf] %v382_v34 }
  0x50   : > { %381 = vst [vmem:[#allocation2 + $0x19c] sm:$0xf] %v380_v33  ;;  %v384_v35 = vld [vmem:[%s5050_s2 + $0x1b0] sm:$0xf]  ;;  %v386_v36 = vld [vmem:[%s5050_s2 + $0x194] sm:$0xf] }
  0x51   : > { %v388_v37 = vld [vmem:[%s5050_s2 + $0x1b4] sm:$0xf]  ;;  %385 = vst [vmem:[#allocation2 + $0x1a4] sm:$0xf] %v384_v35  ;;  %387 = vst [vmem:[#allocation2 + $0x1a8] sm:$0xf] %v386_v36 }
  0x52   : > { %389 = vst [vmem:[#allocation2 + $0x1ac] sm:$0xf] %v388_v37  ;;  %v390_v38 = vld [vmem:[%s5050_s2 + $0x198] sm:$0xf]  ;;  %v394_v40 = vld [vmem:[%s5050_s2 + $0x19c] sm:$0xf] }
  0x53   : > { %v392_v39 = vld [vmem:[%s5050_s2 + $0x1b8] sm:$0xf]  ;;  %391 = vst [vmem:[#allocation2 + $0x1b0] sm:$0xf] %v390_v38  ;;  %395 = vst [vmem:[#allocation2 + $0x1b8] sm:$0xf] %v394_v40 }
  0x54   : > { %393 = vst [vmem:[#allocation2 + $0x1b4] sm:$0xf] %v392_v39  ;;  %v400_v42 = vld [vmem:[%s5050_s2 + $0x1e0] sm:$0xf]  ;;  %v402_v43 = vld [vmem:[%s5050_s2 + $0x1c4] sm:$0xf] }
  0x55   : > { %397 = vst [vmem:[#allocation2 + $0x1bc] sm:$0xff] %v396_v41   ;;  %401 = vst [vmem:[#allocation2 + $0x1c4] sm:$0xf] %v400_v42  ;;  %v404_v44 = vld [vmem:[%s5050_s2 + $0x1e4] sm:$0xf]  ;;  %v428_v56 = vld [vmem:[%s5050_s2 + $0x1fc] sm:$0xff]  }
  0x56   : > { %403 = vst [vmem:[#allocation2 + $0x1c8] sm:$0xf] %v402_v43  ;;  %v406_v45 = vld [vmem:[%s5050_s2 + $0x1c8] sm:$0xf]  ;;  %405 = vst [vmem:[#allocation2 + $0x1cc] sm:$0xf] %v404_v44 }
  0x57   : > { %v408_v46 = vld [vmem:[%s5050_s2 + $0x1e8] sm:$0xf]  ;;  %407 = vst [vmem:[#allocation2 + $0x1d0] sm:$0xf] %v406_v45  ;;  %v410_v47 = vld [vmem:[%s5050_s2 + $0x1cc] sm:$0xf] }
  0x58   : > { %409 = vst [vmem:[#allocation2 + $0x1d4] sm:$0xf] %v408_v46  ;;  %v412_v48 = vld [vmem:[%s5050_s2 + $0x1ec] sm:$0xf]  ;;  %v414_v49 = vld [vmem:[%s5050_s2 + $0x1d0] sm:$0xf] }
  0x59   : > { %411 = vst [vmem:[#allocation2 + $0x1d8] sm:$0xf] %v410_v47  ;;  %413 = vst [vmem:[#allocation2 + $0x1dc] sm:$0xf] %v412_v48  ;;  %v416_v50 = vld [vmem:[%s5050_s2 + $0x1f0] sm:$0xf] }
  0x5a   : > { %415 = vst [vmem:[#allocation2 + $0x1e0] sm:$0xf] %v414_v49  ;;  %v418_v51 = vld [vmem:[%s5050_s2 + $0x1d4] sm:$0xf]  ;;  %417 = vst [vmem:[#allocation2 + $0x1e4] sm:$0xf] %v416_v50 }
  0x5b   : > { %v420_v52 = vld [vmem:[%s5050_s2 + $0x1f4] sm:$0xf]  ;;  %419 = vst [vmem:[#allocation2 + $0x1e8] sm:$0xf] %v418_v51  ;;  %v422_v53 = vld [vmem:[%s5050_s2 + $0x1d8] sm:$0xf] }
  0x5c   : > { %421 = vst [vmem:[#allocation2 + $0x1ec] sm:$0xf] %v420_v52  ;;  %v424_v54 = vld [vmem:[%s5050_s2 + $0x1f8] sm:$0xf]  ;;  %v426_v55 = vld [vmem:[%s5050_s2 + $0x1dc] sm:$0xf] }
  0x5d   : > { %423 = vst [vmem:[#allocation2 + $0x1f0] sm:$0xf] %v422_v53  ;;  %425 = vst [vmem:[#allocation2 + $0x1f4] sm:$0xf] %v424_v54  ;;  %v432_v57 = vld [vmem:[%s5050_s2 + $0x220] sm:$0xf] }
  0x5e   : > { %427 = vst [vmem:[#allocation2 + $0x1f8] sm:$0xf] %v426_v55  ;;  %v434_v58 = vld [vmem:[%s5050_s2 + $0x204] sm:$0xf]  ;;  %429 = vst [vmem:[#allocation2 + $0x1fc] sm:$0xff] %v428_v56   ;;  %v460_v7 = vld [vmem:[%s5050_s2 + $0x23c] sm:$0xff]  }
  0x5f   : > { %433 = vst [vmem:[#allocation2 + $0x204] sm:$0xf] %v432_v57  ;;  %435 = vst [vmem:[#allocation2 + $0x208] sm:$0xf] %v434_v58  ;;  %v436_v59 = vld [vmem:[%s5050_s2 + $0x224] sm:$0xf] }
  0x60   : > { %v438_v60 = vld [vmem:[%s5050_s2 + $0x208] sm:$0xf]  ;;  %437 = vst [vmem:[#allocation2 + $0x20c] sm:$0xf] %v436_v59  ;;  %v442_v62 = vld [vmem:[%s5050_s2 + $0x20c] sm:$0xf] }
  0x61   : > { %v440_v61 = vld [vmem:[%s5050_s2 + $0x228] sm:$0xf]  ;;  %439 = vst [vmem:[#allocation2 + $0x210] sm:$0xf] %v438_v60  ;;  %v444_v63 = vld [vmem:[%s5050_s2 + $0x22c] sm:$0xf] }
  0x62   : > { %441 = vst [vmem:[#allocation2 + $0x214] sm:$0xf] %v440_v61  ;;  %v446_v0 = vld [vmem:[%s5050_s2 + $0x210] sm:$0xf]  ;;  %443 = vst [vmem:[#allocation2 + $0x218] sm:$0xf] %v442_v62 }
  0x63   : > { %445 = vst [vmem:[#allocation2 + $0x21c] sm:$0xf] %v444_v63  ;;  %447 = vst [vmem:[#allocation2 + $0x220] sm:$0xf] %v446_v0  ;;  %v448_v1 = vld [vmem:[%s5050_s2 + $0x230] sm:$0xf] }
  0x64   : > { %v450_v2 = vld [vmem:[%s5050_s2 + $0x214] sm:$0xf]  ;;  %449 = vst [vmem:[#allocation2 + $0x224] sm:$0xf] %v448_v1  ;;  %v454_v4 = vld [vmem:[%s5050_s2 + $0x218] sm:$0xf] }
  0x65   : > { %v452_v3 = vld [vmem:[%s5050_s2 + $0x234] sm:$0xf]  ;;  %451 = vst [vmem:[#allocation2 + $0x228] sm:$0xf] %v450_v2  ;;  %v456_v5 = vld [vmem:[%s5050_s2 + $0x238] sm:$0xf] }
  0x66   : > { %453 = vst [vmem:[#allocation2 + $0x22c] sm:$0xf] %v452_v3  ;;  %v458_v6 = vld [vmem:[%s5050_s2 + $0x21c] sm:$0xf]  ;;  %455 = vst [vmem:[#allocation2 + $0x230] sm:$0xf] %v454_v4 }
  0x67   : > { %457 = vst [vmem:[#allocation2 + $0x234] sm:$0xf] %v456_v5  ;;  %459 = vst [vmem:[#allocation2 + $0x238] sm:$0xf] %v458_v6  ;;  %v464_v8 = vld [vmem:[%s5050_s2 + $0x260] sm:$0xf] }
  0x68   : > { %v466_v9 = vld [vmem:[%s5050_s2 + $0x244] sm:$0xf]  ;;  %461 = vst [vmem:[#allocation2 + $0x23c] sm:$0xff] %v460_v7   ;;  %465 = vst [vmem:[#allocation2 + $0x244] sm:$0xf] %v464_v8  ;;  %v492_v22 = vld [vmem:[%s5050_s2 + $0x27c] sm:$0xff]  }
  0x69   : > { %467 = vst [vmem:[#allocation2 + $0x248] sm:$0xf] %v466_v9  ;;  %v468_v10 = vld [vmem:[%s5050_s2 + $0x264] sm:$0xf]  ;;  %v470_v11 = vld [vmem:[%s5050_s2 + $0x248] sm:$0xf] }
  0x6a   : > { %v472_v12 = vld [vmem:[%s5050_s2 + $0x268] sm:$0xf]  ;;  %469 = vst [vmem:[#allocation2 + $0x24c] sm:$0xf] %v468_v10  ;;  %471 = vst [vmem:[#allocation2 + $0x250] sm:$0xf] %v470_v11 }
  0x6b   : > { %473 = vst [vmem:[#allocation2 + $0x254] sm:$0xf] %v472_v12  ;;  %v474_v13 = vld [vmem:[%s5050_s2 + $0x24c] sm:$0xf]  ;;  %v478_v15 = vld [vmem:[%s5050_s2 + $0x250] sm:$0xf] }
  0x6c   : > { %v476_v14 = vld [vmem:[%s5050_s2 + $0x26c] sm:$0xf]  ;;  %475 = vst [vmem:[#allocation2 + $0x258] sm:$0xf] %v474_v13  ;;  %479 = vst [vmem:[#allocation2 + $0x260] sm:$0xf] %v478_v15 }
  0x6d   : > { %477 = vst [vmem:[#allocation2 + $0x25c] sm:$0xf] %v476_v14  ;;  %v480_v16 = vld [vmem:[%s5050_s2 + $0x270] sm:$0xf]  ;;  %v482_v17 = vld [vmem:[%s5050_s2 + $0x254] sm:$0xf] }
  0x6e   : > { %v484_v18 = vld [vmem:[%s5050_s2 + $0x274] sm:$0xf]  ;;  %481 = vst [vmem:[#allocation2 + $0x264] sm:$0xf] %v480_v16  ;;  %483 = vst [vmem:[#allocation2 + $0x268] sm:$0xf] %v482_v17 }
  0x6f   : > { %485 = vst [vmem:[#allocation2 + $0x26c] sm:$0xf] %v484_v18  ;;  %v486_v19 = vld [vmem:[%s5050_s2 + $0x258] sm:$0xf]  ;;  %v490_v21 = vld [vmem:[%s5050_s2 + $0x25c] sm:$0xf] }
  0x70   : > { %v488_v20 = vld [vmem:[%s5050_s2 + $0x278] sm:$0xf]  ;;  %487 = vst [vmem:[#allocation2 + $0x270] sm:$0xf] %v486_v19  ;;  %491 = vst [vmem:[#allocation2 + $0x278] sm:$0xf] %v490_v21 }
  0x71   : > { %489 = vst [vmem:[#allocation2 + $0x274] sm:$0xf] %v488_v20  ;;  %v496_v23 = vld [vmem:[%s5050_s2 + $0x2a0] sm:$0xf]  ;;  %v498_v24 = vld [vmem:[%s5050_s2 + $0x284] sm:$0xf] }
  0x72   : > { %493 = vst [vmem:[#allocation2 + $0x27c] sm:$0xff] %v492_v22   ;;  %497 = vst [vmem:[#allocation2 + $0x284] sm:$0xf] %v496_v23  ;;  %v500_v25 = vld [vmem:[%s5050_s2 + $0x2a4] sm:$0xf]  ;;  %v524_v37 = vld [vmem:[%s5050_s2 + $0x2bc] sm:$0xff]  }
  0x73   : > { %499 = vst [vmem:[#allocation2 + $0x288] sm:$0xf] %v498_v24  ;;  %v502_v26 = vld [vmem:[%s5050_s2 + $0x288] sm:$0xf]  ;;  %501 = vst [vmem:[#allocation2 + $0x28c] sm:$0xf] %v500_v25 }
  0x74   : > { %v504_v27 = vld [vmem:[%s5050_s2 + $0x2a8] sm:$0xf]  ;;  %503 = vst [vmem:[#allocation2 + $0x290] sm:$0xf] %v502_v26  ;;  %v506_v28 = vld [vmem:[%s5050_s2 + $0x28c] sm:$0xf] }
  0x75   : > { %505 = vst [vmem:[#allocation2 + $0x294] sm:$0xf] %v504_v27  ;;  %v508_v29 = vld [vmem:[%s5050_s2 + $0x2ac] sm:$0xf]  ;;  %v510_v30 = vld [vmem:[%s5050_s2 + $0x290] sm:$0xf] }
  0x76   : > { %507 = vst [vmem:[#allocation2 + $0x298] sm:$0xf] %v506_v28  ;;  %509 = vst [vmem:[#allocation2 + $0x29c] sm:$0xf] %v508_v29  ;;  %v512_v31 = vld [vmem:[%s5050_s2 + $0x2b0] sm:$0xf] }
  0x77   : > { %511 = vst [vmem:[#allocation2 + $0x2a0] sm:$0xf] %v510_v30  ;;  %v514_v32 = vld [vmem:[%s5050_s2 + $0x294] sm:$0xf]  ;;  %513 = vst [vmem:[#allocation2 + $0x2a4] sm:$0xf] %v512_v31 }
  0x78   : > { %v516_v33 = vld [vmem:[%s5050_s2 + $0x2b4] sm:$0xf]  ;;  %515 = vst [vmem:[#allocation2 + $0x2a8] sm:$0xf] %v514_v32  ;;  %v518_v34 = vld [vmem:[%s5050_s2 + $0x298] sm:$0xf] }
  0x79   : > { %517 = vst [vmem:[#allocation2 + $0x2ac] sm:$0xf] %v516_v33  ;;  %v520_v35 = vld [vmem:[%s5050_s2 + $0x2b8] sm:$0xf]  ;;  %v522_v36 = vld [vmem:[%s5050_s2 + $0x29c] sm:$0xf] }
  0x7a   : > { %519 = vst [vmem:[#allocation2 + $0x2b0] sm:$0xf] %v518_v34  ;;  %521 = vst [vmem:[#allocation2 + $0x2b4] sm:$0xf] %v520_v35  ;;  %v528_v38 = vld [vmem:[%s5050_s2 + $0x2e0] sm:$0xf] }
  0x7b   : > { %523 = vst [vmem:[#allocation2 + $0x2b8] sm:$0xf] %v522_v36  ;;  %v530_v39 = vld [vmem:[%s5050_s2 + $0x2c4] sm:$0xf]  ;;  %525 = vst [vmem:[#allocation2 + $0x2bc] sm:$0xff] %v524_v37   ;;  %v556_v52 = vld [vmem:[%s5050_s2 + $0x2fc] sm:$0xff]  }
  0x7c   : > { %529 = vst [vmem:[#allocation2 + $0x2c4] sm:$0xf] %v528_v38  ;;  %531 = vst [vmem:[#allocation2 + $0x2c8] sm:$0xf] %v530_v39  ;;  %v532_v40 = vld [vmem:[%s5050_s2 + $0x2e4] sm:$0xf] }
  0x7d   : > { %v534_v41 = vld [vmem:[%s5050_s2 + $0x2c8] sm:$0xf]  ;;  %533 = vst [vmem:[#allocation2 + $0x2cc] sm:$0xf] %v532_v40  ;;  %v538_v43 = vld [vmem:[%s5050_s2 + $0x2cc] sm:$0xf] }
  0x7e   : > { %v536_v42 = vld [vmem:[%s5050_s2 + $0x2e8] sm:$0xf]  ;;  %535 = vst [vmem:[#allocation2 + $0x2d0] sm:$0xf] %v534_v41  ;;  %v540_v44 = vld [vmem:[%s5050_s2 + $0x2ec] sm:$0xf] }
  0x7f   : > { %537 = vst [vmem:[#allocation2 + $0x2d4] sm:$0xf] %v536_v42  ;;  %v542_v45 = vld [vmem:[%s5050_s2 + $0x2d0] sm:$0xf]  ;;  %539 = vst [vmem:[#allocation2 + $0x2d8] sm:$0xf] %v538_v43 }
  0x80   : > { %541 = vst [vmem:[#allocation2 + $0x2dc] sm:$0xf] %v540_v44  ;;  %543 = vst [vmem:[#allocation2 + $0x2e0] sm:$0xf] %v542_v45  ;;  %v544_v46 = vld [vmem:[%s5050_s2 + $0x2f0] sm:$0xf] }
  0x81   : > { %v546_v47 = vld [vmem:[%s5050_s2 + $0x2d4] sm:$0xf]  ;;  %545 = vst [vmem:[#allocation2 + $0x2e4] sm:$0xf] %v544_v46  ;;  %v550_v49 = vld [vmem:[%s5050_s2 + $0x2d8] sm:$0xf] }
  0x82   : > { %v548_v48 = vld [vmem:[%s5050_s2 + $0x2f4] sm:$0xf]  ;;  %547 = vst [vmem:[#allocation2 + $0x2e8] sm:$0xf] %v546_v47  ;;  %v552_v50 = vld [vmem:[%s5050_s2 + $0x2f8] sm:$0xf] }
  0x83   : > { %549 = vst [vmem:[#allocation2 + $0x2ec] sm:$0xf] %v548_v48  ;;  %v554_v51 = vld [vmem:[%s5050_s2 + $0x2dc] sm:$0xf]  ;;  %551 = vst [vmem:[#allocation2 + $0x2f0] sm:$0xf] %v550_v49 }
  0x84   : > { %553 = vst [vmem:[#allocation2 + $0x2f4] sm:$0xf] %v552_v50  ;;  %555 = vst [vmem:[#allocation2 + $0x2f8] sm:$0xf] %v554_v51  ;;  %v560_v53 = vld [vmem:[%s5050_s2 + $0x320] sm:$0xf] }
  0x85   : > { %v562_v54 = vld [vmem:[%s5050_s2 + $0x304] sm:$0xf]  ;;  %557 = vst [vmem:[#allocation2 + $0x2fc] sm:$0xff] %v556_v52   ;;  %561 = vst [vmem:[#allocation2 + $0x304] sm:$0xf] %v560_v53  ;;  %v588_v3 = vld [vmem:[%s5050_s2 + $0x33c] sm:$0xff]  }
  0x86   : > { %563 = vst [vmem:[#allocation2 + $0x308] sm:$0xf] %v562_v54  ;;  %v564_v55 = vld [vmem:[%s5050_s2 + $0x324] sm:$0xf]  ;;  %v566_v56 = vld [vmem:[%s5050_s2 + $0x308] sm:$0xf] }
  0x87   : > { %v568_v57 = vld [vmem:[%s5050_s2 + $0x328] sm:$0xf]  ;;  %565 = vst [vmem:[#allocation2 + $0x30c] sm:$0xf] %v564_v55  ;;  %567 = vst [vmem:[#allocation2 + $0x310] sm:$0xf] %v566_v56 }
  0x88   : > { %569 = vst [vmem:[#allocation2 + $0x314] sm:$0xf] %v568_v57  ;;  %v570_v58 = vld [vmem:[%s5050_s2 + $0x30c] sm:$0xf]  ;;  %v574_v60 = vld [vmem:[%s5050_s2 + $0x310] sm:$0xf] }
  0x89   : > { %v572_v59 = vld [vmem:[%s5050_s2 + $0x32c] sm:$0xf]  ;;  %571 = vst [vmem:[#allocation2 + $0x318] sm:$0xf] %v570_v58  ;;  %575 = vst [vmem:[#allocation2 + $0x320] sm:$0xf] %v574_v60 }
  0x8a   : > { %573 = vst [vmem:[#allocation2 + $0x31c] sm:$0xf] %v572_v59  ;;  %v576_v61 = vld [vmem:[%s5050_s2 + $0x330] sm:$0xf]  ;;  %v578_v62 = vld [vmem:[%s5050_s2 + $0x314] sm:$0xf] }
  0x8b   : > { %v580_v63 = vld [vmem:[%s5050_s2 + $0x334] sm:$0xf]  ;;  %577 = vst [vmem:[#allocation2 + $0x324] sm:$0xf] %v576_v61  ;;  %579 = vst [vmem:[#allocation2 + $0x328] sm:$0xf] %v578_v62 }
  0x8c   : > { %581 = vst [vmem:[#allocation2 + $0x32c] sm:$0xf] %v580_v63  ;;  %v582_v0 = vld [vmem:[%s5050_s2 + $0x318] sm:$0xf]  ;;  %v586_v2 = vld [vmem:[%s5050_s2 + $0x31c] sm:$0xf] }
  0x8d   : > { %v584_v1 = vld [vmem:[%s5050_s2 + $0x338] sm:$0xf]  ;;  %583 = vst [vmem:[#allocation2 + $0x330] sm:$0xf] %v582_v0  ;;  %587 = vst [vmem:[#allocation2 + $0x338] sm:$0xf] %v586_v2 }
  0x8e   : > { %585 = vst [vmem:[#allocation2 + $0x334] sm:$0xf] %v584_v1  ;;  %v592_v4 = vld [vmem:[%s5050_s2 + $0x360] sm:$0xf]  ;;  %v594_v5 = vld [vmem:[%s5050_s2 + $0x344] sm:$0xf] }
  0x8f   : > { %589 = vst [vmem:[#allocation2 + $0x33c] sm:$0xff] %v588_v3   ;;  %593 = vst [vmem:[#allocation2 + $0x344] sm:$0xf] %v592_v4  ;;  %v596_v6 = vld [vmem:[%s5050_s2 + $0x364] sm:$0xf]  ;;  %v620_v18 = vld [vmem:[%s5050_s2 + $0x37c] sm:$0xff]  }
  0x90   : > { %595 = vst [vmem:[#allocation2 + $0x348] sm:$0xf] %v594_v5  ;;  %v598_v7 = vld [vmem:[%s5050_s2 + $0x348] sm:$0xf]  ;;  %597 = vst [vmem:[#allocation2 + $0x34c] sm:$0xf] %v596_v6 }
  0x91   : > { %v600_v8 = vld [vmem:[%s5050_s2 + $0x368] sm:$0xf]  ;;  %599 = vst [vmem:[#allocation2 + $0x350] sm:$0xf] %v598_v7  ;;  %v602_v9 = vld [vmem:[%s5050_s2 + $0x34c] sm:$0xf] }
  0x92   : > { %601 = vst [vmem:[#allocation2 + $0x354] sm:$0xf] %v600_v8  ;;  %v604_v10 = vld [vmem:[%s5050_s2 + $0x36c] sm:$0xf]  ;;  %v606_v11 = vld [vmem:[%s5050_s2 + $0x350] sm:$0xf] }
  0x93   : > { %603 = vst [vmem:[#allocation2 + $0x358] sm:$0xf] %v602_v9  ;;  %605 = vst [vmem:[#allocation2 + $0x35c] sm:$0xf] %v604_v10  ;;  %v608_v12 = vld [vmem:[%s5050_s2 + $0x370] sm:$0xf] }
  0x94   : > { %607 = vst [vmem:[#allocation2 + $0x360] sm:$0xf] %v606_v11  ;;  %v610_v13 = vld [vmem:[%s5050_s2 + $0x354] sm:$0xf]  ;;  %609 = vst [vmem:[#allocation2 + $0x364] sm:$0xf] %v608_v12 }
  0x95   : > { %v612_v14 = vld [vmem:[%s5050_s2 + $0x374] sm:$0xf]  ;;  %611 = vst [vmem:[#allocation2 + $0x368] sm:$0xf] %v610_v13  ;;  %v614_v15 = vld [vmem:[%s5050_s2 + $0x358] sm:$0xf] }
  0x96   : > { %613 = vst [vmem:[#allocation2 + $0x36c] sm:$0xf] %v612_v14  ;;  %v616_v16 = vld [vmem:[%s5050_s2 + $0x378] sm:$0xf]  ;;  %v618_v17 = vld [vmem:[%s5050_s2 + $0x35c] sm:$0xf] }
  0x97   : > { %615 = vst [vmem:[#allocation2 + $0x370] sm:$0xf] %v614_v15  ;;  %617 = vst [vmem:[#allocation2 + $0x374] sm:$0xf] %v616_v16  ;;  %v624_v19 = vld [vmem:[%s5050_s2 + $0x3a0] sm:$0xf] }
  0x98   : > { %619 = vst [vmem:[#allocation2 + $0x378] sm:$0xf] %v618_v17  ;;  %v626_v20 = vld [vmem:[%s5050_s2 + $0x384] sm:$0xf]  ;;  %621 = vst [vmem:[#allocation2 + $0x37c] sm:$0xff] %v620_v18   ;;  %v652_v33 = vld [vmem:[%s5050_s2 + $0x3bc] sm:$0xff]  }
  0x99   : > { %625 = vst [vmem:[#allocation2 + $0x384] sm:$0xf] %v624_v19  ;;  %627 = vst [vmem:[#allocation2 + $0x388] sm:$0xf] %v626_v20  ;;  %v628_v21 = vld [vmem:[%s5050_s2 + $0x3a4] sm:$0xf] }
  0x9a   : > { %v630_v22 = vld [vmem:[%s5050_s2 + $0x388] sm:$0xf]  ;;  %629 = vst [vmem:[#allocation2 + $0x38c] sm:$0xf] %v628_v21  ;;  %v634_v24 = vld [vmem:[%s5050_s2 + $0x38c] sm:$0xf] }
  0x9b   : > { %v632_v23 = vld [vmem:[%s5050_s2 + $0x3a8] sm:$0xf]  ;;  %631 = vst [vmem:[#allocation2 + $0x390] sm:$0xf] %v630_v22  ;;  %v636_v25 = vld [vmem:[%s5050_s2 + $0x3ac] sm:$0xf] }
  0x9c   : > { %633 = vst [vmem:[#allocation2 + $0x394] sm:$0xf] %v632_v23  ;;  %v638_v26 = vld [vmem:[%s5050_s2 + $0x390] sm:$0xf]  ;;  %635 = vst [vmem:[#allocation2 + $0x398] sm:$0xf] %v634_v24 }
  0x9d   : > { %637 = vst [vmem:[#allocation2 + $0x39c] sm:$0xf] %v636_v25  ;;  %639 = vst [vmem:[#allocation2 + $0x3a0] sm:$0xf] %v638_v26  ;;  %v640_v27 = vld [vmem:[%s5050_s2 + $0x3b0] sm:$0xf] }
  0x9e   : > { %v642_v28 = vld [vmem:[%s5050_s2 + $0x394] sm:$0xf]  ;;  %641 = vst [vmem:[#allocation2 + $0x3a4] sm:$0xf] %v640_v27  ;;  %v646_v30 = vld [vmem:[%s5050_s2 + $0x398] sm:$0xf] }
  0x9f   : > { %v644_v29 = vld [vmem:[%s5050_s2 + $0x3b4] sm:$0xf]  ;;  %643 = vst [vmem:[#allocation2 + $0x3a8] sm:$0xf] %v642_v28  ;;  %v648_v31 = vld [vmem:[%s5050_s2 + $0x3b8] sm:$0xf] }
  0xa0   : > { %645 = vst [vmem:[#allocation2 + $0x3ac] sm:$0xf] %v644_v29  ;;  %v650_v32 = vld [vmem:[%s5050_s2 + $0x39c] sm:$0xf]  ;;  %647 = vst [vmem:[#allocation2 + $0x3b0] sm:$0xf] %v646_v30 }
  0xa1   : > { %649 = vst [vmem:[#allocation2 + $0x3b4] sm:$0xf] %v648_v31  ;;  %651 = vst [vmem:[#allocation2 + $0x3b8] sm:$0xf] %v650_v32  ;;  %v656_v34 = vld [vmem:[%s5050_s2 + $0x3e0] sm:$0xf] }
  0xa2   : > { %v658_v35 = vld [vmem:[%s5050_s2 + $0x3c4] sm:$0xf]  ;;  %653 = vst [vmem:[#allocation2 + $0x3bc] sm:$0xff] %v652_v33   ;;  %657 = vst [vmem:[#allocation2 + $0x3c4] sm:$0xf] %v656_v34 }
  0xa3   : > { %659 = vst [vmem:[#allocation2 + $0x3c8] sm:$0xf] %v658_v35  ;;  %v660_v36 = vld [vmem:[%s5050_s2 + $0x3e4] sm:$0xf]  ;;  %v662_v37 = vld [vmem:[%s5050_s2 + $0x3c8] sm:$0xf] }
  0xa4   : > { %v664_v38 = vld [vmem:[%s5050_s2 + $0x3e8] sm:$0xf]  ;;  %661 = vst [vmem:[#allocation2 + $0x3cc] sm:$0xf] %v660_v36  ;;  %663 = vst [vmem:[#allocation2 + $0x3d0] sm:$0xf] %v662_v37 }
  0xa5   : > { %665 = vst [vmem:[#allocation2 + $0x3d4] sm:$0xf] %v664_v38  ;;  %v666_v39 = vld [vmem:[%s5050_s2 + $0x3cc] sm:$0xf]  ;;  %v670_v41 = vld [vmem:[%s5050_s2 + $0x3d0] sm:$0xf] }
  0xa6   : > { %v668_v40 = vld [vmem:[%s5050_s2 + $0x3ec] sm:$0xf]  ;;  %667 = vst [vmem:[#allocation2 + $0x3d8] sm:$0xf] %v666_v39  ;;  %671 = vst [vmem:[#allocation2 + $0x3e0] sm:$0xf] %v670_v41 }
  0xa7   : > { %669 = vst [vmem:[#allocation2 + $0x3dc] sm:$0xf] %v668_v40  ;;  %v672_v42 = vld [vmem:[%s5050_s2 + $0x3f0] sm:$0xf]  ;;  %v674_v43 = vld [vmem:[%s5050_s2 + $0x3d4] sm:$0xf] }
  0xa8   : > { %v676_v44 = vld [vmem:[%s5050_s2 + $0x3f4] sm:$0xf]  ;;  %673 = vst [vmem:[#allocation2 + $0x3e4] sm:$0xf] %v672_v42  ;;  %675 = vst [vmem:[#allocation2 + $0x3e8] sm:$0xf] %v674_v43 }
  0xa9   : > { %677 = vst [vmem:[#allocation2 + $0x3ec] sm:$0xf] %v676_v44  ;;  %v678_v45 = vld [vmem:[%s5050_s2 + $0x3d8] sm:$0xf]  ;;  %v682_v47 = vld [vmem:[%s5050_s2 + $0x3dc] sm:$0xf] }
  0xaa   : > { %v680_v46 = vld [vmem:[%s5050_s2 + $0x3f8] sm:$0xf]  ;;  %679 = vst [vmem:[#allocation2 + $0x3f0] sm:$0xf] %v678_v45  ;;  %683 = vst [vmem:[#allocation2 + $0x3f8] sm:$0xf] %v682_v47 }
  0xab   : > { %681 = vst [vmem:[#allocation2 + $0x3f4] sm:$0xf] %v680_v46  ;;  %v684_v48 = vld [vmem:[%s5050_s2 + $0x3fc] sm:$0xf] }
  0xac   : > { %685 = vst [vmem:[#allocation2 + $0x3fc] sm:$0xf] %v684_v48 }
  0xad   : > { %1228 = vsyncadd [#allocation3], 16384 }
  0xae   : > { %3041 = dma.done.wait [#allocation3], 16384 }
  0xaf   : > { %3042 = vsyncadd [#allocation3], 4294950912  ;;  %v3047_v49 = vmov 0.0  }
  0xb0   : > { %1233 = vst [vmem:[#allocation4] sm:$0xff] %v3047_v49  ;;  %1234 = vst [vmem:[#allocation4 + $0x8] sm:$0xff] %v3047_v49 }
  0xb1   : > { %1235 = vst [vmem:[#allocation5] sm:$0xff] %v3047_v49  ;;  %1236 = vst [vmem:[#allocation5 + $0x8] sm:$0xff] %v3047_v49 }
  0xb2 PF: > { %v3824_v54 = vld [vmem:[#allocation2 + $0x48] sm:$0xff]  ;;  %v3826_v55 = vld [vmem:[#allocation2 + $0x58] sm:$0xff]  ;;  %v3832_v56 = vld [vmem:[#allocation2 + $0x40] sm:$0xff]  ;;  %v3048_v60 = vmov 0   ;;  %s1598_s25 = ssub.s32 7, %s3077_s14  ;;  %s1620_s26 = sadd.s32 1, %s3077_s14 }
  0xb3   : > { %v3834_v57 = vld [vmem:[#allocation2 + $0x50] sm:$0xff]  ;;  %v3836_v58 = vld [vmem:[#allocation2 + $0x88] sm:$0xff]  ;;  %v3838_v59 = vld [vmem:[#allocation2 + $0x98] sm:$0xff]  ;;  %2908 = vset.pattern.permute.xlu0 %v3048_v60  ;;  %s1976_s27 = ssub.s32 6, %s3077_s14  ;;  %s1996_s28 = sadd.s32 2, %s3077_s14 }
  0xb4   : > { %v3818_v52 = vld [vmem:[#allocation2] sm:$0xff]  ;;  %v3846_v62 = vld [vmem:[#allocation2 + $0x90] sm:$0xff]  ;;  %v3848_v63 = vld [vmem:[#allocation2 + $0xc8] sm:$0xff]  ;;  %s2352_s29 = ssub.s32 5, %s3077_s14  ;;  %s2728_s30 = ssub.s32 4, %s3077_s14 }
  0xb5   : > { %v3814_v50 = vld [vmem:[#allocation2 + $0x8] sm:$0xff]  ;;  %v3844_v61 = vld [vmem:[#allocation2 + $0x80] sm:$0xff]  ;;  %v3850_v0 = vld [vmem:[#allocation2 + $0xd8] sm:$0xff] }
  0xb6   : > { %1386 = vmatprep.subr.bf16.mxu0 %v3814_v50  ;;  %v3856_v1 = vld [vmem:[#allocation2 + $0xc0] sm:$0xff]  ;;  %v3858_v2 = vld [vmem:[#allocation2 + $0xd0] sm:$0xff]  ;;  %v3860_v3 = vld [vmem:[#allocation2 + $0x108] sm:$0xff] }
  0xb7   : > { %v3822_v53 = vld [vmem:[#allocation2 + $0x10] sm:$0xff]  ;;  %1387 = vmatpush1.bf16.msra.mxu0 %v3818_v52  ;;  %v3862_v4 = vld [vmem:[#allocation2 + $0x118] sm:$0xff]  ;;  %v3868_v5 = vld [vmem:[#allocation2 + $0x100] sm:$0xff] }
  0xb8   : > { %v3816_v51 = vld [vmem:[#allocation2 + $0x18] sm:$0xff]  ;;  %1388 = vmatprep.subr.bf16.mxu0 %v3824_v54  ;;  %v3870_v6 = vld [vmem:[#allocation2 + $0x110] sm:$0xff]  ;;  %v3872_v7 = vld [vmem:[#allocation2 + $0x148] sm:$0xff] }
  0xb9   : > { %1427 = vmatprep.subr.bf16.mxu1 %v3816_v51  ;;  %v3874_v8 = vld [vmem:[#allocation2 + $0x158] sm:$0xff]  ;;  %v3880_v9 = vld [vmem:[#allocation2 + $0x140] sm:$0xff]  ;;  %v3882_v10 = vld [vmem:[#allocation2 + $0x150] sm:$0xff] }
  0xba   : > { %1428 = vmatpush1.bf16.msra.mxu1 %v3822_v53  ;;  %v3884_v11 = vld [vmem:[#allocation2 + $0x188] sm:$0xff]  ;;  %v3886_v12 = vld [vmem:[#allocation2 + $0x198] sm:$0xff]  ;;  %v3898_v15 = vld [vmem:[#allocation2 + $0x180] sm:$0xff] }
  0xbb   : > { %1429 = vmatprep.subr.bf16.mxu1 %v3826_v55  ;;  %1389 = vmatpush1.bf16.msra.mxu0 %v3832_v56  ;;  %v3888_v13 = vld [vmem:[#allocation4 + $0x8] sm:$0xff]  ;;  %v3900_v16 = vld [vmem:[#allocation2 + $0x190] sm:$0xff]  ;;  %v3904_v18 = vld [vmem:[#allocation2 + $0x1d8] sm:$0xff] }
  0xbc   : > { %1390 = vmatprep.subr.bf16.mxu0 %v3836_v58  ;;  %5189 = vst [vmem:[#allocation8_spill] sm:$0xff] %v3888_v13  ;;  %v3894_v14 = vpack.c.bf16 %v3888_v13, %v3888_v13  ;;  %v3902_v17 = vld [vmem:[#allocation2 + $0x1c8] sm:$0xff]  ;;  %v3912_v19 = vld [vmem:[#allocation2 + $0x1c0] sm:$0xff]  ;;  %v3914_v20 = vld [vmem:[#allocation2 + $0x1d0] sm:$0xff] }
  0xbd   : > { %v3916_v21 = vld [vmem:[#allocation2 + $0x208] sm:$0xff]  ;;  %v3918_v22 = vld [vmem:[#allocation2 + $0x218] sm:$0xff]  ;;  %v3924_v23 = vld [vmem:[#allocation2 + $0x200] sm:$0xff] }
  0xbe   : > { %1430 = vmatpush1.bf16.msra.mxu1 %v3834_v57  ;;  %1418 = vmatprep.mubr.bf16.mxu0 %v3894_v14  ;;  %v3926_v24 = vld [vmem:[#allocation2 + $0x210] sm:$0xff]  ;;  %v3928_v25 = vld [vmem:[#allocation2 + $0x248] sm:$0xff]  ;;  %v3930_v26 = vld [vmem:[#allocation2 + $0x258] sm:$0xff] }
  0xbf   : > { %1431 = vmatprep.subr.bf16.mxu1 %v3838_v59  ;;  %1391 = vmatpush1.bf16.msra.mxu0 %v3844_v61  ;;  %v3936_v27 = vld [vmem:[#allocation2 + $0x240] sm:$0xff]  ;;  %v3938_v28 = vld [vmem:[#allocation2 + $0x250] sm:$0xff]  ;;  %v3940_v29 = vld [vmem:[#allocation2 + $0x288] sm:$0xff] }
  0xc0   : > { %1392 = vmatprep.subr.bf16.mxu0 %v3848_v63  ;;  %1459 = vmatprep.mubr.bf16.mxu1 %v3894_v14  ;;  %v3942_v30 = vld [vmem:[#allocation2 + $0x298] sm:$0xff]  ;;  %v3948_v31 = vld [vmem:[#allocation2 + $0x280] sm:$0xff]  ;;  %v3950_v32 = vld [vmem:[#allocation2 + $0x290] sm:$0xff] }
  0xc1   : > { %v3952_v33 = vld [vmem:[#allocation2 + $0x2c8] sm:$0xff]  ;;  %v3954_v34 = vld [vmem:[#allocation2 + $0x2d8] sm:$0xff]  ;;  %v3960_v35 = vld [vmem:[#allocation2 + $0x2c0] sm:$0xff] }
  0xc2   : > { %1432 = vmatpush1.bf16.msra.mxu1 %v3846_v62  ;;  %v3962_v36 = vld [vmem:[#allocation2 + $0x2d0] sm:$0xff]  ;;  %v1237_v37 = vld [vmem:[%s5049_s1] sm:$0xff]  ;;  %v3967_v38 = vld [vmem:[#allocation2 + $0x308] sm:$0xff] }
  0xc3   : > { %1433 = vmatprep.subr.bf16.mxu1 %v3850_v0  ;;  %1393 = vmatpush1.bf16.msra.mxu0 %v3856_v1  ;;  %v3969_v39 = vld [vmem:[#allocation2 + $0x318] sm:$0xff]  ;;  %v3975_v40 = vld [vmem:[#allocation2 + $0x300] sm:$0xff]  ;;  %v3977_v41 = vld [vmem:[#allocation2 + $0x310] sm:$0xff] }
  0xc4   : > { %1394 = vmatprep.subr.bf16.mxu0 %v3860_v3  ;;  %1604 = vperm.xlu0 %2908, %v1237_v37   ;;  %v3979_v42 = vld [vmem:[#allocation2 + $0x348] sm:$0xff]  ;;  %v3981_v43 = vld [vmem:[#allocation2 + $0x358] sm:$0xff]  ;;  %v3987_v44 = vld [vmem:[#allocation2 + $0x340] sm:$0xff] }
  0xc5   : > { %5190 = vst [vmem:[#allocation9_spill] sm:$0xff] %v3981_v43  ;;  %5191 = vst [vmem:[#allocation10_spill] sm:$0xff] %v3987_v44  ;;  %v3989_v45 = vld [vmem:[#allocation2 + $0x350] sm:$0xff]  ;;  %v3991_v46 = vld [vmem:[#allocation2 + $0x388] sm:$0xff] }
  0xc6   : > { %1434 = vmatpush1.bf16.msra.mxu1 %v3858_v2  ;;  %5192 = vst [vmem:[#allocation11_spill] sm:$0xff] %v3989_v45  ;;  %5193 = vst [vmem:[#allocation12_spill] sm:$0xff] %v3991_v46  ;;  %v3993_v47 = vld [vmem:[#allocation2 + $0x398] sm:$0xff]  ;;  %v3999_v48 = vld [vmem:[#allocation2 + $0x380] sm:$0xff] }
  0xc7   : > { %1435 = vmatprep.subr.bf16.mxu1 %v3862_v4  ;;  %1395 = vmatpush1.bf16.msra.mxu0 %v3868_v5  ;;  %5194 = vst [vmem:[#allocation13_spill] sm:$0xff] %v3993_v47  ;;  %5195 = vst [vmem:[#allocation14_spill] sm:$0xff] %v3999_v48  ;;  %v4001_v49 = vld [vmem:[#allocation2 + $0x390] sm:$0xff]  ;;  %v4003_v60 = vld [vmem:[#allocation2 + $0x3c8] sm:$0xff] }
  0xc8   : > { %1396 = vmatprep.subr.bf16.mxu0 %v3872_v7  ;;  %5196 = vst [vmem:[#allocation15_spill] sm:$0xff] %v4001_v49  ;;  %5197 = vst [vmem:[#allocation16_spill] sm:$0xff] %v4003_v60  ;;  %v4005_v37 = vld [vmem:[#allocation2 + $0x3d8] sm:$0xff]  ;;  %v4009_v13 = vld [vmem:[#allocation4] sm:$0xff] }
  0xc9   : > { %5198 = vst [vmem:[#allocation17_spill] sm:$0xff] %v4005_v37  ;;  %5199 = vst [vmem:[#allocation18_spill] sm:$0xff] %v4009_v13 }
  0xca   : > { %1436 = vmatpush1.bf16.msra.mxu1 %v3870_v6 }
  0xcb   : > { %1437 = vmatprep.subr.bf16.mxu1 %v3874_v8  ;;  %1397 = vmatpush1.bf16.msra.mxu0 %v3880_v9 }
  0xcc   : > { %1398 = vmatprep.subr.bf16.mxu0 %v3884_v11 }
  0xce   : > { %1438 = vmatpush1.bf16.msra.mxu1 %v3882_v10 }
  0xcf   : > { %1439 = vmatprep.subr.bf16.mxu1 %v3886_v12  ;;  %1399 = vmatpush1.bf16.msra.mxu0 %v3898_v15 }
  0xd0   : > { %1400 = vmatprep.subr.bf16.mxu0 %v3902_v17 }
  0xd2   : > { %1440 = vmatpush1.bf16.msra.mxu1 %v3900_v16 }
  0xd3   : > { %1441 = vmatprep.subr.bf16.mxu1 %v3904_v18  ;;  %1401 = vmatpush1.bf16.msra.mxu0 %v3912_v19 }
  0xd4   : > { %1402 = vmatprep.subr.bf16.mxu0 %v3916_v21 }
  0xd6   : > { %1442 = vmatpush1.bf16.msra.mxu1 %v3914_v20 }
  0xd7   : > { %1443 = vmatprep.subr.bf16.mxu1 %v3918_v22  ;;  %1403 = vmatpush1.bf16.msra.mxu0 %v3924_v23 }
  0xd8   : > { %1404 = vmatprep.subr.bf16.mxu0 %v3928_v25 }
  0xda   : > { %1444 = vmatpush1.bf16.msra.mxu1 %v3926_v24 }
  0xdb   : > { %1445 = vmatprep.subr.bf16.mxu1 %v3930_v26  ;;  %1405 = vmatpush1.bf16.msra.mxu0 %v3936_v27 }
  0xdc   : > { %1406 = vmatprep.subr.bf16.mxu0 %v3940_v29 }
  0xde   : > { %1446 = vmatpush1.bf16.msra.mxu1 %v3938_v28 }
  0xdf   : > { %1447 = vmatprep.subr.bf16.mxu1 %v3942_v30  ;;  %1407 = vmatpush1.bf16.msra.mxu0 %v3948_v31 }
  0xe0   : > { %1408 = vmatprep.subr.bf16.mxu0 %v3952_v33 }
  0xe2   : > { %1448 = vmatpush1.bf16.msra.mxu1 %v3950_v32 }
  0xe3   : > { %1449 = vmatprep.subr.bf16.mxu1 %v3954_v34  ;;  %1409 = vmatpush1.bf16.msra.mxu0 %v3960_v35 }
  0xe4   : > { %1410 = vmatprep.subr.bf16.mxu0 %v3967_v38 }
  0xe6   : > { %1450 = vmatpush1.bf16.msra.mxu1 %v3962_v36 }
  0xe7   : > { %1451 = vmatprep.subr.bf16.mxu1 %v3969_v39  ;;  %1411 = vmatpush1.bf16.msra.mxu0 %v3975_v40 }
  0xe8   : > { %1412 = vmatprep.subr.bf16.mxu0 %v3979_v42 }
  0xea   : > { %1452 = vmatpush1.bf16.msra.mxu1 %v3977_v41 }
  0xeb   : > { %1453 = vmatprep.subr.bf16.mxu1 %v3981_v43  ;;  %1413 = vmatpush1.bf16.msra.mxu0 %v3987_v44  ;;  %v4019_v44 = vld [vmem:[#allocation2 + $0x38] sm:$0xff]  ;;  %v4023_v43 = vpack.c.bf16 %v4009_v13, %v4009_v13  ;;  %v4043_v13 = vld [vmem:[#allocation2 + $0x60] sm:$0xff] }
  0xec   : > { %1414 = vmatprep.subr.bf16.mxu0 %v3991_v46  ;;  %v4013_v46 = vld [vmem:[#allocation2 + $0x3c0] sm:$0xff]  ;;  %5202 = vst [vmem:[#allocation21_spill] sm:$0xff] %v4019_v44 }
  0xee   : > { %1454 = vmatpush1.bf16.msra.mxu1 %v3989_v45  ;;  %v4017_v45 = vld [vmem:[#allocation2 + $0x28] sm:$0xff] }
  0xef   : > { %1455 = vmatprep.subr.bf16.mxu1 %v3993_v47  ;;  %1415 = vmatpush1.bf16.msra.mxu0 %v3999_v48  ;;  %v4015_v47 = vld [vmem:[#allocation2 + $0x3d0] sm:$0xff]  ;;  %5201 = vst [vmem:[#allocation20_spill] sm:$0xff] %v4017_v45  ;;  %v4035_v48 = vld [vmem:[#allocation2 + $0x78] sm:$0xff] }
  0xf0   : > { %1416 = vmatprep.subr.bf16.mxu0 %v4003_v60  ;;  %5200 = vst [vmem:[#allocation19_spill] sm:$0xff] %v4015_v47  ;;  %v4031_v60 = vld [vmem:[#allocation2 + $0x30] sm:$0xff]  ;;  %5206 = vst [vmem:[#allocation25_spill] sm:$0xff] %v4035_v48 }
  0xf1   : > { %5204 = vst [vmem:[#allocation23_spill] sm:$0xff] %v4031_v60 }
  0xf2   : > { %1456 = vmatpush1.bf16.msra.mxu1 %v4001_v49  ;;  %v4033_v49 = vld [vmem:[#allocation2 + $0x68] sm:$0xff] }
  0xf3   : > { %1457 = vmatprep.subr.bf16.mxu1 %v4005_v37  ;;  %1417 = vmatpush1.bf16.msra.mxu0 %v4013_v46  ;;  %v4029_v37 = vld [vmem:[#allocation2 + $0x20] sm:$0xff]  ;;  %5205 = vst [vmem:[#allocation24_spill] sm:$0xff] %v4033_v49 }
  0xf4   : > { %1468 = vmatprep.subr.bf16.mxu0 %v4017_v45  ;;  %5203 = vst [vmem:[#allocation22_spill] sm:$0xff] %v4029_v37  ;;  %v4047_v45 = vld [vmem:[#allocation2 + $0xa8] sm:$0xff] }
  0xf5   : > { %5208 = vst [vmem:[#allocation27_spill] sm:$0xff] %v4047_v45 }
  0xf6   : > { %1458 = vmatpush1.bf16.msra.mxu1 %v4015_v47  ;;  %1419 = vmatmul.mubr.bf16.vlgmr.msra.gmra.mrb[0].mxu0 %v4023_v43  ;;  %v4049_v47 = vld [vmem:[#allocation2 + $0xb8] sm:$0xff] }
  0xf7   : > { %1509 = vmatprep.subr.bf16.mxu1 %v4019_v44  ;;  %1469 = vmatpush1.bf16.msra.mxu0 %v4029_v37  ;;  %v4045_v44 = vld [vmem:[#allocation2 + $0x70] sm:$0xff]  ;;  %5209 = vst [vmem:[#allocation28_spill] sm:$0xff] %v4049_v47  ;;  %v4063_v37 = vld [vmem:[#allocation2 + $0xf8] sm:$0xff] }
  0xf8   : > { %1470 = vmatprep.subr.bf16.mxu0 %v4033_v49  ;;  %5207 = vst [vmem:[#allocation26_spill] sm:$0xff] %v4045_v44  ;;  %1500 = vmatprep.mubr.bf16.mxu0 %v3894_v14  ;;  %v4059_v49 = vld [vmem:[#allocation2 + $0xb0] sm:$0xff]  ;;  %5213 = vst [vmem:[#allocation32_spill] sm:$0xff] %v4063_v37 }
  0xf9   : > { %1460 = vmatmul.mubr.bf16.vlgmr.msra.gmra.mrb[0].mxu1 %v4023_v43  ;;  %5211 = vst [vmem:[#allocation30_spill] sm:$0xff] %v4059_v49 }
  0xfa   : > { %1510 = vmatpush1.bf16.msra.mxu1 %v4031_v60  ;;  %1541 = vmatprep.mubr.bf16.mxu1 %v3894_v14  ;;  %v4061_v60 = vld [vmem:[#allocation2 + $0xe8] sm:$0xff]  ;;  %v4069_v14 = vld [vmem:[#allocation2 + $0xe0] sm:$0xff] }
  0xfb   : > { %1511 = vmatprep.subr.bf16.mxu1 %v4035_v48  ;;  %1471 = vmatpush1.bf16.msra.mxu0 %v4043_v13  ;;  %v4057_v48 = vld [vmem:[#allocation2 + $0xa0] sm:$0xff]  ;;  %5212 = vst [vmem:[#allocation31_spill] sm:$0xff] %v4061_v60  ;;  %5214 = vst [vmem:[#allocation33_spill] sm:$0xff] %v4069_v14 }
  0xfc   : > { %1472 = vmatprep.subr.bf16.mxu0 %v4047_v45  ;;  %5210 = vst [vmem:[#allocation29_spill] sm:$0xff] %v4057_v48  ;;  %v4071_v45 = vld [vmem:[#allocation2 + $0xf0] sm:$0xff] }
  0xfd   : > { %5215 = vst [vmem:[#allocation34_spill] sm:$0xff] %v4071_v45 }
  0xfe   : > { %1512 = vmatpush1.bf16.msra.mxu1 %v4045_v44  ;;  %v4075_v44 = vld [vmem:[#allocation2 + $0x138] sm:$0xff] }
  0xff   : > { %1513 = vmatprep.subr.bf16.mxu1 %v4049_v47  ;;  %1473 = vmatpush1.bf16.msra.mxu0 %v4057_v48  ;;  %v4073_v47 = vld [vmem:[#allocation2 + $0x128] sm:$0xff]  ;;  %5217 = vst [vmem:[#allocation36_spill] sm:$0xff] %v4075_v44  ;;  %v4087_v48 = vld [vmem:[#allocation2 + $0x178] sm:$0xff] }
 0x100   : > { %1474 = vmatprep.subr.bf16.mxu0 %v4061_v60  ;;  %5216 = vst [vmem:[#allocation35_spill] sm:$0xff] %v4073_v47  ;;  %v4083_v60 = vld [vmem:[#allocation2 + $0x130] sm:$0xff]  ;;  %5221 = vst [vmem:[#allocation40_spill] sm:$0xff] %v4087_v48 }
 0x101   : > { %5219 = vst [vmem:[#allocation38_spill] sm:$0xff] %v4083_v60 }
 0x102   : > { %1514 = vmatpush1.bf16.msra.mxu1 %v4059_v49  ;;  %v4081_v49 = vld [vmem:[#allocation2 + $0x120] sm:$0xff] }
 0x103   : > { %1515 = vmatprep.subr.bf16.mxu1 %v4063_v37  ;;  %1475 = vmatpush1.bf16.msra.mxu0 %v4069_v14  ;;  %5218 = vst [vmem:[#allocation37_spill] sm:$0xff] %v4081_v49  ;;  %v4085_v37 = vld [vmem:[#allocation2 + $0x168] sm:$0xff]  ;;  %v4099_v14 = vld [vmem:[#allocation2 + $0x1b8] sm:$0xff] }
 0x104   : > { %1476 = vmatprep.subr.bf16.mxu0 %v4073_v47  ;;  %5220 = vst [vmem:[#allocation39_spill] sm:$0xff] %v4085_v37  ;;  %v4095_v47 = vld [vmem:[#allocation2 + $0x170] sm:$0xff]  ;;  %5225 = vst [vmem:[#allocation44_spill] sm:$0xff] %v4099_v14 }
 0x105   : > { %5223 = vst [vmem:[#allocation42_spill] sm:$0xff] %v4095_v47 }
 0x106   : > { %1516 = vmatpush1.bf16.msra.mxu1 %v4071_v45  ;;  %v4093_v45 = vld [vmem:[#allocation2 + $0x160] sm:$0xff] }
 0x107   : > { %1517 = vmatprep.subr.bf16.mxu1 %v4075_v44  ;;  %1477 = vmatpush1.bf16.msra.mxu0 %v4081_v49  ;;  %5222 = vst [vmem:[#allocation41_spill] sm:$0xff] %v4093_v45  ;;  %v4097_v44 = vld [vmem:[#allocation2 + $0x1a8] sm:$0xff]  ;;  %v4111_v49 = vld [vmem:[#allocation2 + $0x1f8] sm:$0xff] }
 0x108   : > { %1478 = vmatprep.subr.bf16.mxu0 %v4085_v37  ;;  %5224 = vst [vmem:[#allocation43_spill] sm:$0xff] %v4097_v44  ;;  %v4107_v37 = vld [vmem:[#allocation2 + $0x1b0] sm:$0xff]  ;;  %5229 = vst [vmem:[#allocation48_spill] sm:$0xff] %v4111_v49 }
 0x109   : > { %5227 = vst [vmem:[#allocation46_spill] sm:$0xff] %v4107_v37 }
 0x10a   : > { %1518 = vmatpush1.bf16.msra.mxu1 %v4083_v60  ;;  %v4105_v60 = vld [vmem:[#allocation2 + $0x1a0] sm:$0xff] }
 0x10b   : > { %1519 = vmatprep.subr.bf16.mxu1 %v4087_v48  ;;  %1479 = vmatpush1.bf16.msra.mxu0 %v4093_v45  ;;  %5226 = vst [vmem:[#allocation45_spill] sm:$0xff] %v4105_v60  ;;  %v4109_v48 = vld [vmem:[#allocation2 + $0x1e8] sm:$0xff]  ;;  %v4123_v45 = vld [vmem:[#allocation2 + $0x238] sm:$0xff] }
 0x10c   : > { %1480 = vmatprep.subr.bf16.mxu0 %v4097_v44  ;;  %5228 = vst [vmem:[#allocation47_spill] sm:$0xff] %v4109_v48  ;;  %v4119_v44 = vld [vmem:[#allocation2 + $0x1f0] sm:$0xff]  ;;  %5233 = vst [vmem:[#allocation52_spill] sm:$0xff] %v4123_v45 }
 0x10d   : > { %5231 = vst [vmem:[#allocation50_spill] sm:$0xff] %v4119_v44 }
 0x10e   : > { %1520 = vmatpush1.bf16.msra.mxu1 %v4095_v47  ;;  %v4117_v47 = vld [vmem:[#allocation2 + $0x1e0] sm:$0xff] }
 0x10f   : > { %1521 = vmatprep.subr.bf16.mxu1 %v4099_v14  ;;  %1481 = vmatpush1.bf16.msra.mxu0 %v4105_v60  ;;  %5230 = vst [vmem:[#allocation49_spill] sm:$0xff] %v4117_v47  ;;  %v4121_v14 = vld [vmem:[#allocation2 + $0x228] sm:$0xff]  ;;  %v4135_v60 = vld [vmem:[#allocation2 + $0x278] sm:$0xff] }
 0x110   : > { %1482 = vmatprep.subr.bf16.mxu0 %v4109_v48  ;;  %5232 = vst [vmem:[#allocation51_spill] sm:$0xff] %v4121_v14  ;;  %v4131_v48 = vld [vmem:[#allocation2 + $0x230] sm:$0xff]  ;;  %5237 = vst [vmem:[#allocation56_spill] sm:$0xff] %v4135_v60 }
 0x111   : > { %5235 = vst [vmem:[#allocation54_spill] sm:$0xff] %v4131_v48 }
 0x112   : > { %1522 = vmatpush1.bf16.msra.mxu1 %v4107_v37  ;;  %v4129_v37 = vld [vmem:[#allocation2 + $0x220] sm:$0xff] }
 0x113   : > { %1523 = vmatprep.subr.bf16.mxu1 %v4111_v49  ;;  %1483 = vmatpush1.bf16.msra.mxu0 %v4117_v47  ;;  %5234 = vst [vmem:[#allocation53_spill] sm:$0xff] %v4129_v37  ;;  %v4133_v49 = vld [vmem:[#allocation2 + $0x268] sm:$0xff]  ;;  %v4147_v47 = vld [vmem:[#allocation2 + $0x2b8] sm:$0xff] }
 0x114   : > { %1484 = vmatprep.subr.bf16.mxu0 %v4121_v14  ;;  %5236 = vst [vmem:[#allocation55_spill] sm:$0xff] %v4133_v49  ;;  %v4143_v14 = vld [vmem:[#allocation2 + $0x270] sm:$0xff]  ;;  %5241 = vst [vmem:[#allocation60_spill] sm:$0xff] %v4147_v47 }
 0x115   : > { %5239 = vst [vmem:[#allocation58_spill] sm:$0xff] %v4143_v14 }
 0x116   : > { %1524 = vmatpush1.bf16.msra.mxu1 %v4119_v44  ;;  %v4141_v44 = vld [vmem:[#allocation2 + $0x260] sm:$0xff] }
 0x117   : > { %1525 = vmatprep.subr.bf16.mxu1 %v4123_v45  ;;  %1485 = vmatpush1.bf16.msra.mxu0 %v4129_v37  ;;  %5238 = vst [vmem:[#allocation57_spill] sm:$0xff] %v4141_v44  ;;  %v4145_v45 = vld [vmem:[#allocation2 + $0x2a8] sm:$0xff]  ;;  %v4159_v37 = vld [vmem:[#allocation2 + $0x2f8] sm:$0xff] }
 0x118   : > { %1486 = vmatprep.subr.bf16.mxu0 %v4133_v49  ;;  %5240 = vst [vmem:[#allocation59_spill] sm:$0xff] %v4145_v45  ;;  %v4155_v49 = vld [vmem:[#allocation2 + $0x2b0] sm:$0xff]  ;;  %5245 = vst [vmem:[#allocation64_spill] sm:$0xff] %v4159_v37 }
 0x119   : > { %5243 = vst [vmem:[#allocation62_spill] sm:$0xff] %v4155_v49 }
 0x11a   : > { %1526 = vmatpush1.bf16.msra.mxu1 %v4131_v48  ;;  %v4153_v48 = vld [vmem:[#allocation2 + $0x2a0] sm:$0xff] }
 0x11b   : > { %1527 = vmatprep.subr.bf16.mxu1 %v4135_v60  ;;  %1487 = vmatpush1.bf16.msra.mxu0 %v4141_v44  ;;  %5242 = vst [vmem:[#allocation61_spill] sm:$0xff] %v4153_v48  ;;  %v4157_v60 = vld [vmem:[#allocation2 + $0x2e8] sm:$0xff]  ;;  %v4171_v44 = vld [vmem:[#allocation2 + $0x338] sm:$0xff] }
 0x11c   : > { %1488 = vmatprep.subr.bf16.mxu0 %v4145_v45  ;;  %5244 = vst [vmem:[#allocation63_spill] sm:$0xff] %v4157_v60  ;;  %v4167_v45 = vld [vmem:[#allocation2 + $0x2f0] sm:$0xff]  ;;  %5249 = vst [vmem:[#allocation68_spill] sm:$0xff] %v4171_v44 }
 0x11d   : > { %5247 = vst [vmem:[#allocation66_spill] sm:$0xff] %v4167_v45 }
 0x11e   : > { %1528 = vmatpush1.bf16.msra.mxu1 %v4143_v14  ;;  %v4165_v14 = vld [vmem:[#allocation2 + $0x2e0] sm:$0xff] }
 0x11f   : > { %1529 = vmatprep.subr.bf16.mxu1 %v4147_v47  ;;  %1489 = vmatpush1.bf16.msra.mxu0 %v4153_v48  ;;  %5246 = vst [vmem:[#allocation65_spill] sm:$0xff] %v4165_v14  ;;  %v4169_v47 = vld [vmem:[#allocation2 + $0x328] sm:$0xff]  ;;  %v4183_v48 = vld [vmem:[#allocation2 + $0x378] sm:$0xff] }
 0x120   : > { %1490 = vmatprep.subr.bf16.mxu0 %v4157_v60  ;;  %5248 = vst [vmem:[#allocation67_spill] sm:$0xff] %v4169_v47  ;;  %v4179_v60 = vld [vmem:[#allocation2 + $0x330] sm:$0xff]  ;;  %5253 = vst [vmem:[#allocation72_spill] sm:$0xff] %v4183_v48 }
 0x121   : > { %5251 = vst [vmem:[#allocation70_spill] sm:$0xff] %v4179_v60 }
 0x122   : > { %1530 = vmatpush1.bf16.msra.mxu1 %v4155_v49  ;;  %v4177_v49 = vld [vmem:[#allocation2 + $0x320] sm:$0xff] }
 0x123   : > { %1531 = vmatprep.subr.bf16.mxu1 %v4159_v37  ;;  %1491 = vmatpush1.bf16.msra.mxu0 %v4165_v14  ;;  %5250 = vst [vmem:[#allocation69_spill] sm:$0xff] %v4177_v49  ;;  %v4181_v37 = vld [vmem:[#allocation2 + $0x368] sm:$0xff]  ;;  %v4195_v14 = vld [vmem:[#allocation2 + $0x3b8] sm:$0xff] }
 0x124   : > { %1492 = vmatprep.subr.bf16.mxu0 %v4169_v47  ;;  %5252 = vst [vmem:[#allocation71_spill] sm:$0xff] %v4181_v37  ;;  %v4191_v47 = vld [vmem:[#allocation2 + $0x370] sm:$0xff] }
 0x125   : > { %5254 = vst [vmem:[#allocation73_spill] sm:$0xff] %v4191_v47 }
 0x126   : > { %1532 = vmatpush1.bf16.msra.mxu1 %v4167_v45  ;;  %v4189_v45 = vld [vmem:[#allocation2 + $0x360] sm:$0xff] }
 0x127   : > { %1533 = vmatprep.subr.bf16.mxu1 %v4171_v44  ;;  %1493 = vmatpush1.bf16.msra.mxu0 %v4177_v49  ;;  %v4193_v44 = vld [vmem:[#allocation2 + $0x3a8] sm:$0xff]  ;;  %v4207_v49 = vld [vmem:[#allocation2 + $0x3f8] sm:$0xff] }
 0x128   : > { %1494 = vmatprep.subr.bf16.mxu0 %v4181_v37  ;;  %5255 = vst [vmem:[#allocation74_spill] sm:$0xff] %v4193_v44  ;;  %v4203_v37 = vld [vmem:[#allocation2 + $0x3b0] sm:$0xff] }
 0x12a   : > { %1534 = vmatpush1.bf16.msra.mxu1 %v4179_v60  ;;  %v4201_v60 = vld [vmem:[#allocation2 + $0x3a0] sm:$0xff] }
 0x12b   : > { %1535 = vmatprep.subr.bf16.mxu1 %v4183_v48  ;;  %1495 = vmatpush1.bf16.msra.mxu0 %v4189_v45  ;;  %v4205_v48 = vld [vmem:[#allocation2 + $0x3e8] sm:$0xff] }
 0x12c   : > { %1496 = vmatprep.subr.bf16.mxu0 %v4193_v44  ;;  %v4215_v44 = vld [vmem:[#allocation2 + $0x3f0] sm:$0xff] }
 0x12e   : > { %1536 = vmatpush1.bf16.msra.mxu1 %v4191_v47  ;;  %v4213_v47 = vld [vmem:[#allocation2 + $0x3e0] sm:$0xff] }
 0x12f   : > { %1537 = vmatprep.subr.bf16.mxu1 %v4195_v14  ;;  %1497 = vmatpush1.bf16.msra.mxu0 %v4201_v60 }
 0x130   : > { %1498 = vmatprep.subr.bf16.mxu0 %v4205_v48 }
 0x132   : > { %1538 = vmatpush1.bf16.msra.mxu1 %v4203_v37 }
 0x133   : > { %1539 = vmatprep.subr.bf16.mxu1 %v4207_v49  ;;  %1499 = vmatpush1.bf16.msra.mxu0 %v4213_v47 }
 0x134   : > { %1764 = vmatprep.subr.bf16.mxu0 %v3814_v50  ;;  %v5256_v50 = vld [vmem:[#allocation9_spill] sm:$0xff] }
 0x136   : > { %1540 = vmatpush1.bf16.msra.mxu1 %v4215_v44  ;;  %1501 = vmatmul.mubr.bf16.vlgmr.msra.gmra.mrb[4].mxu0 %v4023_v43 }
 0x137   : > { %1805 = vmatprep.subr.bf16.mxu1 %v3816_v51  ;;  %1765 = vmatpush1.bf16.msra.mxu0 %v3818_v52  ;;  %v5257_v51 = vld [vmem:[#allocation10_spill] sm:$0xff]  ;;  %v5258_v52 = vld [vmem:[#allocation11_spill] sm:$0xff] }
 0x138   : > { %1766 = vmatprep.subr.bf16.mxu0 %v3824_v54  ;;  %v5260_v54 = vld [vmem:[#allocation13_spill] sm:$0xff] }
 0x139   : > { %1542 = vmatmul.mubr.bf16.vlgmr.msra.gmra.mrb[4].mxu1 %v4023_v43 }
 0x13a   : > { %1806 = vmatpush1.bf16.msra.mxu1 %v3822_v53  ;;  %v5259_v53 = vld [vmem:[#allocation12_spill] sm:$0xff] }
 0x13b   : > { %1807 = vmatprep.subr.bf16.mxu1 %v3826_v55  ;;  %1767 = vmatpush1.bf16.msra.mxu0 %v3832_v56  ;;  %v5261_v55 = vld [vmem:[#allocation14_spill] sm:$0xff]  ;;  %v5262_v56 = vld [vmem:[#allocation15_spill] sm:$0xff] }
 0x13c   : > { %1768 = vmatprep.subr.bf16.mxu0 %v3836_v58  ;;  %v5264_v58 = vld [vmem:[#allocation17_spill] sm:$0xff] }
 0x13e   : > { %1808 = vmatpush1.bf16.msra.mxu1 %v3834_v57  ;;  %v5263_v57 = vld [vmem:[#allocation16_spill] sm:$0xff] }
 0x13f   : > { %1809 = vmatprep.subr.bf16.mxu1 %v3838_v59  ;;  %1769 = vmatpush1.bf16.msra.mxu0 %v3844_v61  ;;  %v5265_v59 = vld [vmem:[#allocation19_spill] sm:$0xff]  ;;  %v5266_v61 = vld [vmem:[#allocation20_spill] sm:$0xff] }
 0x140   : > { %1770 = vmatprep.subr.bf16.mxu0 %v3848_v63 }
 0x142   : > { %1810 = vmatpush1.bf16.msra.mxu1 %v3846_v62  ;;  %v5267_v62 = vld [vmem:[#allocation21_spill] sm:$0xff] }
 0x143   : > { %1811 = vmatprep.subr.bf16.mxu1 %v3850_v0  ;;  %1771 = vmatpush1.bf16.msra.mxu0 %v3856_v1 }
 0x144   : > { %1772 = vmatprep.subr.bf16.mxu0 %v3860_v3 }
 0x146   : > { %1812 = vmatpush1.bf16.msra.mxu1 %v3858_v2 }
 0x147   : > { %1813 = vmatprep.subr.bf16.mxu1 %v3862_v4  ;;  %1773 = vmatpush1.bf16.msra.mxu0 %v3868_v5 }
 0x148   : > { %1774 = vmatprep.subr.bf16.mxu0 %v3872_v7  ;;  %v1378_v7 = vld [vmem:[%s3084_s20] sm:$0xff] }
 0x14a   : > { %1814 = vmatpush1.bf16.msra.mxu1 %v3870_v6 }
 0x14b   : > { %1815 = vmatprep.subr.bf16.mxu1 %v3874_v8  ;;  %1775 = vmatpush1.bf16.msra.mxu0 %v3880_v9  ;;  %v1380_v8 = vld [vmem:[%s3084_s20 + $0x10] sm:$0xff]  ;;  %v1379_v9 = vld [vmem:[%s3084_s20 + $0x8] sm:$0xff] }
 0x14c   : > { %1776 = vmatprep.subr.bf16.mxu0 %v3884_v11  ;;  %v1381_v11 = vld [vmem:[%s3084_s20 + $0x18] sm:$0xff] }
 0x14e   : > { %1816 = vmatpush1.bf16.msra.mxu1 %v3882_v10 }
 0x14f   : > { %1817 = vmatprep.subr.bf16.mxu1 %v3886_v12  ;;  %1777 = vmatpush1.bf16.msra.mxu0 %v3898_v15 }
 0x150   : > { %1778 = vmatprep.subr.bf16.mxu0 %v3902_v17 }
 0x152   : > { %1818 = vmatpush1.bf16.msra.mxu1 %v3900_v16 }
 0x153   : > { %1819 = vmatprep.subr.bf16.mxu1 %v3904_v18  ;;  %1779 = vmatpush1.bf16.msra.mxu0 %v3912_v19 }
 0x154   : > { %1780 = vmatprep.subr.bf16.mxu0 %v3916_v21 }
 0x156   : > { %1820 = vmatpush1.bf16.msra.mxu1 %v3914_v20 }
 0x157   : > { %1821 = vmatprep.subr.bf16.mxu1 %v3918_v22  ;;  %1781 = vmatpush1.bf16.msra.mxu0 %v3924_v23 }
 0x158   : > { %1782 = vmatprep.subr.bf16.mxu0 %v3928_v25 }
 0x15a   : > { %1822 = vmatpush1.bf16.msra.mxu1 %v3926_v24 }
 0x15b   : > { %1823 = vmatprep.subr.bf16.mxu1 %v3930_v26  ;;  %1783 = vmatpush1.bf16.msra.mxu0 %v3936_v27 }
 0x15c   : > { %1784 = vmatprep.subr.bf16.mxu0 %v3940_v29  ;;  %v1382_v29 = vld [vmem:[%s3084_s20 + $0x20] sm:$0xff] }
 0x15e   : > { %1824 = vmatpush1.bf16.msra.mxu1 %v3938_v28 }
 0x15f   : > { %1825 = vmatprep.subr.bf16.mxu1 %v3942_v30  ;;  %1785 = vmatpush1.bf16.msra.mxu0 %v3948_v31  ;;  %v1384_v30 = vld [vmem:[%s3084_s20 + $0x30] sm:$0xff]  ;;  %v1383_v31 = vld [vmem:[%s3084_s20 + $0x28] sm:$0xff] }
 0x160   : > { %1786 = vmatprep.subr.bf16.mxu0 %v3952_v33 }
 0x162   : > { %1826 = vmatpush1.bf16.msra.mxu1 %v3950_v32  ;;  %v1385_v32 = vld [vmem:[%s3084_s20 + $0x38] sm:$0xff] }
 0x163   : > { %1827 = vmatprep.subr.bf16.mxu1 %v3954_v34  ;;  %1787 = vmatpush1.bf16.msra.mxu0 %v3960_v35 }
 0x164   : > { %1788 = vmatprep.subr.bf16.mxu0 %v3967_v38 }
 0x166   : > { %1828 = vmatpush1.bf16.msra.mxu1 %v3962_v36 }
 0x167   : > { %1829 = vmatprep.subr.bf16.mxu1 %v3969_v39  ;;  %1789 = vmatpush1.bf16.msra.mxu0 %v3975_v40 }
 0x168   : > { %1790 = vmatprep.subr.bf16.mxu0 %v3979_v42 }
 0x16a   : > { %1830 = vmatpush1.bf16.msra.mxu1 %v3977_v41 }
 0x16b   : > { %1831 = vmatprep.subr.bf16.mxu1 %v5256_v50  ;;  %1791 = vmatpush1.bf16.msra.mxu0 %v5257_v51 }
 0x16c   : > { %1792 = vmatprep.subr.bf16.mxu0 %v5259_v53 }
 0x16e   : > { %1832 = vmatpush1.bf16.msra.mxu1 %v5258_v52 }
 0x16f   : > { %1833 = vmatprep.subr.bf16.mxu1 %v5260_v54  ;;  %1793 = vmatpush1.bf16.msra.mxu0 %v5261_v55 }
 0x170   : > { %1794 = vmatprep.subr.bf16.mxu0 %v5263_v57 }
 0x172   : > { %1834 = vmatpush1.bf16.msra.mxu1 %v5262_v56  ;;  %v1246_v56 = vld [vmem:[#allocation5] sm:$0xff] }
 0x173   : > { %1835 = vmatprep.subr.bf16.mxu1 %v5264_v58  ;;  %1795 = vmatpush1.bf16.msra.mxu0 %v4013_v46  ;;  %v1247_v58 = vld [vmem:[#allocation5 + $0x8] sm:$0xff] }
 0x174   : > { %1846 = vmatprep.subr.bf16.mxu0 %v5266_v61  ;;  %v4297_v61 = vpop.permute.xlu0 %1604 }
 0x176   : > { %1836 = vmatpush1.bf16.msra.mxu1 %v5265_v59  ;;  %v1599_v59 = vstv %s3077_s14 }
 0x177   : > { %1887 = vmatprep.subr.bf16.mxu1 %v5267_v62  ;;  %vm4300_vm0 = vcmp.gt.s32.totalorder %v4297_v61, %v1599_v59  ;;  %v5296_v59 = vld [vmem:[#allocation46_spill] sm:$0xff] }
 0x1c9   : > { %v1420_v63 = vpop.f32.mrb[0].mxu0 }
 0x1ca   : > { %v1422_v1 = vpop.f32.mrb[1].mxu0  ;;  %v1421_v10 = vadd.f32 %v1420_v63, %v1378_v7  ;;  %v1600_v63 = vstv %s1598_s25 }
 0x1cb   : > { %v1424_v3 = vpop.f32.mrb[2].mxu0  ;;  %v1423_v15 = vadd.f32 %v1422_v1, %v1379_v9  ;;  %vm1607_vm1 = vcmp.gt.s32.totalorder %v4297_v61, %v1600_v63  ;;  %v5298_v63 = vld [vmem:[#allocation48_spill] sm:$0xff] }
 0x1cc   : > { %v1461_v0 = vpop.f32.mrb[0].mxu1  ;;  %v1425_v5 = vpop.f32.mrb[3].mxu0  ;;  %v2839_v17 = vmul.f32 -1.442695, %v1421_v10 }
 0x1cd   : > { %v1463_v2 = vpop.f32.mrb[1].mxu1  ;;  %v1462_v12 = vadd.f32 %v1461_v0, %v1380_v8  ;;  %v2840_v19 = vmul.f32 -1.442695, %v1423_v15 }
 0x1ce   : > { %v1465_v4 = vpop.f32.mrb[2].mxu1  ;;  %v1464_v16 = vadd.f32 %v1463_v2, %v1381_v11  ;;  %2909 = vpow2.f32 %v2839_v17 }
 0x1cf   : > { %v1466_v6 = vpop.f32.mrb[3].mxu1  ;;  %v2841_v18 = vmul.f32 -1.442695, %v1462_v12 }
 0x1d0   : > { %v2842_v20 = vmul.f32 -1.442695, %v1464_v16  ;;  %v5305_v6 = vld [vmem:[#allocation55_spill] sm:$0xff] }
 0x1d1   : > { %2911 = vpow2.f32 %v2841_v18 }
 0x1d2   : > { %2913 = vpow2.f32 %v2840_v19 }
 0x1d3   : > { %2915 = vpow2.f32 %v2842_v20 }
 0x1d8   : > { %v2910_v21 = vpop.eup %2909 }
 0x1d9   : > { %v1556_v25 = vadd.f32 1.0, %v2910_v21 }
 0x1db   : > { %v2912_v22 = vpop.eup %2911  ;;  %2917 = vrcp.f32 %v1556_v25  ;;  %v5271_v25 = vld [vmem:[#allocation8_spill] sm:$0xff] }
 0x1dc   : > { %v2914_v23 = vpop.eup %2913  ;;  %v1568_v26 = vadd.f32 1.0, %v2912_v22 }
 0x1dd   : > { %v2916_v24 = vpop.eup %2915  ;;  %v1557_v27 = vadd.f32 1.0, %v2914_v23  ;;  %v5270_v23 = vld [vmem:[#allocation18_spill] sm:$0xff] }
 0x1de   : > { %v1569_v28 = vadd.f32 1.0, %v2916_v24  ;;  %2919 = vrcp.f32 %v1568_v26 }
 0x1df   : > { %2921 = vrcp.f32 %v1557_v27 }
 0x1e0   : > { %2923 = vrcp.f32 %v1569_v28 }
 0x1e5   : > { %v2918_v53 = vpop.eup %2917 }
 0x1e8   : > { %v2920_v54 = vpop.eup %2919 }
 0x1e9   : > { %v2922_v55 = vpop.eup %2921  ;;  %v1588_v1 = vmul.f32 %v2920_v54, %v1246_v56  ;;  %v5291_v54 = vld [vmem:[#allocation41_spill] sm:$0xff] }
 0x1ea   : > { %v2924_v57 = vpop.eup %2923 }
 0x1eb   : > { %v1589_v4 = vmul.f32 %v2924_v57, %v1247_v58  ;;  %v5294_v57 = vld [vmem:[#allocation44_spill] sm:$0xff] }
 0x209   : > { %v1502_v33 = vpop.f32.mrb[4].mxu0 }
 0x20a   : > { %v1503_v35 = vadd.f32 %v1502_v33, %v1382_v29  ;;  %v1504_v38 = vpop.f32.mrb[5].mxu0  ;;  %v5275_v33 = vld [vmem:[#allocation25_spill] sm:$0xff] }
 0x20b   : > { %v1505_v40 = vadd.f32 %v1504_v38, %v1383_v31  ;;  %v1506_v42 = vpop.f32.mrb[6].mxu0  ;;  %v5273_v31 = vld [vmem:[#allocation23_spill] sm:$0xff]  ;;  %v5279_v38 = vld [vmem:[#allocation29_spill] sm:$0xff] }
 0x20c   : > { %v1543_v34 = vpop.f32.mrb[4].mxu1  ;;  %2925 = vtanh.f32 %v1503_v35  ;;  %v1507_v50 = vpop.f32.mrb[7].mxu0  ;;  %v5277_v35 = vld [vmem:[#allocation27_spill] sm:$0xff]  ;;  %v5283_v42 = vld [vmem:[#allocation33_spill] sm:$0xff] }
 0x20d   : > { %v1544_v36 = vadd.f32 %v1543_v34, %v1384_v30  ;;  %v1545_v39 = vpop.f32.mrb[5].mxu1  ;;  %2927 = vtanh.f32 %v1505_v40  ;;  %v5272_v30 = vld [vmem:[#allocation22_spill] sm:$0xff]  ;;  %v5281_v40 = vld [vmem:[#allocation31_spill] sm:$0xff]  ;;  %v5287_v50 = vld [vmem:[#allocation37_spill] sm:$0xff] }
 0x20e   : > { %v1546_v41 = vadd.f32 %v1545_v39, %v1385_v32  ;;  %v1547_v43 = vpop.f32.mrb[6].mxu1  ;;  %v5274_v32 = vld [vmem:[#allocation24_spill] sm:$0xff]  ;;  %v5276_v34 = vld [vmem:[#allocation26_spill] sm:$0xff] }
 0x20f   : > { %v2843_v46 = vmul.f32 -1.442695, %v1544_v36  ;;  %v1548_v51 = vpop.f32.mrb[7].mxu1  ;;  %v5278_v36 = vld [vmem:[#allocation28_spill] sm:$0xff]  ;;  %v5280_v39 = vld [vmem:[#allocation30_spill] sm:$0xff] }
 0x210   : > { %v2844_v52 = vmul.f32 -1.442695, %v1546_v41  ;;  %v5282_v41 = vld [vmem:[#allocation32_spill] sm:$0xff]  ;;  %v5284_v43 = vld [vmem:[#allocation34_spill] sm:$0xff] }
 0x211   : > { %2929 = vpow2.f32 %v2843_v46  ;;  %v5285_v46 = vld [vmem:[#allocation35_spill] sm:$0xff]  ;;  %v5288_v51 = vld [vmem:[#allocation38_spill] sm:$0xff] }
 0x212   : > { %2931 = vpow2.f32 %v2844_v52  ;;  %v5289_v52 = vld [vmem:[#allocation39_spill] sm:$0xff] }
 0x216   : > { %v2926_v62 = vpop.eup %2925 }
 0x217   : > { %v2928_v0 = vpop.eup %2927  ;;  %v1590_v2 = vmul.f32 %v2926_v62, %v2918_v53  ;;  %v5290_v53 = vld [vmem:[#allocation40_spill] sm:$0xff]  ;;  %v5297_v62 = vld [vmem:[#allocation47_spill] sm:$0xff] }
 0x218   : > { %v1591_v5 = vmul.f32 %v2928_v0, %v2922_v55  ;;  %v5292_v55 = vld [vmem:[#allocation42_spill] sm:$0xff]  ;;  %v5299_v0 = vld [vmem:[#allocation49_spill] sm:$0xff] }
 0x219   : > { %v1592_v8 = vadd.f32 %v1590_v2, %v1588_v1  ;;  %v5300_v1 = vld [vmem:[#allocation50_spill] sm:$0xff]  ;;  %v5301_v2 = vld [vmem:[#allocation51_spill] sm:$0xff] }
 0x21a   : > { %v1593_v10 = vadd.f32 %v1591_v5, %v1589_v4  ;;  %v5303_v4 = vld [vmem:[#allocation53_spill] sm:$0xff]  ;;  %v5304_v5 = vld [vmem:[#allocation54_spill] sm:$0xff] }
 0x21b   : > { %v2930_v3 = vpop.eup %2929  ;;  %2933 = vtanh.f32 %v1592_v8  ;;  %v4307_v12 = vsel %vm4300_vm0, %v1592_v8, %v1246_v56  ;;  %v5293_v56 = vld [vmem:[#allocation43_spill] sm:$0xff]  ;;  %v5307_v8 = vld [vmem:[#allocation57_spill] sm:$0xff] }
 0x21c   : > { %v2932_v7 = vpop.eup %2931  ;;  %v1582_v9 = vadd.f32 1.0, %v2930_v3  ;;  %v4311_v15 = vsel %vm1607_vm1, %v1593_v10, %v1247_v58  ;;  %v5295_v58 = vld [vmem:[#allocation45_spill] sm:$0xff]  ;;  %v5302_v3 = vld [vmem:[#allocation52_spill] sm:$0xff] }
 0x21d   : > { %v1583_v11 = vadd.f32 1.0, %v2932_v7  ;;  %v5306_v7 = vld [vmem:[#allocation56_spill] sm:$0xff] }
 0x21e   : > { %2935 = vrcp.f32 %v1582_v9  ;;  %v5308_v9 = vld [vmem:[#allocation58_spill] sm:$0xff] }
 0x21f   : > { %2937 = vtanh.f32 %v1593_v10  ;;  %v5309_v10 = vld [vmem:[#allocation59_spill] sm:$0xff] }
 0x220   : > { %2939 = vrcp.f32 %v1583_v11  ;;  %v5310_v11 = vld [vmem:[#allocation60_spill] sm:$0xff] }
 0x225   : > { %v2934_v16 = vpop.eup %2933 }
 0x228   : > { %v2936_v17 = vpop.eup %2935 }
 0x229   : > { %v2938_v18 = vpop.eup %2937  ;;  %v1596_v19 = vmul.f32 %v2936_v17, %v2934_v16  ;;  %v5311_v16 = vld [vmem:[#allocation61_spill] sm:$0xff]  ;;  %v5312_v17 = vld [vmem:[#allocation62_spill] sm:$0xff] }
 0x22a   : > { %v2940_v20 = vpop.eup %2939 }
 0x22b   : > { %v1597_v21 = vmul.f32 %v2940_v20, %v2938_v18  ;;  %v1616_v22 = vsel %vm4300_vm0, %v1596_v19, 0.0  ;;  %v4318_v24 = vsel %vm4300_vm0, %v1596_v19, %v5270_v23  ;;  %v5313_v18 = vld [vmem:[#allocation63_spill] sm:$0xff]  ;;  %v5314_v19 = vld [vmem:[#allocation64_spill] sm:$0xff]  ;;  %v5315_v20 = vld [vmem:[#allocation65_spill] sm:$0xff] }
 0x22c   : > { %1618 = vst [vmem:[%s3089_s23] sm:$0xff] %v1616_v22  ;;  %v4333_v29 = vpack.c.bf16 %v4318_v24, %v4318_v24  ;;  %v5317_v22 = vld [vmem:[#allocation67_spill] sm:$0xff]  ;;  %v5318_v23 = vld [vmem:[#allocation68_spill] sm:$0xff] }
 0x22d   : > { %v4324_v26 = vsel %vm1607_vm1, %v1597_v21, %v5271_v25  ;;  %v1617_v27 = vsel %vm1607_vm1, %v1597_v21, 0.0  ;;  %v5316_v21 = vld [vmem:[#allocation66_spill] sm:$0xff]  ;;  %v5319_v25 = vld [vmem:[#allocation69_spill] sm:$0xff] }
 0x22e   : > { %1619 = vst [vmem:[%s3089_s23 + $0x8] sm:$0xff] %v1617_v27  ;;  %v1626_v28 = vpack.c.bf16 %v4324_v26, %v4324_v26  ;;  %v5320_v27 = vld [vmem:[#allocation70_spill] sm:$0xff] }
 0x230   : > { %1796 = vmatprep.mubr.bf16.mxu0 %v1626_v28  ;;  %1837 = vmatprep.mubr.bf16.mxu1 %v1626_v28 }
 0x231   : > { %1797 = vmatmul.mubr.bf16.vlgmr.msra.gmra.mrb[8].mxu0 %v4333_v29  ;;  %1838 = vmatmul.mubr.bf16.vlgmr.msra.gmra.mrb[8].mxu1 %v4333_v29 }
 0x232   : > { %1847 = vmatpush1.bf16.msra.mxu0 %v5272_v30  ;;  %1888 = vmatpush1.bf16.msra.mxu1 %v5273_v31  ;;  %v5322_v30 = vld [vmem:[#allocation72_spill] sm:$0xff]  ;;  %v5323_v31 = vld [vmem:[#allocation73_spill] sm:$0xff] }
 0x233   : > { %1878 = vmatprep.mubr.bf16.mxu0 %v1626_v28  ;;  %1919 = vmatprep.mubr.bf16.mxu1 %v1626_v28  ;;  %v5321_v28 = vld [vmem:[#allocation71_spill] sm:$0xff] }
 0x234   : > { %1848 = vmatprep.subr.bf16.mxu0 %v5274_v32  ;;  %1889 = vmatprep.subr.bf16.mxu1 %v5275_v33  ;;  %v5324_v32 = vld [vmem:[#allocation74_spill] sm:$0xff]  ;;  %v4403_v33 = vld [vmem:[#allocation2 + $0x18] sm:$0xff] }
 0x236   : > { %1849 = vmatpush1.bf16.msra.mxu0 %v4043_v13  ;;  %1890 = vmatpush1.bf16.msra.mxu1 %v5276_v34  ;;  %v5286_v13 = vld [vmem:[#allocation36_spill] sm:$0xff] }
 0x237   : > { %1850 = vmatprep.subr.bf16.mxu0 %v5277_v35  ;;  %1891 = vmatprep.subr.bf16.mxu1 %v5278_v36  ;;  %v4431_v34 = vld [vmem:[#allocation2 + $0x80] sm:$0xff]  ;;  %v4433_v35 = vld [vmem:[#allocation2 + $0x90] sm:$0xff]  ;;  %v4435_v36 = vld [vmem:[#allocation2 + $0xc8] sm:$0xff] }
 0x23a   : > { %1851 = vmatpush1.bf16.msra.mxu0 %v5279_v38  ;;  %1892 = vmatpush1.bf16.msra.mxu1 %v5280_v39  ;;  %v4437_v38 = vld [vmem:[#allocation2 + $0xd8] sm:$0xff]  ;;  %v4443_v39 = vld [vmem:[#allocation2 + $0xc0] sm:$0xff] }
 0x23b   : > { %1852 = vmatprep.subr.bf16.mxu0 %v5281_v40  ;;  %1893 = vmatprep.subr.bf16.mxu1 %v5282_v41  ;;  %v4445_v40 = vld [vmem:[#allocation2 + $0xd0] sm:$0xff]  ;;  %v4447_v41 = vld [vmem:[#allocation2 + $0x108] sm:$0xff] }
 0x23e   : > { %1853 = vmatpush1.bf16.msra.mxu0 %v5283_v42  ;;  %1894 = vmatpush1.bf16.msra.mxu1 %v5284_v43  ;;  %v4449_v42 = vld [vmem:[#allocation2 + $0x118] sm:$0xff]  ;;  %v4455_v43 = vld [vmem:[#allocation2 + $0x100] sm:$0xff] }
 0x23f   : > { %1854 = vmatprep.subr.bf16.mxu0 %v5285_v46  ;;  %1895 = vmatprep.subr.bf16.mxu1 %v5286_v13  ;;  %v4457_v46 = vld [vmem:[#allocation2 + $0x110] sm:$0xff]  ;;  %v4459_v13 = vld [vmem:[#allocation2 + $0x148] sm:$0xff] }
 0x242   : > { %1855 = vmatpush1.bf16.msra.mxu0 %v5287_v50  ;;  %1896 = vmatpush1.bf16.msra.mxu1 %v5288_v51  ;;  %v4461_v50 = vld [vmem:[#allocation2 + $0x158] sm:$0xff]  ;;  %v4467_v51 = vld [vmem:[#allocation2 + $0x140] sm:$0xff] }
 0x243   : > { %1856 = vmatprep.subr.bf16.mxu0 %v5289_v52  ;;  %1897 = vmatprep.subr.bf16.mxu1 %v5290_v53  ;;  %v4469_v52 = vld [vmem:[#allocation2 + $0x150] sm:$0xff]  ;;  %v4473_v53 = vld [vmem:[#allocation2 + $0x188] sm:$0xff] }
 0x246   : > { %1857 = vmatpush1.bf16.msra.mxu0 %v5291_v54  ;;  %1898 = vmatpush1.bf16.msra.mxu1 %v5292_v55  ;;  %v4475_v54 = vld [vmem:[#allocation2 + $0x198] sm:$0xff]  ;;  %v4479_v55 = vld [vmem:[#allocation2 + $0x180] sm:$0xff] }
 0x247   : > { %1858 = vmatprep.subr.bf16.mxu0 %v5293_v56  ;;  %1899 = vmatprep.subr.bf16.mxu1 %v5294_v57  ;;  %v4481_v56 = vld [vmem:[#allocation2 + $0x190] sm:$0xff]  ;;  %v4485_v57 = vld [vmem:[#allocation2 + $0x1c8] sm:$0xff] }
 0x24a   : > { %1859 = vmatpush1.bf16.msra.mxu0 %v5295_v58  ;;  %1900 = vmatpush1.bf16.msra.mxu1 %v5296_v59  ;;  %v4487_v58 = vld [vmem:[#allocation2 + $0x1d8] sm:$0xff]  ;;  %v4491_v59 = vld [vmem:[#allocation2 + $0x1c0] sm:$0xff] }
 0x24b   : > { %1860 = vmatprep.subr.bf16.mxu0 %v5297_v62  ;;  %1901 = vmatprep.subr.bf16.mxu1 %v5298_v63  ;;  %v4493_v62 = vld [vmem:[#allocation2 + $0x1d0] sm:$0xff]  ;;  %v4497_v63 = vld [vmem:[#allocation2 + $0x208] sm:$0xff] }
 0x24e   : > { %1861 = vmatpush1.bf16.msra.mxu0 %v5299_v0  ;;  %1902 = vmatpush1.bf16.msra.mxu1 %v5300_v1  ;;  %v4499_v0 = vld [vmem:[#allocation2 + $0x218] sm:$0xff]  ;;  %v4503_v1 = vld [vmem:[#allocation2 + $0x200] sm:$0xff] }
 0x24f   : > { %1862 = vmatprep.subr.bf16.mxu0 %v5301_v2  ;;  %1903 = vmatprep.subr.bf16.mxu1 %v5302_v3  ;;  %v4505_v2 = vld [vmem:[#allocation2 + $0x210] sm:$0xff]  ;;  %v4509_v3 = vld [vmem:[#allocation2 + $0x248] sm:$0xff] }
 0x250   : > { %5325 = vst [vmem:[#allocation9_spill] sm:$0xff] %v4509_v3 }
 0x252   : > { %1863 = vmatpush1.bf16.msra.mxu0 %v5303_v4  ;;  %1904 = vmatpush1.bf16.msra.mxu1 %v5304_v5  ;;  %v4511_v4 = vld [vmem:[#allocation2 + $0x258] sm:$0xff]  ;;  %v4515_v5 = vld [vmem:[#allocation2 + $0x240] sm:$0xff] }
 0x253   : > { %1864 = vmatprep.subr.bf16.mxu0 %v5305_v6  ;;  %1905 = vmatprep.subr.bf16.mxu1 %v5306_v7  ;;  %5326 = vst [vmem:[#allocation10_spill] sm:$0xff] %v4511_v4  ;;  %5327 = vst [vmem:[#allocation11_spill] sm:$0xff] %v4515_v5  ;;  %v4517_v6 = vld [vmem:[#allocation2 + $0x250] sm:$0xff]  ;;  %v4521_v7 = vld [vmem:[#allocation2 + $0x288] sm:$0xff] }
 0x254   : > { %5328 = vst [vmem:[#allocation12_spill] sm:$0xff] %v4517_v6  ;;  %5329 = vst [vmem:[#allocation13_spill] sm:$0xff] %v4521_v7 }
 0x256   : > { %1865 = vmatpush1.bf16.msra.mxu0 %v5307_v8  ;;  %1906 = vmatpush1.bf16.msra.mxu1 %v5308_v9  ;;  %v4523_v8 = vld [vmem:[#allocation2 + $0x298] sm:$0xff]  ;;  %v4527_v9 = vld [vmem:[#allocation2 + $0x280] sm:$0xff] }
 0x257   : > { %1866 = vmatprep.subr.bf16.mxu0 %v5309_v10  ;;  %1907 = vmatprep.subr.bf16.mxu1 %v5310_v11  ;;  %5330 = vst [vmem:[#allocation14_spill] sm:$0xff] %v4523_v8  ;;  %5331 = vst [vmem:[#allocation15_spill] sm:$0xff] %v4527_v9  ;;  %v4529_v10 = vld [vmem:[#allocation2 + $0x290] sm:$0xff]  ;;  %v4533_v11 = vld [vmem:[#allocation2 + $0x2c8] sm:$0xff] }
 0x258   : > { %5332 = vst [vmem:[#allocation16_spill] sm:$0xff] %v4529_v10  ;;  %5333 = vst [vmem:[#allocation17_spill] sm:$0xff] %v4533_v11 }
 0x25a   : > { %1867 = vmatpush1.bf16.msra.mxu0 %v5311_v16  ;;  %1908 = vmatpush1.bf16.msra.mxu1 %v5312_v17  ;;  %v4535_v16 = vld [vmem:[#allocation2 + $0x2d8] sm:$0xff]  ;;  %v4539_v17 = vld [vmem:[#allocation2 + $0x2c0] sm:$0xff] }
 0x25b   : > { %1868 = vmatprep.subr.bf16.mxu0 %v5313_v18  ;;  %1909 = vmatprep.subr.bf16.mxu1 %v5314_v19  ;;  %5334 = vst [vmem:[#allocation19_spill] sm:$0xff] %v4535_v16  ;;  %5335 = vst [vmem:[#allocation20_spill] sm:$0xff] %v4539_v17  ;;  %v4541_v18 = vld [vmem:[#allocation2 + $0x2d0] sm:$0xff]  ;;  %v4545_v19 = vld [vmem:[#allocation2 + $0x308] sm:$0xff] }
 0x25c   : > { %5336 = vst [vmem:[#allocation21_spill] sm:$0xff] %v4541_v18  ;;  %5337 = vst [vmem:[#allocation18_spill] sm:$0xff] %v4545_v19 }
 0x25e   : > { %1869 = vmatpush1.bf16.msra.mxu0 %v5315_v20  ;;  %1910 = vmatpush1.bf16.msra.mxu1 %v5316_v21  ;;  %v4547_v20 = vld [vmem:[#allocation2 + $0x318] sm:$0xff]  ;;  %v4551_v21 = vld [vmem:[#allocation2 + $0x300] sm:$0xff] }
 0x25f   : > { %1870 = vmatprep.subr.bf16.mxu0 %v5317_v22  ;;  %1911 = vmatprep.subr.bf16.mxu1 %v5318_v23  ;;  %5338 = vst [vmem:[#allocation8_spill] sm:$0xff] %v4547_v20  ;;  %5339 = vst [vmem:[#allocation22_spill] sm:$0xff] %v4551_v21  ;;  %v4553_v22 = vld [vmem:[#allocation2 + $0x310] sm:$0xff]  ;;  %v4557_v23 = vld [vmem:[#allocation2 + $0x348] sm:$0xff] }
 0x260   : > { %5340 = vst [vmem:[#allocation23_spill] sm:$0xff] %v4553_v22  ;;  %5341 = vst [vmem:[#allocation24_spill] sm:$0xff] %v4557_v23 }
 0x262   : > { %1871 = vmatpush1.bf16.msra.mxu0 %v5319_v25  ;;  %1912 = vmatpush1.bf16.msra.mxu1 %v5320_v27  ;;  %v4559_v25 = vld [vmem:[#allocation2 + $0x358] sm:$0xff]  ;;  %v4563_v27 = vld [vmem:[#allocation2 + $0x340] sm:$0xff] }
 0x263   : > { %1872 = vmatprep.subr.bf16.mxu0 %v5321_v28  ;;  %1913 = vmatprep.subr.bf16.mxu1 %v5322_v30  ;;  %5342 = vst [vmem:[#allocation25_spill] sm:$0xff] %v4559_v25  ;;  %5343 = vst [vmem:[#allocation26_spill] sm:$0xff] %v4563_v27  ;;  %v4565_v28 = vld [vmem:[#allocation2 + $0x350] sm:$0xff]  ;;  %v4569_v30 = vld [vmem:[#allocation2 + $0x388] sm:$0xff] }
 0x264   : > { %5344 = vst [vmem:[#allocation27_spill] sm:$0xff] %v4565_v28  ;;  %5345 = vst [vmem:[#allocation28_spill] sm:$0xff] %v4569_v30 }
 0x266   : > { %1873 = vmatpush1.bf16.msra.mxu0 %v4189_v45  ;;  %1914 = vmatpush1.bf16.msra.mxu1 %v5323_v31  ;;  %v4401_v45 = vld [vmem:[#allocation2 + $0x8] sm:$0xff]  ;;  %v4571_v31 = vld [vmem:[#allocation2 + $0x398] sm:$0xff] }
 0x267   : > { %1874 = vmatprep.subr.bf16.mxu0 %v5324_v32  ;;  %1915 = vmatprep.subr.bf16.mxu1 %v4195_v14  ;;  %v4405_v14 = vld [vmem:[#allocation2] sm:$0xff]  ;;  %5346 = vst [vmem:[#allocation29_spill] sm:$0xff] %v4571_v31 }
 0x268   : > { %v4575_v32 = vld [vmem:[#allocation2 + $0x380] sm:$0xff] }
 0x269   : > { %5347 = vst [vmem:[#allocation30_spill] sm:$0xff] %v4575_v32 }
 0x26a   : > { %1875 = vmatpush1.bf16.msra.mxu0 %v4201_v60  ;;  %1916 = vmatpush1.bf16.msra.mxu1 %v4203_v37  ;;  %v4421_v60 = vld [vmem:[#allocation2 + $0x50] sm:$0xff]  ;;  %v4423_v37 = vld [vmem:[#allocation2 + $0x88] sm:$0xff] }
 0x26b   : > { %1876 = vmatprep.subr.bf16.mxu0 %v4205_v48  ;;  %1917 = vmatprep.subr.bf16.mxu1 %v4207_v49  ;;  %v4409_v48 = vld [vmem:[#allocation2 + $0x10] sm:$0xff]  ;;  %v4411_v49 = vld [vmem:[#allocation2 + $0x48] sm:$0xff] }
 0x26e   : > { %1877 = vmatpush1.bf16.msra.mxu0 %v4213_v47  ;;  %1918 = vmatpush1.bf16.msra.mxu1 %v4215_v44  ;;  %v4413_v47 = vld [vmem:[#allocation2 + $0x58] sm:$0xff]  ;;  %v4419_v44 = vld [vmem:[#allocation2 + $0x40] sm:$0xff] }
 0x26f   : > { %2140 = vmatprep.subr.bf16.mxu0 %v4401_v45  ;;  %2181 = vmatprep.subr.bf16.mxu1 %v4403_v33 }
 0x271   : > { %1879 = vmatmul.mubr.bf16.vlgmr.msra.gmra.mrb[12].mxu0 %v4333_v29  ;;  %1920 = vmatmul.mubr.bf16.vlgmr.msra.gmra.mrb[12].mxu1 %v4333_v29  ;;  %v4425_v29 = vld [vmem:[#allocation2 + $0x98] sm:$0xff] }
 0x272   : > { %2141 = vmatpush1.bf16.msra.mxu0 %v4405_v14  ;;  %2182 = vmatpush1.bf16.msra.mxu1 %v4409_v48 }
 0x273   : > { %2142 = vmatprep.subr.bf16.mxu0 %v4411_v49  ;;  %2183 = vmatprep.subr.bf16.mxu1 %v4413_v47 }
 0x276   : > { %2143 = vmatpush1.bf16.msra.mxu0 %v4419_v44  ;;  %2184 = vmatpush1.bf16.msra.mxu1 %v4421_v60 }
 0x277   : > { %2144 = vmatprep.subr.bf16.mxu0 %v4423_v37  ;;  %2185 = vmatprep.subr.bf16.mxu1 %v4425_v29 }
 0x27a   : > { %2145 = vmatpush1.bf16.msra.mxu0 %v4431_v34  ;;  %2186 = vmatpush1.bf16.msra.mxu1 %v4433_v35 }
 0x27b   : > { %2146 = vmatprep.subr.bf16.mxu0 %v4435_v36  ;;  %2187 = vmatprep.subr.bf16.mxu1 %v4437_v38 }
 0x27e   : > { %2147 = vmatpush1.bf16.msra.mxu0 %v4443_v39  ;;  %2188 = vmatpush1.bf16.msra.mxu1 %v4445_v40 }
 0x27f   : > { %2148 = vmatprep.subr.bf16.mxu0 %v4447_v41  ;;  %2189 = vmatprep.subr.bf16.mxu1 %v4449_v42 }
 0x282   : > { %2149 = vmatpush1.bf16.msra.mxu0 %v4455_v43  ;;  %2190 = vmatpush1.bf16.msra.mxu1 %v4457_v46 }
 0x283   : > { %2150 = vmatprep.subr.bf16.mxu0 %v4459_v13  ;;  %2191 = vmatprep.subr.bf16.mxu1 %v4461_v50 }
 0x286   : > { %2151 = vmatpush1.bf16.msra.mxu0 %v4467_v51  ;;  %2192 = vmatpush1.bf16.msra.mxu1 %v4469_v52 }
 0x287   : > { %2152 = vmatprep.subr.bf16.mxu0 %v4473_v53  ;;  %2193 = vmatprep.subr.bf16.mxu1 %v4475_v54 }
 0x28a   : > { %2153 = vmatpush1.bf16.msra.mxu0 %v4479_v55  ;;  %2194 = vmatpush1.bf16.msra.mxu1 %v4481_v56 }
 0x28b   : > { %2154 = vmatprep.subr.bf16.mxu0 %v4485_v57  ;;  %2195 = vmatprep.subr.bf16.mxu1 %v4487_v58 }
 0x28e   : > { %2155 = vmatpush1.bf16.msra.mxu0 %v4491_v59  ;;  %2196 = vmatpush1.bf16.msra.mxu1 %v4493_v62 }
 0x28f   : > { %2156 = vmatprep.subr.bf16.mxu0 %v4497_v63  ;;  %2197 = vmatprep.subr.bf16.mxu1 %v4499_v0 }
 0x292   : > { %2157 = vmatpush1.bf16.msra.mxu0 %v4503_v1  ;;  %2198 = vmatpush1.bf16.msra.mxu1 %v4505_v2 }
 0x293   : > { %2158 = vmatprep.subr.bf16.mxu0 %v4509_v3  ;;  %2199 = vmatprep.subr.bf16.mxu1 %v4511_v4 }
 0x296   : > { %2159 = vmatpush1.bf16.msra.mxu0 %v4515_v5  ;;  %2200 = vmatpush1.bf16.msra.mxu1 %v4517_v6 }
 0x297   : > { %2160 = vmatprep.subr.bf16.mxu0 %v4521_v7  ;;  %2201 = vmatprep.subr.bf16.mxu1 %v4523_v8  ;;  %v2852_v7 = vld [vmem:[%s3084_s20 + $0x78] sm:$0xff] }
 0x29a   : > { %2161 = vmatpush1.bf16.msra.mxu0 %v4527_v9  ;;  %2202 = vmatpush1.bf16.msra.mxu1 %v4529_v10 }
 0x29b   : > { %2162 = vmatprep.subr.bf16.mxu0 %v4533_v11  ;;  %2203 = vmatprep.subr.bf16.mxu1 %v4535_v16 }
 0x29e   : > { %2163 = vmatpush1.bf16.msra.mxu0 %v4539_v17  ;;  %2204 = vmatpush1.bf16.msra.mxu1 %v4541_v18 }
 0x29f   : > { %2164 = vmatprep.subr.bf16.mxu0 %v4545_v19  ;;  %2205 = vmatprep.subr.bf16.mxu1 %v4547_v20 }
 0x2a2   : > { %2165 = vmatpush1.bf16.msra.mxu0 %v4551_v21  ;;  %2206 = vmatpush1.bf16.msra.mxu1 %v4553_v22 }
 0x2a3   : > { %2166 = vmatprep.subr.bf16.mxu0 %v4557_v23  ;;  %2207 = vmatprep.subr.bf16.mxu1 %v4559_v25  ;;  %v4577_v25 = vld [vmem:[#allocation2 + $0x390] sm:$0xff]  ;;  %v4593_v23 = vld [vmem:[#allocation2 + $0x28] sm:$0xff] }
 0x2a4   : > { %5348 = vst [vmem:[#allocation31_spill] sm:$0xff] %v4577_v25  ;;  %5353 = vst [vmem:[#allocation36_spill] sm:$0xff] %v4593_v23 }
 0x2a6   : > { %2167 = vmatpush1.bf16.msra.mxu0 %v4563_v27  ;;  %2208 = vmatpush1.bf16.msra.mxu1 %v4565_v28  ;;  %v4581_v27 = vld [vmem:[#allocation2 + $0x3c8] sm:$0xff]  ;;  %v4583_v28 = vld [vmem:[#allocation2 + $0x3d8] sm:$0xff] }
 0x2a7   : > { %2168 = vmatprep.subr.bf16.mxu0 %v4569_v30  ;;  %2209 = vmatprep.subr.bf16.mxu1 %v4571_v31  ;;  %5349 = vst [vmem:[#allocation32_spill] sm:$0xff] %v4581_v27  ;;  %5350 = vst [vmem:[#allocation33_spill] sm:$0xff] %v4583_v28  ;;  %v4587_v30 = vld [vmem:[#allocation2 + $0x3c0] sm:$0xff]  ;;  %v4589_v31 = vld [vmem:[#allocation2 + $0x3d0] sm:$0xff] }
 0x2a8   : > { %5351 = vst [vmem:[#allocation34_spill] sm:$0xff] %v4587_v30  ;;  %5352 = vst [vmem:[#allocation35_spill] sm:$0xff] %v4589_v31 }
 0x2aa   : > { %2169 = vmatpush1.bf16.msra.mxu0 %v4575_v32  ;;  %2210 = vmatpush1.bf16.msra.mxu1 %v4577_v25  ;;  %v4595_v32 = vld [vmem:[#allocation2 + $0x38] sm:$0xff]  ;;  %v2847_v25 = vld [vmem:[%s3084_s20 + $0x50] sm:$0xff] }
 0x2ab   : > { %2170 = vmatprep.subr.bf16.mxu0 %v4581_v27  ;;  %2211 = vmatprep.subr.bf16.mxu1 %v4583_v28  ;;  %5354 = vst [vmem:[#allocation37_spill] sm:$0xff] %v4595_v32  ;;  %v2848_v27 = vld [vmem:[%s3084_s20 + $0x58] sm:$0xff] }
 0x2ae   : > { %2171 = vmatpush1.bf16.msra.mxu0 %v4587_v30  ;;  %2212 = vmatpush1.bf16.msra.mxu1 %v4589_v31 }
 0x2af   : > { %2222 = vmatprep.subr.bf16.mxu0 %v4593_v23  ;;  %2263 = vmatprep.subr.bf16.mxu1 %v4595_v32 }
 0x304   : > { %v1798_v22 = vpop.f32.mrb[8].mxu0  ;;  %v1839_v28 = vpop.f32.mrb[8].mxu1 }
 0x305   : > { %v1840_v21 = vadd.f32 %v2847_v25, %v1839_v28  ;;  %v1800_v20 = vpop.f32.mrb[9].mxu0  ;;  %v1841_v19 = vpop.f32.mrb[9].mxu1 }
 0x306   : > { %v1842_v18 = vadd.f32 %v2848_v27, %v1841_v19  ;;  %v1802_v17 = vpop.f32.mrb[10].mxu0  ;;  %v1843_v30 = vpop.f32.mrb[10].mxu1 }
 0x307   : > { %v2855_v16 = vmul.f32 -1.442695, %v1840_v21  ;;  %v1803_v31 = vpop.f32.mrb[11].mxu0  ;;  %v1844_v11 = vpop.f32.mrb[11].mxu1 }
 0x308   : > { %v2856_v10 = vmul.f32 -1.442695, %v1842_v18  ;;  %v2845_v11 = vld [vmem:[%s3084_s20 + $0x40] sm:$0xff]  ;;  %v2846_v18 = vld [vmem:[%s3084_s20 + $0x48] sm:$0xff] }
 0x309   : > { %2941 = vpow2.f32 %v2855_v16  ;;  %v1799_v16 = vadd.f32 %v2845_v11, %v1798_v22  ;;  %v2849_v31 = vld [vmem:[%s3084_s20 + $0x60] sm:$0xff] }
 0x30a   : > { %2943 = vpow2.f32 %v2856_v10  ;;  %v1801_v10 = vadd.f32 %v2846_v18, %v1800_v20 }
 0x30b   : > { %v2853_v27 = vmul.f32 -1.442695, %v1799_v16 }
 0x313   : > { %v2942_v23 = vpop.eup %2941 }
 0x314   : > { %v1946_v32 = vadd.f32 1.0, %v2942_v23  ;;  %v2944_v9 = vpop.eup %2943  ;;  %v2854_v23 = vmul.f32 -1.442695, %v1801_v10 }
 0x315   : > { %v1947_v8 = vadd.f32 1.0, %v2944_v9 }
 0x316   : > { %2945 = vrcp.f32 %v1946_v32  ;;  %v2851_v32 = vld [vmem:[%s3084_s20 + $0x70] sm:$0xff] }
 0x317   : > { %2947 = vrcp.f32 %v1947_v8 }
 0x318   : > { %2949 = vpow2.f32 %v2853_v27 }
 0x319   : > { %2951 = vpow2.f32 %v2854_v23 }
 0x320   : > { %v2946_v25 = vpop.eup %2945 }
 0x321   : > { %v1966_v19 = vmul.f32 %v2946_v25, %v4307_v12  ;;  %v2948_v17 = vpop.eup %2947  ;;  %v2850_v25 = vld [vmem:[%s3084_s20 + $0x68] sm:$0xff] }
 0x322   : > { %v1967_v21 = vmul.f32 %v2948_v17, %v4311_v15  ;;  %v2950_v9 = vpop.eup %2949 }
 0x323   : > { %v2952_v8 = vpop.eup %2951  ;;  %v1934_v28 = vadd.f32 1.0, %v2950_v9 }
 0x324   : > { %v1935_v30 = vadd.f32 1.0, %v2952_v8 }
 0x325   : > { %2953 = vrcp.f32 %v1934_v28 }
 0x326   : > { %2955 = vrcp.f32 %v1935_v30  ;;  %v1977_v30 = vstv %s1620_s26 }
 0x327   : > { %vm1981_vm2 = vcmp.gt.s32.totalorder %v4297_v61, %v1977_v30  ;;  %v4653_v30 = vld [vmem:[#allocation2 + $0x78] sm:$0xff] }
 0x32f   : > { %v2954_v8 = vpop.eup %2953 }
 0x344   : > { %v1880_v6 = vpop.f32.mrb[12].mxu0  ;;  %v1921_v5 = vpop.f32.mrb[12].mxu1 }
 0x345   : > { %v1881_v17 = vadd.f32 %v2849_v31, %v1880_v6  ;;  %v1922_v4 = vadd.f32 %v2851_v32, %v1921_v5  ;;  %v1882_v3 = vpop.f32.mrb[13].mxu0  ;;  %v1923_v20 = vpop.f32.mrb[13].mxu1 }
 0x346   : > { %v1883_v22 = vadd.f32 %v2850_v25, %v1882_v3  ;;  %v1924_v11 = vadd.f32 %v2852_v7, %v1923_v20  ;;  %v1884_v18 = vpop.f32.mrb[14].mxu0  ;;  %v1925_v16 = vpop.f32.mrb[14].mxu1  ;;  %v1978_v7 = vstv %s1976_s27 }
 0x347   : > { %2957 = vtanh.f32 %v1881_v17  ;;  %v2857_v10 = vmul.f32 -1.442695, %v1922_v4  ;;  %v1885_v27 = vpop.f32.mrb[15].mxu0  ;;  %v1926_v23 = vpop.f32.mrb[15].mxu1  ;;  %vm1982_vm3 = vcmp.gt.s32.totalorder %v4297_v61, %v1978_v7  ;;  %v4663_v7 = vld [vmem:[#allocation2 + $0xa8] sm:$0xff] }
 0x348   : > { %2959 = vtanh.f32 %v1883_v22  ;;  %v2858_v9 = vmul.f32 -1.442695, %v1924_v11  ;;  %v2956_v5 = vpop.eup %2955 }
 0x349   : > { %2961 = vpow2.f32 %v2857_v10 }
 0x34a   : > { %2963 = vpow2.f32 %v2858_v9 }
 0x351   : > { %v2958_v6 = vpop.eup %2957 }
 0x352   : > { %v2960_v28 = vpop.eup %2959  ;;  %v1968_v31 = vmul.f32 %v2958_v6, %v2954_v8  ;;  %v4645_v6 = vld [vmem:[#allocation2 + $0x20] sm:$0xff] }
 0x353   : > { %v2962_v3 = vpop.eup %2961  ;;  %v1969_v32 = vmul.f32 %v2960_v28, %v2956_v5  ;;  %v4647_v28 = vld [vmem:[#allocation2 + $0x30] sm:$0xff] }
 0x354   : > { %v2964_v25 = vpop.eup %2963  ;;  %v1970_v17 = vadd.f32 %v1968_v31, %v1966_v19  ;;  %v1960_v4 = vadd.f32 1.0, %v2962_v3  ;;  %v4657_v31 = vld [vmem:[#allocation2 + $0x60] sm:$0xff]  ;;  %v4659_v3 = vld [vmem:[#allocation2 + $0x70] sm:$0xff] }
 0x355   : > { %v1971_v20 = vadd.f32 %v1969_v32, %v1967_v21  ;;  %v1961_v22 = vadd.f32 1.0, %v2964_v25  ;;  %v4665_v32 = vld [vmem:[#allocation2 + $0xb8] sm:$0xff]  ;;  %v4671_v25 = vld [vmem:[#allocation2 + $0xa0] sm:$0xff] }
 0x356   : > { %2965 = vtanh.f32 %v1970_v17  ;;  %v4616_v11 = vsel %vm1981_vm2, %v1970_v17, %v4307_v12  ;;  %v4673_v17 = vld [vmem:[#allocation2 + $0xb0] sm:$0xff] }
 0x357   : > { %2967 = vrcp.f32 %v1960_v4  ;;  %v4621_v19 = vsel %vm1982_vm3, %v1971_v20, %v4311_v15  ;;  %v4675_v4 = vld [vmem:[#allocation2 + $0xe8] sm:$0xff] }
 0x358   : > { %2969 = vtanh.f32 %v1971_v20  ;;  %v4677_v20 = vld [vmem:[#allocation2 + $0xf8] sm:$0xff] }
 0x359   : > { %2971 = vrcp.f32 %v1961_v22  ;;  %v4683_v22 = vld [vmem:[#allocation2 + $0xe0] sm:$0xff] }
 0x360   : > { %v2966_v21 = vpop.eup %2965 }
 0x361   : > { %v2968_v18 = vpop.eup %2967 }
 0x362   : > { %v2970_v16 = vpop.eup %2969  ;;  %v1974_v10 = vmul.f32 %v2968_v18, %v2966_v21  ;;  %v4685_v21 = vld [vmem:[#allocation2 + $0xf0] sm:$0xff]  ;;  %v4687_v18 = vld [vmem:[#allocation2 + $0x128] sm:$0xff] }
 0x363   : > { %v2972_v27 = vpop.eup %2971  ;;  %5355 = vst [vmem:[#allocation38_spill] sm:$0xff] %v4687_v18 }
 0x364   : > { %v4626_v23 = vsel %vm1981_vm2, %v1974_v10, %v4318_v24  ;;  %v1991_v12 = vsel %vm1981_vm2, %v1974_v10, 0.0  ;;  %v1975_v9 = vmul.f32 %v2972_v27, %v2970_v16  ;;  %v4689_v16 = vld [vmem:[#allocation2 + $0x138] sm:$0xff]  ;;  %v4695_v10 = vld [vmem:[#allocation2 + $0x120] sm:$0xff]  ;;  %v4697_v27 = vld [vmem:[#allocation2 + $0x130] sm:$0xff] }
 0x365   : > { %2859 = vst [vmem:[%s3089_s23 + $0x10] sm:$0xff] %v1991_v12  ;;  %v4643_v24 = vpack.c.bf16 %v4626_v23, %v4626_v23  ;;  %5356 = vst [vmem:[#allocation39_spill] sm:$0xff] %v4689_v16  ;;  %v4699_v12 = vld [vmem:[#allocation2 + $0x168] sm:$0xff] }
 0x366   : > { %v4634_v15 = vsel %vm1982_vm3, %v1975_v9, %v4324_v26  ;;  %v1992_v8 = vsel %vm1982_vm3, %v1975_v9, 0.0  ;;  %v4651_v26 = vld [vmem:[#allocation2 + $0x68] sm:$0xff]  ;;  %5357 = vst [vmem:[#allocation40_spill] sm:$0xff] %v4695_v10  ;;  %5358 = vst [vmem:[#allocation41_spill] sm:$0xff] %v4697_v27  ;;  %v4701_v9 = vld [vmem:[#allocation2 + $0x178] sm:$0xff] }
 0x367   : > { %2860 = vst [vmem:[%s3089_s23 + $0x18] sm:$0xff] %v1992_v8  ;;  %v2002_v5 = vpack.c.bf16 %v4634_v15, %v4634_v15  ;;  %5359 = vst [vmem:[#allocation42_spill] sm:$0xff] %v4699_v12  ;;  %v4707_v8 = vld [vmem:[#allocation2 + $0x160] sm:$0xff] }
 0x368   : > { %5360 = vst [vmem:[#allocation43_spill] sm:$0xff] %v4701_v9  ;;  %5361 = vst [vmem:[#allocation44_spill] sm:$0xff] %v4707_v8 }
 0x369   : > { %2172 = vmatprep.mubr.bf16.mxu0 %v2002_v5  ;;  %2213 = vmatprep.mubr.bf16.mxu1 %v2002_v5 }
 0x36a   : > { %2173 = vmatmul.mubr.bf16.vlgmr.msra.gmra.mrb[16].mxu0 %v4643_v24  ;;  %2214 = vmatmul.mubr.bf16.vlgmr.msra.gmra.mrb[16].mxu1 %v4643_v24 }
 0x36b   : > { %2223 = vmatpush1.bf16.msra.mxu0 %v4645_v6  ;;  %2264 = vmatpush1.bf16.msra.mxu1 %v4647_v28 }
 0x36c   : > { %2254 = vmatprep.mubr.bf16.mxu0 %v2002_v5  ;;  %2295 = vmatprep.mubr.bf16.mxu1 %v2002_v5  ;;  %v4709_v5 = vld [vmem:[#allocation2 + $0x170] sm:$0xff] }
 0x36d   : > { %2224 = vmatprep.subr.bf16.mxu0 %v4651_v26  ;;  %2265 = vmatprep.subr.bf16.mxu1 %v4653_v30  ;;  %5362 = vst [vmem:[#allocation45_spill] sm:$0xff] %v4709_v5 }
 0x36f   : > { %2225 = vmatpush1.bf16.msra.mxu0 %v4657_v31  ;;  %2266 = vmatpush1.bf16.msra.mxu1 %v4659_v3 }
 0x370   : > { %2226 = vmatprep.subr.bf16.mxu0 %v4663_v7  ;;  %2267 = vmatprep.subr.bf16.mxu1 %v4665_v32 }
 0x373   : > { %2227 = vmatpush1.bf16.msra.mxu0 %v4671_v25  ;;  %2268 = vmatpush1.bf16.msra.mxu1 %v4673_v17 }
 0x374   : > { %2228 = vmatprep.subr.bf16.mxu0 %v4675_v4  ;;  %2269 = vmatprep.subr.bf16.mxu1 %v4677_v20 }
 0x377   : > { %2229 = vmatpush1.bf16.msra.mxu0 %v4683_v22  ;;  %2270 = vmatpush1.bf16.msra.mxu1 %v4685_v21 }
 0x378   : > { %2230 = vmatprep.subr.bf16.mxu0 %v4687_v18  ;;  %2271 = vmatprep.subr.bf16.mxu1 %v4689_v16  ;;  %v4711_v16 = vld [vmem:[#allocation2 + $0x1a8] sm:$0xff]  ;;  %v4713_v18 = vld [vmem:[#allocation2 + $0x1b8] sm:$0xff] }
 0x379   : > { %5363 = vst [vmem:[#allocation46_spill] sm:$0xff] %v4711_v16  ;;  %5364 = vst [vmem:[#allocation47_spill] sm:$0xff] %v4713_v18 }
 0x37b   : > { %2231 = vmatpush1.bf16.msra.mxu0 %v4695_v10  ;;  %2272 = vmatpush1.bf16.msra.mxu1 %v4697_v27  ;;  %v4719_v27 = vld [vmem:[#allocation2 + $0x1a0] sm:$0xff]  ;;  %v4725_v10 = vld [vmem:[#allocation2 + $0x1f8] sm:$0xff] }
 0x37c   : > { %2232 = vmatprep.subr.bf16.mxu0 %v4699_v12  ;;  %2273 = vmatprep.subr.bf16.mxu1 %v4701_v9  ;;  %5365 = vst [vmem:[#allocation48_spill] sm:$0xff] %v4719_v27  ;;  %v4721_v12 = vld [vmem:[#allocation2 + $0x1b0] sm:$0xff]  ;;  %v4723_v9 = vld [vmem:[#allocation2 + $0x1e8] sm:$0xff]  ;;  %5368 = vst [vmem:[#allocation51_spill] sm:$0xff] %v4725_v10 }
 0x37d   : > { %5366 = vst [vmem:[#allocation49_spill] sm:$0xff] %v4721_v12  ;;  %5367 = vst [vmem:[#allocation50_spill] sm:$0xff] %v4723_v9 }
 0x37f   : > { %2233 = vmatpush1.bf16.msra.mxu0 %v4707_v8  ;;  %2274 = vmatpush1.bf16.msra.mxu1 %v4709_v5  ;;  %v4731_v5 = vld [vmem:[#allocation2 + $0x1e0] sm:$0xff]  ;;  %v4737_v8 = vld [vmem:[#allocation2 + $0x238] sm:$0xff] }
 0x380   : > { %2234 = vmatprep.subr.bf16.mxu0 %v4711_v16  ;;  %2275 = vmatprep.subr.bf16.mxu1 %v4713_v18  ;;  %5369 = vst [vmem:[#allocation52_spill] sm:$0xff] %v4731_v5  ;;  %v4733_v16 = vld [vmem:[#allocation2 + $0x1f0] sm:$0xff]  ;;  %v4735_v18 = vld [vmem:[#allocation2 + $0x228] sm:$0xff]  ;;  %5372 = vst [vmem:[#allocation55_spill] sm:$0xff] %v4737_v8 }
 0x381   : > { %5370 = vst [vmem:[#allocation53_spill] sm:$0xff] %v4733_v16  ;;  %5371 = vst [vmem:[#allocation54_spill] sm:$0xff] %v4735_v18 }
 0x383   : > { %2235 = vmatpush1.bf16.msra.mxu0 %v4719_v27  ;;  %2276 = vmatpush1.bf16.msra.mxu1 %v4721_v12  ;;  %v4743_v12 = vld [vmem:[#allocation2 + $0x220] sm:$0xff]  ;;  %v4749_v27 = vld [vmem:[#allocation2 + $0x278] sm:$0xff] }
 0x384   : > { %2236 = vmatprep.subr.bf16.mxu0 %v4723_v9  ;;  %2277 = vmatprep.subr.bf16.mxu1 %v4725_v10  ;;  %5373 = vst [vmem:[#allocation56_spill] sm:$0xff] %v4743_v12  ;;  %v4745_v9 = vld [vmem:[#allocation2 + $0x230] sm:$0xff]  ;;  %v4747_v10 = vld [vmem:[#allocation2 + $0x268] sm:$0xff]  ;;  %5376 = vst [vmem:[#allocation59_spill] sm:$0xff] %v4749_v27 }
 0x385   : > { %5374 = vst [vmem:[#allocation57_spill] sm:$0xff] %v4745_v9  ;;  %5375 = vst [vmem:[#allocation58_spill] sm:$0xff] %v4747_v10 }
 0x387   : > { %2237 = vmatpush1.bf16.msra.mxu0 %v4731_v5  ;;  %2278 = vmatpush1.bf16.msra.mxu1 %v4733_v16  ;;  %v4755_v16 = vld [vmem:[#allocation2 + $0x260] sm:$0xff]  ;;  %v4761_v5 = vld [vmem:[#allocation2 + $0x2b8] sm:$0xff] }
 0x388   : > { %2238 = vmatprep.subr.bf16.mxu0 %v4735_v18  ;;  %2279 = vmatprep.subr.bf16.mxu1 %v4737_v8  ;;  %5377 = vst [vmem:[#allocation60_spill] sm:$0xff] %v4755_v16  ;;  %v4757_v18 = vld [vmem:[#allocation2 + $0x270] sm:$0xff]  ;;  %v4759_v8 = vld [vmem:[#allocation2 + $0x2a8] sm:$0xff]  ;;  %5380 = vst [vmem:[#allocation63_spill] sm:$0xff] %v4761_v5 }
 0x389   : > { %5378 = vst [vmem:[#allocation61_spill] sm:$0xff] %v4757_v18  ;;  %5379 = vst [vmem:[#allocation62_spill] sm:$0xff] %v4759_v8 }
 0x38b   : > { %2239 = vmatpush1.bf16.msra.mxu0 %v4743_v12  ;;  %2280 = vmatpush1.bf16.msra.mxu1 %v4745_v9  ;;  %v4767_v9 = vld [vmem:[#allocation2 + $0x2a0] sm:$0xff]  ;;  %v4773_v12 = vld [vmem:[#allocation2 + $0x2f8] sm:$0xff] }
 0x38c   : > { %2240 = vmatprep.subr.bf16.mxu0 %v4747_v10  ;;  %2281 = vmatprep.subr.bf16.mxu1 %v4749_v27  ;;  %5381 = vst [vmem:[#allocation64_spill] sm:$0xff] %v4767_v9  ;;  %v4769_v10 = vld [vmem:[#allocation2 + $0x2b0] sm:$0xff]  ;;  %v4771_v27 = vld [vmem:[#allocation2 + $0x2e8] sm:$0xff]  ;;  %5384 = vst [vmem:[#allocation67_spill] sm:$0xff] %v4773_v12 }
 0x38d   : > { %5382 = vst [vmem:[#allocation65_spill] sm:$0xff] %v4769_v10  ;;  %5383 = vst [vmem:[#allocation66_spill] sm:$0xff] %v4771_v27 }
 0x38f   : > { %2241 = vmatpush1.bf16.msra.mxu0 %v4755_v16  ;;  %2282 = vmatpush1.bf16.msra.mxu1 %v4757_v18  ;;  %v4779_v18 = vld [vmem:[#allocation2 + $0x2e0] sm:$0xff]  ;;  %v4785_v16 = vld [vmem:[#allocation2 + $0x338] sm:$0xff] }
 0x390   : > { %2242 = vmatprep.subr.bf16.mxu0 %v4759_v8  ;;  %2283 = vmatprep.subr.bf16.mxu1 %v4761_v5  ;;  %5385 = vst [vmem:[#allocation68_spill] sm:$0xff] %v4779_v18  ;;  %v4781_v8 = vld [vmem:[#allocation2 + $0x2f0] sm:$0xff]  ;;  %v4783_v5 = vld [vmem:[#allocation2 + $0x328] sm:$0xff]  ;;  %5388 = vst [vmem:[#allocation71_spill] sm:$0xff] %v4785_v16 }
 0x391   : > { %5386 = vst [vmem:[#allocation69_spill] sm:$0xff] %v4781_v8  ;;  %5387 = vst [vmem:[#allocation70_spill] sm:$0xff] %v4783_v5 }
 0x393   : > { %2243 = vmatpush1.bf16.msra.mxu0 %v4767_v9  ;;  %2284 = vmatpush1.bf16.msra.mxu1 %v4769_v10  ;;  %v4791_v10 = vld [vmem:[#allocation2 + $0x320] sm:$0xff]  ;;  %v4797_v9 = vld [vmem:[#allocation2 + $0x378] sm:$0xff] }
 0x394   : > { %2244 = vmatprep.subr.bf16.mxu0 %v4771_v27  ;;  %2285 = vmatprep.subr.bf16.mxu1 %v4773_v12  ;;  %5389 = vst [vmem:[#allocation72_spill] sm:$0xff] %v4791_v10  ;;  %v4793_v27 = vld [vmem:[#allocation2 + $0x330] sm:$0xff]  ;;  %v4795_v12 = vld [vmem:[#allocation2 + $0x368] sm:$0xff]  ;;  %5392 = vst [vmem:[#allocation75_spill] sm:$0xff] %v4797_v9 }
 0x395   : > { %5390 = vst [vmem:[#allocation73_spill] sm:$0xff] %v4793_v27  ;;  %5391 = vst [vmem:[#allocation74_spill] sm:$0xff] %v4795_v12 }
 0x397   : > { %2245 = vmatpush1.bf16.msra.mxu0 %v4779_v18  ;;  %2286 = vmatpush1.bf16.msra.mxu1 %v4781_v8  ;;  %v4803_v8 = vld [vmem:[#allocation2 + $0x360] sm:$0xff]  ;;  %v4809_v18 = vld [vmem:[#allocation2 + $0x3b8] sm:$0xff] }
 0x398   : > { %2246 = vmatprep.subr.bf16.mxu0 %v4783_v5  ;;  %2287 = vmatprep.subr.bf16.mxu1 %v4785_v16  ;;  %v4805_v5 = vld [vmem:[#allocation2 + $0x370] sm:$0xff]  ;;  %v4807_v16 = vld [vmem:[#allocation2 + $0x3a8] sm:$0xff] }
 0x399   : > { %5393 = vst [vmem:[#allocation76_spill] sm:$0xff] %v4805_v5  ;;  %5394 = vst [vmem:[#allocation77_spill] sm:$0xff] %v4807_v16 }
 0x39b   : > { %2247 = vmatpush1.bf16.msra.mxu0 %v4791_v10  ;;  %2288 = vmatpush1.bf16.msra.mxu1 %v4793_v27  ;;  %v4815_v27 = vld [vmem:[#allocation2 + $0x3a0] sm:$0xff]  ;;  %v4821_v10 = vld [vmem:[#allocation2 + $0x3f8] sm:$0xff] }
 0x39c   : > { %2248 = vmatprep.subr.bf16.mxu0 %v4795_v12  ;;  %2289 = vmatprep.subr.bf16.mxu1 %v4797_v9  ;;  %v4817_v12 = vld [vmem:[#allocation2 + $0x3b0] sm:$0xff]  ;;  %v4819_v9 = vld [vmem:[#allocation2 + $0x3e8] sm:$0xff] }
 0x39f   : > { %2249 = vmatpush1.bf16.msra.mxu0 %v4803_v8  ;;  %2290 = vmatpush1.bf16.msra.mxu1 %v4805_v5  ;;  %v4827_v5 = vld [vmem:[#allocation2 + $0x3e0] sm:$0xff] }
 0x3a0   : > { %2250 = vmatprep.subr.bf16.mxu0 %v4807_v16  ;;  %2291 = vmatprep.subr.bf16.mxu1 %v4809_v18  ;;  %v4829_v16 = vld [vmem:[#allocation2 + $0x3f0] sm:$0xff] }
 0x3a3   : > { %2251 = vmatpush1.bf16.msra.mxu0 %v4815_v27  ;;  %2292 = vmatpush1.bf16.msra.mxu1 %v4817_v12 }
 0x3a4   : > { %2252 = vmatprep.subr.bf16.mxu0 %v4819_v9  ;;  %2293 = vmatprep.subr.bf16.mxu1 %v4821_v10 }
 0x3a7   : > { %2253 = vmatpush1.bf16.msra.mxu0 %v4827_v5  ;;  %2294 = vmatpush1.bf16.msra.mxu1 %v4829_v16 }
 0x3a8   : > { %2516 = vmatprep.subr.bf16.mxu0 %v4401_v45  ;;  %2557 = vmatprep.subr.bf16.mxu1 %v4403_v33  ;;  %v5395_v45 = vld [vmem:[#allocation9_spill] sm:$0xff]  ;;  %v5396_v33 = vld [vmem:[#allocation10_spill] sm:$0xff] }
 0x3aa   : > { %2255 = vmatmul.mubr.bf16.vlgmr.msra.gmra.mrb[20].mxu0 %v4643_v24  ;;  %2296 = vmatmul.mubr.bf16.vlgmr.msra.gmra.mrb[20].mxu1 %v4643_v24 }
 0x3ab   : > { %2517 = vmatpush1.bf16.msra.mxu0 %v4405_v14  ;;  %2558 = vmatpush1.bf16.msra.mxu1 %v4409_v48  ;;  %v5397_v14 = vld [vmem:[#allocation11_spill] sm:$0xff]  ;;  %v5398_v48 = vld [vmem:[#allocation12_spill] sm:$0xff] }
 0x3ac   : > { %2518 = vmatprep.subr.bf16.mxu0 %v4411_v49  ;;  %2559 = vmatprep.subr.bf16.mxu1 %v4413_v47  ;;  %v5399_v49 = vld [vmem:[#allocation13_spill] sm:$0xff]  ;;  %v5400_v47 = vld [vmem:[#allocation14_spill] sm:$0xff] }
 0x3af   : > { %2519 = vmatpush1.bf16.msra.mxu0 %v4419_v44  ;;  %2560 = vmatpush1.bf16.msra.mxu1 %v4421_v60  ;;  %v5401_v44 = vld [vmem:[#allocation15_spill] sm:$0xff]  ;;  %v5402_v60 = vld [vmem:[#allocation16_spill] sm:$0xff] }
 0x3b0   : > { %2520 = vmatprep.subr.bf16.mxu0 %v4423_v37  ;;  %2561 = vmatprep.subr.bf16.mxu1 %v4425_v29  ;;  %v5403_v37 = vld [vmem:[#allocation17_spill] sm:$0xff]  ;;  %v5404_v29 = vld [vmem:[#allocation19_spill] sm:$0xff] }
 0x3b3   : > { %2521 = vmatpush1.bf16.msra.mxu0 %v4431_v34  ;;  %2562 = vmatpush1.bf16.msra.mxu1 %v4433_v35  ;;  %v5405_v34 = vld [vmem:[#allocation20_spill] sm:$0xff]  ;;  %v5406_v35 = vld [vmem:[#allocation21_spill] sm:$0xff] }
 0x3b4   : > { %2522 = vmatprep.subr.bf16.mxu0 %v4435_v36  ;;  %2563 = vmatprep.subr.bf16.mxu1 %v4437_v38  ;;  %v5407_v36 = vld [vmem:[#allocation18_spill] sm:$0xff]  ;;  %v5408_v38 = vld [vmem:[#allocation8_spill] sm:$0xff] }
 0x3b7   : > { %2523 = vmatpush1.bf16.msra.mxu0 %v4443_v39  ;;  %2564 = vmatpush1.bf16.msra.mxu1 %v4445_v40  ;;  %v5409_v39 = vld [vmem:[#allocation22_spill] sm:$0xff]  ;;  %v5410_v40 = vld [vmem:[#allocation23_spill] sm:$0xff] }
 0x3b8   : > { %2524 = vmatprep.subr.bf16.mxu0 %v4447_v41  ;;  %2565 = vmatprep.subr.bf16.mxu1 %v4449_v42  ;;  %v5411_v41 = vld [vmem:[#allocation24_spill] sm:$0xff]  ;;  %v5412_v42 = vld [vmem:[#allocation25_spill] sm:$0xff] }
 0x3bb   : > { %2525 = vmatpush1.bf16.msra.mxu0 %v4455_v43  ;;  %2566 = vmatpush1.bf16.msra.mxu1 %v4457_v46  ;;  %v5413_v43 = vld [vmem:[#allocation26_spill] sm:$0xff]  ;;  %v5414_v46 = vld [vmem:[#allocation27_spill] sm:$0xff] }
 0x3bc   : > { %2526 = vmatprep.subr.bf16.mxu0 %v4459_v13  ;;  %2567 = vmatprep.subr.bf16.mxu1 %v4461_v50  ;;  %v5415_v13 = vld [vmem:[#allocation28_spill] sm:$0xff]  ;;  %v5416_v50 = vld [vmem:[#allocation29_spill] sm:$0xff] }
 0x3bf   : > { %2527 = vmatpush1.bf16.msra.mxu0 %v4467_v51  ;;  %2568 = vmatpush1.bf16.msra.mxu1 %v4469_v52  ;;  %v5417_v51 = vld [vmem:[#allocation30_spill] sm:$0xff]  ;;  %v5418_v52 = vld [vmem:[#allocation31_spill] sm:$0xff] }
 0x3c0   : > { %2528 = vmatprep.subr.bf16.mxu0 %v4473_v53  ;;  %2569 = vmatprep.subr.bf16.mxu1 %v4475_v54  ;;  %v5419_v53 = vld [vmem:[#allocation32_spill] sm:$0xff]  ;;  %v5420_v54 = vld [vmem:[#allocation33_spill] sm:$0xff] }
 0x3c3   : > { %2529 = vmatpush1.bf16.msra.mxu0 %v4479_v55  ;;  %2570 = vmatpush1.bf16.msra.mxu1 %v4481_v56  ;;  %v5421_v55 = vld [vmem:[#allocation34_spill] sm:$0xff]  ;;  %v5422_v56 = vld [vmem:[#allocation35_spill] sm:$0xff] }
 0x3c4   : > { %2530 = vmatprep.subr.bf16.mxu0 %v4485_v57  ;;  %2571 = vmatprep.subr.bf16.mxu1 %v4487_v58  ;;  %v5423_v57 = vld [vmem:[#allocation36_spill] sm:$0xff]  ;;  %v5424_v58 = vld [vmem:[#allocation37_spill] sm:$0xff] }
 0x3c7   : > { %2531 = vmatpush1.bf16.msra.mxu0 %v4491_v59  ;;  %2572 = vmatpush1.bf16.msra.mxu1 %v4493_v62  ;;  %v2863_v59 = vld [vmem:[%s3084_s20 + $0x90] sm:$0xff]  ;;  %v2864_v62 = vld [vmem:[%s3084_s20 + $0x98] sm:$0xff] }
 0x3c8   : > { %2532 = vmatprep.subr.bf16.mxu0 %v4497_v63  ;;  %2573 = vmatprep.subr.bf16.mxu1 %v4499_v0 }
 0x3cb   : > { %2533 = vmatpush1.bf16.msra.mxu0 %v4503_v1  ;;  %2574 = vmatpush1.bf16.msra.mxu1 %v4505_v2 }
 0x3cc   : > { %2534 = vmatprep.subr.bf16.mxu0 %v5395_v45  ;;  %2575 = vmatprep.subr.bf16.mxu1 %v5396_v33 }
 0x3cf   : > { %2535 = vmatpush1.bf16.msra.mxu0 %v5397_v14  ;;  %2576 = vmatpush1.bf16.msra.mxu1 %v5398_v48 }
 0x3d0   : > { %2536 = vmatprep.subr.bf16.mxu0 %v5399_v49  ;;  %2577 = vmatprep.subr.bf16.mxu1 %v5400_v47 }
 0x3d3   : > { %2537 = vmatpush1.bf16.msra.mxu0 %v5401_v44  ;;  %2578 = vmatpush1.bf16.msra.mxu1 %v5402_v60 }
 0x3d4   : > { %2538 = vmatprep.subr.bf16.mxu0 %v5403_v37  ;;  %2579 = vmatprep.subr.bf16.mxu1 %v5404_v29 }
 0x3d7   : > { %2539 = vmatpush1.bf16.msra.mxu0 %v5405_v34  ;;  %2580 = vmatpush1.bf16.msra.mxu1 %v5406_v35 }
 0x3d8   : > { %2540 = vmatprep.subr.bf16.mxu0 %v5407_v36  ;;  %2581 = vmatprep.subr.bf16.mxu1 %v5408_v38 }
 0x3db   : > { %2541 = vmatpush1.bf16.msra.mxu0 %v5409_v39  ;;  %2582 = vmatpush1.bf16.msra.mxu1 %v5410_v40  ;;  %v2861_v40 = vld [vmem:[%s3084_s20 + $0x80] sm:$0xff] }
 0x3dc   : > { %2542 = vmatprep.subr.bf16.mxu0 %v5411_v41  ;;  %2583 = vmatprep.subr.bf16.mxu1 %v5412_v42  ;;  %v2862_v41 = vld [vmem:[%s3084_s20 + $0x88] sm:$0xff] }
 0x3df   : > { %2543 = vmatpush1.bf16.msra.mxu0 %v5413_v43  ;;  %2584 = vmatpush1.bf16.msra.mxu1 %v5414_v46 }
 0x3e0   : > { %2544 = vmatprep.subr.bf16.mxu0 %v5415_v13  ;;  %2585 = vmatprep.subr.bf16.mxu1 %v5416_v50 }
 0x3e3   : > { %2545 = vmatpush1.bf16.msra.mxu0 %v5417_v51  ;;  %2586 = vmatpush1.bf16.msra.mxu1 %v5418_v52 }
 0x3e4   : > { %2546 = vmatprep.subr.bf16.mxu0 %v5419_v53  ;;  %2587 = vmatprep.subr.bf16.mxu1 %v5420_v54  ;;  %v2865_v54 = vld [vmem:[%s3084_s20 + $0xa0] sm:$0xff] }
 0x3e7   : > { %2547 = vmatpush1.bf16.msra.mxu0 %v5421_v55  ;;  %2588 = vmatpush1.bf16.msra.mxu1 %v5422_v56  ;;  %v2867_v55 = vld [vmem:[%s3084_s20 + $0xb0] sm:$0xff]  ;;  %v2866_v56 = vld [vmem:[%s3084_s20 + $0xa8] sm:$0xff] }
 0x3e8   : > { %2598 = vmatprep.subr.bf16.mxu0 %v5423_v57  ;;  %2639 = vmatprep.subr.bf16.mxu1 %v5424_v58  ;;  %v2868_v57 = vld [vmem:[%s3084_s20 + $0xb8] sm:$0xff] }
 0x43d   : > { %v2174_v63 = vpop.f32.mrb[16].mxu0  ;;  %v2215_v0 = vpop.f32.mrb[16].mxu1 }
 0x43e   : > { %v2216_v1 = vadd.f32 %v2863_v59, %v2215_v0  ;;  %v2176_v2 = vpop.f32.mrb[17].mxu0  ;;  %v2217_v24 = vpop.f32.mrb[17].mxu1  ;;  %v2175_v42 = vadd.f32 %v2861_v40, %v2174_v63  ;;  %v2354_v40 = vstv %s2352_s29 }
 0x43f   : > { %v2218_v45 = vadd.f32 %v2864_v62, %v2217_v24  ;;  %v2178_v33 = vpop.f32.mrb[18].mxu0  ;;  %v2219_v14 = vpop.f32.mrb[18].mxu1  ;;  %v2177_v43 = vadd.f32 %v2862_v41, %v2176_v2  ;;  %vm2358_vm5 = vcmp.gt.s32.totalorder %v4297_v61, %v2354_v40  ;;  %v5459_v40 = vld [vmem:[#allocation72_spill] sm:$0xff] }
 0x440   : > { %v2871_v48 = vmul.f32 -1.442695, %v2216_v1  ;;  %v2179_v49 = vpop.f32.mrb[19].mxu0  ;;  %v2220_v47 = vpop.f32.mrb[19].mxu1  ;;  %v2869_v46 = vmul.f32 -1.442695, %v2175_v42 }
 0x441   : > { %v2872_v44 = vmul.f32 -1.442695, %v2218_v45  ;;  %v2870_v13 = vmul.f32 -1.442695, %v2177_v43 }
 0x442   : > { %2973 = vpow2.f32 %v2871_v48 }
 0x443   : > { %2975 = vpow2.f32 %v2872_v44 }
 0x44c   : > { %v2974_v60 = vpop.eup %2973 }
 0x44d   : > { %v2322_v37 = vadd.f32 1.0, %v2974_v60  ;;  %v2976_v29 = vpop.eup %2975 }
 0x44e   : > { %v2323_v34 = vadd.f32 1.0, %v2976_v29 }
 0x44f   : > { %2977 = vrcp.f32 %v2322_v37 }
 0x450   : > { %2979 = vrcp.f32 %v2323_v34  ;;  %v2353_v34 = vstv %s1996_s28 }
 0x451   : > { %2981 = vpow2.f32 %v2869_v46  ;;  %vm2357_vm4 = vcmp.gt.s32.totalorder %v4297_v61, %v2353_v34  ;;  %v5456_v34 = vld [vmem:[#allocation69_spill] sm:$0xff] }
 0x452   : > { %2983 = vpow2.f32 %v2870_v13 }
 0x459   : > { %v2978_v35 = vpop.eup %2977 }
 0x45a   : > { %v2342_v36 = vmul.f32 %v2978_v35, %v4616_v11  ;;  %v2980_v38 = vpop.eup %2979 }
 0x45b   : > { %v2343_v39 = vmul.f32 %v2980_v38, %v4621_v19  ;;  %v2982_v50 = vpop.eup %2981 }
 0x45c   : > { %v2984_v51 = vpop.eup %2983  ;;  %v2310_v52 = vadd.f32 1.0, %v2982_v50 }
 0x45d   : > { %v2311_v53 = vadd.f32 1.0, %v2984_v51 }
 0x45e   : > { %2985 = vrcp.f32 %v2310_v52 }
 0x45f   : > { %2987 = vrcp.f32 %v2311_v53 }
 0x468   : > { %v2986_v44 = vpop.eup %2985 }
 0x469   : > { %v2988_v60 = vpop.eup %2987 }
 0x47d   : > { %v2256_v58 = vpop.f32.mrb[20].mxu0  ;;  %v2297_v59 = vpop.f32.mrb[20].mxu1 }
 0x47e   : > { %v2257_v62 = vadd.f32 %v2865_v54, %v2256_v58  ;;  %v2298_v0 = vadd.f32 %v2867_v55, %v2297_v59  ;;  %v2258_v1 = vpop.f32.mrb[21].mxu0  ;;  %v2299_v63 = vpop.f32.mrb[21].mxu1 }
 0x47f   : > { %v2259_v2 = vadd.f32 %v2866_v56, %v2258_v1  ;;  %v2300_v24 = vadd.f32 %v2868_v57, %v2299_v63  ;;  %v2260_v45 = vpop.f32.mrb[22].mxu0  ;;  %v2301_v33 = vpop.f32.mrb[22].mxu1  ;;  %v5442_v1 = vld [vmem:[#allocation55_spill] sm:$0xff]  ;;  %v5443_v63 = vld [vmem:[#allocation56_spill] sm:$0xff] }
 0x480   : > { %2989 = vtanh.f32 %v2257_v62  ;;  %v2873_v14 = vmul.f32 -1.442695, %v2298_v0  ;;  %v2261_v48 = vpop.f32.mrb[23].mxu0  ;;  %v2302_v49 = vpop.f32.mrb[23].mxu1  ;;  %v5440_v62 = vld [vmem:[#allocation53_spill] sm:$0xff]  ;;  %v5441_v0 = vld [vmem:[#allocation54_spill] sm:$0xff] }
 0x481   : > { %2991 = vtanh.f32 %v2259_v2  ;;  %v2874_v47 = vmul.f32 -1.442695, %v2300_v24  ;;  %v5444_v2 = vld [vmem:[#allocation57_spill] sm:$0xff]  ;;  %v5445_v24 = vld [vmem:[#allocation58_spill] sm:$0xff]  ;;  %v5446_v45 = vld [vmem:[#allocation59_spill] sm:$0xff] }
 0x482   : > { %2993 = vpow2.f32 %v2873_v14  ;;  %v5447_v33 = vld [vmem:[#allocation60_spill] sm:$0xff]  ;;  %v5448_v14 = vld [vmem:[#allocation61_spill] sm:$0xff]  ;;  %v5449_v48 = vld [vmem:[#allocation62_spill] sm:$0xff] }
 0x483   : > { %2995 = vpow2.f32 %v2874_v47  ;;  %v5450_v49 = vld [vmem:[#allocation63_spill] sm:$0xff]  ;;  %v5451_v47 = vld [vmem:[#allocation64_spill] sm:$0xff] }
 0x48a   : > { %v2990_v37 = vpop.eup %2989 }
 0x48b   : > { %v2992_v29 = vpop.eup %2991  ;;  %v2344_v35 = vmul.f32 %v2990_v37, %v2986_v44  ;;  %v5452_v44 = vld [vmem:[#allocation65_spill] sm:$0xff]  ;;  %v5454_v37 = vld [vmem:[#allocation67_spill] sm:$0xff] }
 0x48c   : > { %v2994_v38 = vpop.eup %2993  ;;  %v2345_v41 = vmul.f32 %v2992_v29, %v2988_v60  ;;  %v5453_v60 = vld [vmem:[#allocation66_spill] sm:$0xff]  ;;  %v5455_v29 = vld [vmem:[#allocation68_spill] sm:$0xff] }
 0x48d   : > { %v2996_v42 = vpop.eup %2995  ;;  %v2346_v43 = vadd.f32 %v2344_v35, %v2342_v36  ;;  %v2336_v46 = vadd.f32 1.0, %v2994_v38  ;;  %v5457_v35 = vld [vmem:[#allocation70_spill] sm:$0xff]  ;;  %v5458_v38 = vld [vmem:[#allocation71_spill] sm:$0xff] }
 0x48e   : > { %v2347_v13 = vadd.f32 %v2345_v41, %v2343_v39  ;;  %v2337_v50 = vadd.f32 1.0, %v2996_v42  ;;  %v5460_v41 = vld [vmem:[#allocation73_spill] sm:$0xff]  ;;  %v5461_v42 = vld [vmem:[#allocation74_spill] sm:$0xff] }
 0x48f   : > { %2997 = vtanh.f32 %v2346_v43  ;;  %v4918_v51 = vsel %vm2357_vm4, %v2346_v43, %v4616_v11  ;;  %v5462_v43 = vld [vmem:[#allocation75_spill] sm:$0xff] }
 0x490   : > { %2999 = vrcp.f32 %v2336_v46  ;;  %v4923_v36 = vsel %vm2358_vm5, %v2347_v13, %v4621_v19  ;;  %v5463_v46 = vld [vmem:[#allocation76_spill] sm:$0xff] }
 0x491   : > { %3001 = vtanh.f32 %v2347_v13  ;;  %v5464_v13 = vld [vmem:[#allocation77_spill] sm:$0xff] }
 0x492   : > { %3003 = vrcp.f32 %v2337_v50  ;;  %v2880_v50 = vld [vmem:[%s3084_s20 + $0xd8] sm:$0xff] }
 0x499   : > { %v2998_v39 = vpop.eup %2997 }
 0x49a   : > { %v3000_v52 = vpop.eup %2999 }
 0x49b   : > { %v3002_v53 = vpop.eup %3001  ;;  %v2350_v54 = vmul.f32 %v3000_v52, %v2998_v39 }
 0x49c   : > { %v3004_v55 = vpop.eup %3003 }
 0x49d   : > { %v4928_v56 = vsel %vm2357_vm4, %v2350_v54, %v4626_v23  ;;  %v2367_v11 = vsel %vm2357_vm4, %v2350_v54, 0.0  ;;  %v2351_v57 = vmul.f32 %v3004_v55, %v3002_v53 }
 0x49e   : > { %2875 = vst [vmem:[%s3089_s23 + $0x20] sm:$0xff] %v2367_v11  ;;  %v4945_v23 = vpack.c.bf16 %v4928_v56, %v4928_v56 }
 0x49f   : > { %v4936_v19 = vsel %vm2358_vm5, %v2351_v57, %v4634_v15  ;;  %v2368_v58 = vsel %vm2358_vm5, %v2351_v57, 0.0  ;;  %v5425_v15 = vld [vmem:[#allocation38_spill] sm:$0xff] }
 0x4a0   : > { %2876 = vst [vmem:[%s3089_s23 + $0x28] sm:$0xff] %v2368_v58  ;;  %v2378_v59 = vpack.c.bf16 %v4936_v19, %v4936_v19 }
 0x4a2   : > { %2548 = vmatprep.mubr.bf16.mxu0 %v2378_v59  ;;  %2589 = vmatprep.mubr.bf16.mxu1 %v2378_v59 }
 0x4a3   : > { %2549 = vmatmul.mubr.bf16.vlgmr.msra.gmra.mrb[24].mxu0 %v4945_v23  ;;  %2590 = vmatmul.mubr.bf16.vlgmr.msra.gmra.mrb[24].mxu1 %v4945_v23 }
 0x4a4   : > { %2599 = vmatpush1.bf16.msra.mxu0 %v4645_v6  ;;  %2640 = vmatpush1.bf16.msra.mxu1 %v4647_v28  ;;  %v5426_v6 = vld [vmem:[#allocation39_spill] sm:$0xff]  ;;  %v5427_v28 = vld [vmem:[#allocation40_spill] sm:$0xff] }
 0x4a5   : > { %2630 = vmatprep.mubr.bf16.mxu0 %v2378_v59  ;;  %2671 = vmatprep.mubr.bf16.mxu1 %v2378_v59 }
 0x4a6   : > { %2600 = vmatprep.subr.bf16.mxu0 %v4651_v26  ;;  %2641 = vmatprep.subr.bf16.mxu1 %v4653_v30  ;;  %v5428_v26 = vld [vmem:[#allocation41_spill] sm:$0xff]  ;;  %v5429_v30 = vld [vmem:[#allocation42_spill] sm:$0xff] }
 0x4a8   : > { %2601 = vmatpush1.bf16.msra.mxu0 %v4657_v31  ;;  %2642 = vmatpush1.bf16.msra.mxu1 %v4659_v3  ;;  %v5430_v31 = vld [vmem:[#allocation43_spill] sm:$0xff]  ;;  %v5431_v3 = vld [vmem:[#allocation44_spill] sm:$0xff] }
 0x4a9   : > { %2602 = vmatprep.subr.bf16.mxu0 %v4663_v7  ;;  %2643 = vmatprep.subr.bf16.mxu1 %v4665_v32  ;;  %v5432_v7 = vld [vmem:[#allocation45_spill] sm:$0xff]  ;;  %v5433_v32 = vld [vmem:[#allocation46_spill] sm:$0xff] }
 0x4ac   : > { %2603 = vmatpush1.bf16.msra.mxu0 %v4671_v25  ;;  %2644 = vmatpush1.bf16.msra.mxu1 %v4673_v17  ;;  %v5434_v25 = vld [vmem:[#allocation47_spill] sm:$0xff]  ;;  %v5435_v17 = vld [vmem:[#allocation48_spill] sm:$0xff] }
 0x4ad   : > { %2604 = vmatprep.subr.bf16.mxu0 %v4675_v4  ;;  %2645 = vmatprep.subr.bf16.mxu1 %v4677_v20  ;;  %v5436_v4 = vld [vmem:[#allocation49_spill] sm:$0xff]  ;;  %v5437_v20 = vld [vmem:[#allocation50_spill] sm:$0xff] }
 0x4b0   : > { %2605 = vmatpush1.bf16.msra.mxu0 %v4683_v22  ;;  %2646 = vmatpush1.bf16.msra.mxu1 %v4685_v21  ;;  %v5438_v22 = vld [vmem:[#allocation51_spill] sm:$0xff]  ;;  %v5439_v21 = vld [vmem:[#allocation52_spill] sm:$0xff] }
 0x4b1   : > { %2606 = vmatprep.subr.bf16.mxu0 %v5425_v15  ;;  %2647 = vmatprep.subr.bf16.mxu1 %v5426_v6 }
 0x4b4   : > { %2607 = vmatpush1.bf16.msra.mxu0 %v5427_v28  ;;  %2648 = vmatpush1.bf16.msra.mxu1 %v5428_v26  ;;  %v2877_v26 = vld [vmem:[%s3084_s20 + $0xc0] sm:$0xff] }
 0x4b5   : > { %2608 = vmatprep.subr.bf16.mxu0 %v5429_v30  ;;  %2649 = vmatprep.subr.bf16.mxu1 %v5430_v31  ;;  %v2878_v30 = vld [vmem:[%s3084_s20 + $0xc8] sm:$0xff] }
 0x4b8   : > { %2609 = vmatpush1.bf16.msra.mxu0 %v5431_v3  ;;  %2650 = vmatpush1.bf16.msra.mxu1 %v5432_v7 }
 0x4b9   : > { %2610 = vmatprep.subr.bf16.mxu0 %v5433_v32  ;;  %2651 = vmatprep.subr.bf16.mxu1 %v5434_v25 }
 0x4bc   : > { %2611 = vmatpush1.bf16.msra.mxu0 %v5435_v17  ;;  %2652 = vmatpush1.bf16.msra.mxu1 %v5436_v4 }
 0x4bd   : > { %2612 = vmatprep.subr.bf16.mxu0 %v5437_v20  ;;  %2653 = vmatprep.subr.bf16.mxu1 %v5438_v22  ;;  %v2881_v22 = vld [vmem:[%s3084_s20 + $0xe0] sm:$0xff] }
 0x4c0   : > { %2613 = vmatpush1.bf16.msra.mxu0 %v5439_v21  ;;  %2654 = vmatpush1.bf16.msra.mxu1 %v5440_v62  ;;  %v2883_v21 = vld [vmem:[%s3084_s20 + $0xf0] sm:$0xff]  ;;  %v2882_v62 = vld [vmem:[%s3084_s20 + $0xe8] sm:$0xff] }
 0x4c1   : > { %2614 = vmatprep.subr.bf16.mxu0 %v5441_v0  ;;  %2655 = vmatprep.subr.bf16.mxu1 %v5442_v1  ;;  %v2884_v0 = vld [vmem:[%s3084_s20 + $0xf8] sm:$0xff] }
 0x4c4   : > { %2615 = vmatpush1.bf16.msra.mxu0 %v5443_v63  ;;  %2656 = vmatpush1.bf16.msra.mxu1 %v5444_v2 }
 0x4c5   : > { %2616 = vmatprep.subr.bf16.mxu0 %v5445_v24  ;;  %2657 = vmatprep.subr.bf16.mxu1 %v5446_v45 }
 0x4c8   : > { %2617 = vmatpush1.bf16.msra.mxu0 %v5447_v33  ;;  %2658 = vmatpush1.bf16.msra.mxu1 %v5448_v14 }
 0x4c9   : > { %2618 = vmatprep.subr.bf16.mxu0 %v5449_v48  ;;  %2659 = vmatprep.subr.bf16.mxu1 %v5450_v49 }
 0x4cc   : > { %2619 = vmatpush1.bf16.msra.mxu0 %v5451_v47  ;;  %2660 = vmatpush1.bf16.msra.mxu1 %v5452_v44 }
 0x4cd   : > { %2620 = vmatprep.subr.bf16.mxu0 %v5453_v60  ;;  %2661 = vmatprep.subr.bf16.mxu1 %v5454_v37 }
 0x4d0   : > { %2621 = vmatpush1.bf16.msra.mxu0 %v5455_v29  ;;  %2662 = vmatpush1.bf16.msra.mxu1 %v5456_v34 }
 0x4d1   : > { %2622 = vmatprep.subr.bf16.mxu0 %v5457_v35  ;;  %2663 = vmatprep.subr.bf16.mxu1 %v5458_v38 }
 0x4d4   : > { %2623 = vmatpush1.bf16.msra.mxu0 %v5459_v40  ;;  %2664 = vmatpush1.bf16.msra.mxu1 %v5460_v41 }
 0x4d5   : > { %2624 = vmatprep.subr.bf16.mxu0 %v5461_v42  ;;  %2665 = vmatprep.subr.bf16.mxu1 %v5462_v43 }
 0x4d8   : > { %2625 = vmatpush1.bf16.msra.mxu0 %v4803_v8  ;;  %2666 = vmatpush1.bf16.msra.mxu1 %v5463_v46  ;;  %v2879_v8 = vld [vmem:[%s3084_s20 + $0xd0] sm:$0xff]  ;;  %s2372_s20 = sadd.s32 3, %s3077_s14  ;;  %v2730_v46 = vstv %s2728_s30 }
 0x4d9   : > { %2626 = vmatprep.subr.bf16.mxu0 %v5464_v13  ;;  %2667 = vmatprep.subr.bf16.mxu1 %v4809_v18  ;;  %v2729_v41 = vstv %s2372_s20  ;;  %vm2734_vm7 = vcmp.gt.s32.totalorder %v4297_v61, %v2730_v46 }
 0x4da   : > { %vm2733_vm6 = vcmp.gt.s32.totalorder %v4297_v61, %v2729_v41 }
 0x4dc   : > { %2627 = vmatpush1.bf16.msra.mxu0 %v4815_v27  ;;  %2668 = vmatpush1.bf16.msra.mxu1 %v4817_v12 }
 0x4dd   : > { %2628 = vmatprep.subr.bf16.mxu0 %v4819_v9  ;;  %2669 = vmatprep.subr.bf16.mxu1 %v4821_v10 }
 0x4e0   : > { %2629 = vmatpush1.bf16.msra.mxu0 %v4827_v5  ;;  %2670 = vmatpush1.bf16.msra.mxu1 %v4829_v16 }
 0x4e3   : > { %2631 = vmatmul.mubr.bf16.vlgmr.msra.gmra.mrb[28].mxu0 %v4945_v23  ;;  %2672 = vmatmul.mubr.bf16.vlgmr.msra.gmra.mrb[28].mxu1 %v4945_v23 }
 0x576   : > { %v2550_v39 = vpop.f32.mrb[24].mxu0  ;;  %v2591_v18 = vpop.f32.mrb[24].mxu1 }
 0x577   : > { %v2592_v52 = vadd.f32 %v2879_v8, %v2591_v18  ;;  %v2552_v27 = vpop.f32.mrb[25].mxu0  ;;  %v2593_v53 = vpop.f32.mrb[25].mxu1  ;;  %v2551_v31 = vadd.f32 %v2877_v26, %v2550_v39 }
 0x578   : > { %v2594_v12 = vadd.f32 %v2880_v50, %v2593_v53  ;;  %v2554_v54 = vpop.f32.mrb[26].mxu0  ;;  %v2595_v9 = vpop.f32.mrb[26].mxu1  ;;  %v2553_v3 = vadd.f32 %v2878_v30, %v2552_v27 }
 0x579   : > { %v2887_v55 = vmul.f32 -1.442695, %v2592_v52  ;;  %v2555_v10 = vpop.f32.mrb[27].mxu0  ;;  %v2596_v5 = vpop.f32.mrb[27].mxu1  ;;  %v2885_v7 = vmul.f32 -1.442695, %v2551_v31 }
 0x57a   : > { %v2888_v16 = vmul.f32 -1.442695, %v2594_v12  ;;  %v2886_v32 = vmul.f32 -1.442695, %v2553_v3 }
 0x57b   : > { %3005 = vpow2.f32 %v2887_v55 }
 0x57c   : > { %3007 = vpow2.f32 %v2888_v16 }
 0x585   : > { %v3006_v11 = vpop.eup %3005 }
 0x586   : > { %v2698_v57 = vadd.f32 1.0, %v3006_v11  ;;  %v3008_v58 = vpop.eup %3007 }
 0x587   : > { %v2699_v59 = vadd.f32 1.0, %v3008_v58 }
 0x588   : > { %3009 = vrcp.f32 %v2698_v57 }
 0x589   : > { %3011 = vrcp.f32 %v2699_v59 }
 0x58a   : > { %3013 = vpow2.f32 %v2885_v7 }
 0x58b   : > { %3015 = vpow2.f32 %v2886_v32 }
 0x592   : > { %v3010_v23 = vpop.eup %3009 }
 0x593   : > { %v2718_v15 = vmul.f32 %v3010_v23, %v4918_v51  ;;  %v3012_v6 = vpop.eup %3011 }
 0x594   : > { %v2719_v28 = vmul.f32 %v3012_v6, %v4923_v36  ;;  %v3014_v25 = vpop.eup %3013 }
 0x595   : > { %v3016_v17 = vpop.eup %3015  ;;  %v2686_v4 = vadd.f32 1.0, %v3014_v25 }
 0x596   : > { %v2687_v20 = vadd.f32 1.0, %v3016_v17 }
 0x597   : > { %3017 = vrcp.f32 %v2686_v4 }
 0x598   : > { %3019 = vrcp.f32 %v2687_v20 }
 0x5a1   : > { %v3018_v34 = vpop.eup %3017 }
 0x5a2   : > { %v3020_v35 = vpop.eup %3019 }
 0x5b6   : > { %v2632_v1 = vpop.f32.mrb[28].mxu0  ;;  %v2673_v63 = vpop.f32.mrb[28].mxu1 }
 0x5b7   : > { %v2633_v2 = vadd.f32 %v2881_v22, %v2632_v1  ;;  %v2674_v24 = vadd.f32 %v2883_v21, %v2673_v63  ;;  %v2634_v45 = vpop.f32.mrb[29].mxu0  ;;  %v2675_v33 = vpop.f32.mrb[29].mxu1 }
 0x5b8   : > { %v2635_v14 = vadd.f32 %v2882_v62, %v2634_v45  ;;  %v2676_v48 = vadd.f32 %v2884_v0, %v2675_v33  ;;  %v2636_v49 = vpop.f32.mrb[30].mxu0  ;;  %v2677_v47 = vpop.f32.mrb[30].mxu1 }
 0x5b9   : > { %3021 = vtanh.f32 %v2633_v2  ;;  %v2889_v44 = vmul.f32 -1.442695, %v2674_v24  ;;  %v2637_v60 = vpop.f32.mrb[31].mxu0  ;;  %v2678_v37 = vpop.f32.mrb[31].mxu1 }
 0x5ba   : > { %3023 = vtanh.f32 %v2635_v14  ;;  %v2890_v29 = vmul.f32 -1.442695, %v2676_v48 }
 0x5bb   : > { %3025 = vpow2.f32 %v2889_v44 }
 0x5bc   : > { %3027 = vpow2.f32 %v2890_v29 }
 0x5c3   : > { %v3022_v38 = vpop.eup %3021 }
 0x5c4   : > { %v3024_v40 = vpop.eup %3023  ;;  %v2720_v42 = vmul.f32 %v3022_v38, %v3018_v34 }
 0x5c5   : > { %v3026_v43 = vpop.eup %3025  ;;  %v2721_v13 = vmul.f32 %v3024_v40, %v3020_v35 }
 0x5c6   : > { %v3028_v8 = vpop.eup %3027  ;;  %v2722_v50 = vadd.f32 %v2720_v42, %v2718_v15  ;;  %v2712_v39 = vadd.f32 1.0, %v3026_v43 }
 0x5c7   : > { %v2723_v18 = vadd.f32 %v2721_v13, %v2719_v28  ;;  %v2713_v52 = vadd.f32 1.0, %v3028_v8 }
 0x5c8   : > { %3029 = vtanh.f32 %v2722_v50  ;;  %v2739_v27 = vsel %vm2733_vm6, %v2722_v50, %v4918_v51 }
 0x5c9   : > { %2741 = vst [vmem:[#allocation5] sm:$0xff] %v2739_v27  ;;  %3031 = vrcp.f32 %v2712_v39  ;;  %v2740_v53 = vsel %vm2734_vm7, %v2723_v18, %v4923_v36 }
 0x5ca   : > { %3033 = vtanh.f32 %v2723_v18  ;;  %2742 = vst [vmem:[#allocation5 + $0x8] sm:$0xff] %v2740_v53 }
 0x5cb   : > { %3035 = vrcp.f32 %v2713_v52 }
 0x5d2   : > { %v3030_v12 = vpop.eup %3029 }
 0x5d3   : > { %v3032_v54 = vpop.eup %3031 }
 0x5d4   : > { %v3034_v9 = vpop.eup %3033  ;;  %v2726_v55 = vmul.f32 %v3032_v54, %v3030_v12 }
 0x5d5   : > { %v3036_v10 = vpop.eup %3035 }
 0x5d6   : > { %v2735_v51 = vsel %vm2733_vm6, %v2726_v55, %v4928_v56  ;;  %v2743_v5 = vsel %vm2733_vm6, %v2726_v55, 0.0  ;;  %v2727_v16 = vmul.f32 %v3036_v10, %v3034_v9 }
 0x5d7   : > { %2737 = vst [vmem:[#allocation4] sm:$0xff] %v2735_v51  ;;  %2891 = vst [vmem:[%s3089_s23 + $0x30] sm:$0xff] %v2743_v5 }
 0x5d8   : > { %v2736_v36 = vsel %vm2734_vm7, %v2727_v16, %v4936_v19  ;;  %v2744_v11 = vsel %vm2734_vm7, %v2727_v16, 0.0 }
 0x5d9   : > { %2738 = vst [vmem:[#allocation4 + $0x8] sm:$0xff] %v2736_v36  ;;  %2892 = vst [vmem:[%s3089_s23 + $0x38] sm:$0xff] %v2744_v11 }
 0x5da PF: > { %s13_s12 = sadd.s32 1, %s3045_s12  }
 0x5db   : > { %p10_p5 = scmp.ge.s32.totalorder %s13_s12, 4  }
 0x5dd   :  { %12 = sbr.rel (!%p10_p5) target bundleno = 1 (0x1), region = 119 }
 0x5e4   :  { %2772 = vsyncmov [#allocation3] }
 0x5e7   :  { %s2773_s14 = vpop.sfrf %2772 }
 0x5e8   :  { %p2895_p6 = scmp.ne.s32.totalorder %s2773_s14, 0 }
 0x5ea   :  { %2777 = shalt.err (%p2895_p6)  }

</bundles_post_ra>
